<compile_context>
chip_gen: v6e
topology: v6e:2x2x1
jax: 0.10.0
libtpu: 0.0.40
codegen_flags: <defaults>
</compile_context>

<pallas_src>
import functools

import jax
import jax.numpy as jnp
from jax.experimental import pallas as pl
from jax.experimental.pallas import tpu as pltpu

EPS = 1e-5
C_PAD = 128           # lane-dense channel padding (assumes real channels <= 128)
VMEM_LIMIT = 32 * 1024 * 1024


# --------------------------------------------------------------------------
# Kernels
# --------------------------------------------------------------------------
def conv_stats_kernel(x_ref, w_ref, scale_ref, shift_ref, y_ref, stats_ref,
                      xpad_ref, *, apply_bnrelu):
    """Per-batch-element: [optional BN+ReLU of input] -> 3x3 conv -> raw output
    plus partial BatchNorm statistics (sum, sum of squares).

    x_ref     : (1, H, W, C)      input tile (fp32), C = C_PAD
    w_ref     : (9*C, C)          packed conv weights, bf16
    scale_ref : (1, C)            fused BN scale for the *input* (layer fusion)
    shift_ref : (1, C)            fused BN shift for the *input*
    y_ref     : (1, H, W, C)      raw conv output (pre-BN), fp32
    stats_ref : (1, 2, C)         [sum, sum_sq] over this block's H*W positions
    xpad_ref  : (H+2, W+2, C)     VMEM scratch: zero-padded (halo) input tile
    """
    _, h, w, c = x_ref.shape

    x = x_ref[0]                                          # (H, W, C) fp32
    if apply_bnrelu:
        # Fused BN+ReLU of the previous layer (per-channel FMA + max), fp32.
        x = jnp.maximum(x * scale_ref[...] + shift_ref[...], 0.0)

    # In-kernel zero padding (halo) in VMEM scratch: no HBM padding pass.
    xpad_ref[...] = jnp.zeros(xpad_ref.shape, xpad_ref.dtype)
    xpad_ref[1:1 + h, 1:1 + w, :] = x

    # im2col slab: pack the 9 taps into one matmul with K = 9*C (bf16 on MXU).
    cols = []
    for dy in range(3):
        for dx in range(3):
            cols.append(
                xpad_ref[dy:dy + h, dx:dx + w, :]
                .reshape(h * w, c)
                .astype(jnp.bfloat16))
    slab = jnp.concatenate(cols, axis=-1)                 # (H*W, 9*C) bf16
    acc = jnp.dot(slab, w_ref[...],
                  preferred_element_type=jnp.float32)     # (H*W, C) fp32

    # Partial BN statistics for this block (reduced across blocks in JAX).
    stats_ref[0, 0:1, :] = jnp.sum(acc, axis=0, keepdims=True)
    stats_ref[0, 1:2, :] = jnp.sum(acc * acc, axis=0, keepdims=True)

    y_ref[0] = acc.reshape(h, w, c)


def bn_relu_kernel(y_ref, scale_ref, shift_ref, o_ref):
    """Final normalize pass: o = relu(y * scale + shift), lane-dense C."""
    o_ref[0] = jnp.maximum(y_ref[0] * scale_ref[...] + shift_ref[...], 0.0)


# --------------------------------------------------------------------------
# pallas_call wrappers
# --------------------------------------------------------------------------
def conv_bn_stats(x, w_packed, scale_in, shift_in, *, apply_bnrelu):
    """Conv over the batch grid, returning raw conv output and partial stats."""
    n, h, w, c = x.shape
    kc, _ = w_packed.shape
    kernel = functools.partial(conv_stats_kernel, apply_bnrelu=apply_bnrelu)
    return pl.pallas_call(
        kernel,
        grid=(n,),
        in_specs=[
            pl.BlockSpec((1, h, w, c), lambda i: (i, 0, 0, 0)),
            pl.BlockSpec((kc, c), lambda i: (0, 0)),
            pl.BlockSpec((1, c), lambda i: (0, 0)),
            pl.BlockSpec((1, c), lambda i: (0, 0)),
        ],
        out_specs=(
            pl.BlockSpec((1, h, w, c), lambda i: (i, 0, 0, 0)),
            pl.BlockSpec((1, 2, c), lambda i: (i, 0, 0)),
        ),
        out_shape=(
            jax.ShapeDtypeStruct((n, h, w, c), jnp.float32),
            jax.ShapeDtypeStruct((n, 2, c), jnp.float32),
        ),
        scratch_shapes=[pltpu.VMEM((h + 2, w + 2, c), jnp.float32)],
        compiler_params=pltpu.CompilerParams(
            dimension_semantics=("parallel",),
            vmem_limit_bytes=VMEM_LIMIT,
        ),
    )(x, w_packed, scale_in, shift_in)


def bn_relu_apply(y, scale, shift):
    n, h, w, c = y.shape
    return pl.pallas_call(
        bn_relu_kernel,
        grid=(n,),
        in_specs=[
            pl.BlockSpec((1, h, w, c), lambda i: (i, 0, 0, 0)),
            pl.BlockSpec((1, c), lambda i: (0, 0)),
            pl.BlockSpec((1, c), lambda i: (0, 0)),
        ],
        out_specs=pl.BlockSpec((1, h, w, c), lambda i: (i, 0, 0, 0)),
        out_shape=jax.ShapeDtypeStruct((n, h, w, c), jnp.float32),
        compiler_params=pltpu.CompilerParams(
            dimension_semantics=("parallel",),
            vmem_limit_bytes=VMEM_LIMIT,
        ),
    )(y, scale, shift)


# --------------------------------------------------------------------------
# Parameter packing / BN folding (tiny glue ops, plain JAX)
# --------------------------------------------------------------------------
def _pad_last(a, c_pad):
    pad = c_pad - a.shape[-1]
    if pad == 0:
        return a
    return jnp.pad(a, [(0, 0)] * (a.ndim - 1) + [(0, pad)])


def _pack_weight(w, c_pad):
    """(3,3,Cin,Cout) -> zero-padded (9*C_PAD, C_PAD) bf16, tap-major rows."""
    kh, kw, cin, cout = w.shape
    wp = jnp.zeros((kh, kw, c_pad, c_pad), jnp.float32)
    wp = wp.at[:, :, :cin, :cout].set(w)
    return wp.reshape(kh * kw * c_pad, c_pad).astype(jnp.bfloat16)


def _bn_fold(stats, gamma_pad, beta_pad, count):
    """Fold batch statistics into per-channel (scale, shift) constants."""
    s = jnp.sum(stats[:, 0, :], axis=0)
    ssq = jnp.sum(stats[:, 1, :], axis=0)
    mean = s / count
    var = jnp.maximum(ssq / count - mean * mean, 0.0)   # biased variance
    scale = gamma_pad * jax.lax.rsqrt(var + EPS)
    shift = beta_pad - mean * scale
    return scale[None, :], shift[None, :]


# --------------------------------------------------------------------------
# Full CNNBlock forward
# --------------------------------------------------------------------------
def init_params(key, in_channels, out_channels):
    """Matches nn.Conv2d / nn.BatchNorm2d shapes (weights as (kh,kw,Cin,Cout)).
    Conv bias is omitted: training-mode BN subtracts the batch mean right
    after the conv, so the bias has no effect on the forward output."""
    k1, k2 = jax.random.split(key)
    w1 = 0.1 * jax.random.normal(k1, (3, 3, in_channels, out_channels), jnp.float32)
    w2 = 0.1 * jax.random.normal(k2, (3, 3, out_channels, out_channels), jnp.float32)
    return dict(
        w1=w1, g1=jnp.ones((out_channels,), jnp.float32),
        be1=jnp.zeros((out_channels,), jnp.float32),
        w2=w2, g2=jnp.ones((out_channels,), jnp.float32),
        be2=jnp.zeros((out_channels,), jnp.float32),
    )


@jax.jit
def cnn_block_forward(x_nchw, params):
    """CNNBlock forward. Input/output NCHW to match the PyTorch module."""
    n, cin, h, w = x_nchw.shape
    cout = params["w1"].shape[-1]
    c = C_PAD

    # NCHW -> NHWC, channel-padded to 128 lanes (lane-dense loads/stores).
    x = jnp.transpose(x_nchw, (0, 2, 3, 1))
    x = _pad_last(x, c)

    w1 = _pack_weight(params["w1"], c)
    w2 = _pack_weight(params["w2"], c)
    g1, be1 = _pad_last(params["g1"], c), _pad_last(params["be1"], c)
    g2, be2 = _pad_last(params["g2"], c), _pad_last(params["be2"], c)

    count = n * h * w
    dummy = jnp.zeros((1, c), jnp.float32)

    # Layer 1: conv + partial stats.
    raw1, st1 = conv_bn_stats(x, w1, dummy, dummy, apply_bnrelu=False)
    sc1, sh1 = _bn_fold(st1, g1, be1, count)

    # Layer 2: BN1+ReLU1 fused into the conv kernel's input path, + stats.
    raw2, st2 = conv_bn_stats(raw1, w2, sc1, sh1, apply_bnrelu=True)
    sc2, sh2 = _bn_fold(st2, g2, be2, count)

    # Final BN2 + ReLU2 (lane-dense output), then strip padding lanes.
    out = bn_relu_apply(raw2, sc2, sh2)
    out = out[..., :cout]
    return jnp.transpose(out, (0, 3, 1, 2))   # NHWC -> NCHW


if __name__ == "__main__":
    N, Cin, H, W = 2, 4, 16, 16
    Cout = 8

    key = jax.random.PRNGKey(0)
    kx, kp = jax.random.split(key)
    x = jax.random.normal(kx, (N, Cin, H, W), jnp.float32)   # NCHW like PyTorch
    params = init_params(kp, Cin, Cout)

    out = cnn_block_forward(x, params)
    jax.block_until_ready(out)

    assert out.shape == (N, Cout, H, W), out.shape
    assert out.dtype == jnp.float32
    print("KERNEL_OK")
</pallas_src>

<mosaic_0001>
module attributes {stable_mosaic.version = 11 : i64} {
  func.func @conv_stats_kernel(%arg0: i32, %arg1: memref<1x16x16x128xf32, #tpu.memory_space<vmem>>, %arg2: memref<1152x128xbf16, #tpu.memory_space<vmem>>, %arg3: memref<1x128xf32, #tpu.memory_space<vmem>>, %arg4: memref<1x128xf32, #tpu.memory_space<vmem>>, %arg5: memref<1x16x16x128xf32, #tpu.memory_space<vmem>>, %arg6: memref<1x2x128xf32, #tpu.memory_space<vmem>>, %arg7: memref<18x18x128xf32, #tpu.memory_space<vmem>>) attributes {dimension_semantics = [#tpu.dimension_semantics<parallel>], iteration_bounds = array<i64: 2>, scalar_prefetch = 0 : i64, scratch_operands = 1 : i64, tpu.core_type = #tpu.core_type<tc>, window_params = [{transform_indices = @transform_0, window_bounds = array<i64: 1, 16, 16, 128>}, {pipeline_mode = #tpu.pipeline_mode<synchronous>, transform_indices = @transform_1, window_bounds = array<i64: 1152, 128>}, {pipeline_mode = #tpu.pipeline_mode<synchronous>, transform_indices = @transform_2, window_bounds = array<i64: 1, 128>}, {pipeline_mode = #tpu.pipeline_mode<synchronous>, transform_indices = @transform_3, window_bounds = array<i64: 1, 128>}, {transform_indices = @transform_4, window_bounds = array<i64: 1, 16, 16, 128>}, {transform_indices = @transform_5, window_bounds = array<i64: 1, 2, 128>}]} {
    %c0 = arith.constant 0 : index
    %c0_0 = arith.constant 0 : index
    %c0_1 = arith.constant 0 : index
    %c0_2 = arith.constant 0 : index
    %0 = vector.load %arg1[%c0, %c0_0, %c0_1, %c0_2] : memref<1x16x16x128xf32, #tpu.memory_space<vmem>>, vector<1x16x16x128xf32>
    %1 = vector.shape_cast %0 : vector<1x16x16x128xf32> to vector<16x16x128xf32>
    %cst = arith.constant 0.000000e+00 : f32
    %2 = vector.broadcast %cst : f32 to vector<18x18x128xf32>
    %c0_3 = arith.constant 0 : index
    %c0_4 = arith.constant 0 : index
    %c0_5 = arith.constant 0 : index
    %3 = vector.load %arg7[%c0_3, %c0_4, %c0_5] : memref<18x18x128xf32, #tpu.memory_space<vmem>>, vector<18x18x128xf32>
    tpu.vector_store %arg7[%c0_3, %c0_4, %c0_5], %2 {strides = array<i32>} : memref<18x18x128xf32, #tpu.memory_space<vmem>>, vector<18x18x128xf32>,
    %c1 = arith.constant 1 : index
    %c1_6 = arith.constant 1 : index
    %c0_7 = arith.constant 0 : index
    %4 = vector.load %arg7[%c1, %c1_6, %c0_7] : memref<18x18x128xf32, #tpu.memory_space<vmem>>, vector<16x16x128xf32>
    tpu.vector_store %arg7[%c1, %c1_6, %c0_7], %1 {strides = array<i32>} : memref<18x18x128xf32, #tpu.memory_space<vmem>>, vector<16x16x128xf32>,
    %c0_8 = arith.constant 0 : index
    %c0_9 = arith.constant 0 : index
    %c0_10 = arith.constant 0 : index
    %5 = vector.load %arg7[%c0_8, %c0_9, %c0_10] : memref<18x18x128xf32, #tpu.memory_space<vmem>>, vector<16x16x128xf32>
    %6 = vector.shape_cast %5 : vector<16x16x128xf32> to vector<256x128xf32>
    %7 = arith.truncf %6 : vector<256x128xf32> to vector<256x128xbf16>
    %c0_11 = arith.constant 0 : index
    %c1_12 = arith.constant 1 : index
    %c0_13 = arith.constant 0 : index
    %8 = vector.load %arg7[%c0_11, %c1_12, %c0_13] : memref<18x18x128xf32, #tpu.memory_space<vmem>>, vector<16x16x128xf32>
    %9 = vector.shape_cast %8 : vector<16x16x128xf32> to vector<256x128xf32>
    %10 = arith.truncf %9 : vector<256x128xf32> to vector<256x128xbf16>
    %c0_14 = arith.constant 0 : index
    %c2 = arith.constant 2 : index
    %c0_15 = arith.constant 0 : index
    %11 = vector.load %arg7[%c0_14, %c2, %c0_15] : memref<18x18x128xf32, #tpu.memory_space<vmem>>, vector<16x16x128xf32>
    %12 = vector.shape_cast %11 : vector<16x16x128xf32> to vector<256x128xf32>
    %13 = arith.truncf %12 : vector<256x128xf32> to vector<256x128xbf16>
    %c1_16 = arith.constant 1 : index
    %c0_17 = arith.constant 0 : index
    %c0_18 = arith.constant 0 : index
    %14 = vector.load %arg7[%c1_16, %c0_17, %c0_18] : memref<18x18x128xf32, #tpu.memory_space<vmem>>, vector<16x16x128xf32>
    %15 = vector.shape_cast %14 : vector<16x16x128xf32> to vector<256x128xf32>
    %16 = arith.truncf %15 : vector<256x128xf32> to vector<256x128xbf16>
    %c1_19 = arith.constant 1 : index
    %c1_20 = arith.constant 1 : index
    %c0_21 = arith.constant 0 : index
    %17 = vector.load %arg7[%c1_19, %c1_20, %c0_21] : memref<18x18x128xf32, #tpu.memory_space<vmem>>, vector<16x16x128xf32>
    %18 = vector.shape_cast %17 : vector<16x16x128xf32> to vector<256x128xf32>
    %19 = arith.truncf %18 : vector<256x128xf32> to vector<256x128xbf16>
    %c1_22 = arith.constant 1 : index
    %c2_23 = arith.constant 2 : index
    %c0_24 = arith.constant 0 : index
    %20 = vector.load %arg7[%c1_22, %c2_23, %c0_24] : memref<18x18x128xf32, #tpu.memory_space<vmem>>, vector<16x16x128xf32>
    %21 = vector.shape_cast %20 : vector<16x16x128xf32> to vector<256x128xf32>
    %22 = arith.truncf %21 : vector<256x128xf32> to vector<256x128xbf16>
    %c2_25 = arith.constant 2 : index
    %c0_26 = arith.constant 0 : index
    %c0_27 = arith.constant 0 : index
    %23 = vector.load %arg7[%c2_25, %c0_26, %c0_27] : memref<18x18x128xf32, #tpu.memory_space<vmem>>, vector<16x16x128xf32>
    %24 = vector.shape_cast %23 : vector<16x16x128xf32> to vector<256x128xf32>
    %25 = arith.truncf %24 : vector<256x128xf32> to vector<256x128xbf16>
    %c2_28 = arith.constant 2 : index
    %c1_29 = arith.constant 1 : index
    %c0_30 = arith.constant 0 : index
    %26 = vector.load %arg7[%c2_28, %c1_29, %c0_30] : memref<18x18x128xf32, #tpu.memory_space<vmem>>, vector<16x16x128xf32>
    %27 = vector.shape_cast %26 : vector<16x16x128xf32> to vector<256x128xf32>
    %28 = arith.truncf %27 : vector<256x128xf32> to vector<256x128xbf16>
    %c2_31 = arith.constant 2 : index
    %c2_32 = arith.constant 2 : index
    %c0_33 = arith.constant 0 : index
    %29 = vector.load %arg7[%c2_31, %c2_32, %c0_33] : memref<18x18x128xf32, #tpu.memory_space<vmem>>, vector<16x16x128xf32>
    %30 = vector.shape_cast %29 : vector<16x16x128xf32> to vector<256x128xf32>
    %31 = arith.truncf %30 : vector<256x128xf32> to vector<256x128xbf16>
    %32 = tpu.concatenate %7, %10, %13, %16, %19, %22, %25, %28, %31 in 1 : vector<256x128xbf16>, vector<256x128xbf16>, vector<256x128xbf16>, vector<256x128xbf16>, vector<256x128xbf16>, vector<256x128xbf16>, vector<256x128xbf16>, vector<256x128xbf16>, vector<256x128xbf16> -> vector<256x1152xbf16>
    %c0_34 = arith.constant 0 : index
    %c0_35 = arith.constant 0 : index
    %33 = vector.load %arg2[%c0_34, %c0_35] : memref<1152x128xbf16, #tpu.memory_space<vmem>>, vector<1152x128xbf16>
    %cst_36 = arith.constant dense<0.000000e+00> : vector<256x128xf32>
    %34 = tpu.matmul %32, %33, %cst_36 {dimension_numbers = #tpu.dot_dimension_numbers<[1], [0], [0], [1], [0, 0, 1, 1], [], []>} : vector<256x1152xbf16>, vector<1152x128xbf16>, vector<256x128xf32> -> vector<256x128xf32>
    %cst_37 = arith.constant dense<0.000000e+00> : vector<128xf32>
    %35 = vector.multi_reduction <add>, %34, %cst_37 [0] : vector<256x128xf32> to vector<128xf32>
    %36 = vector.shape_cast %35 : vector<128xf32> to vector<1x128xf32>
    %c0_38 = arith.constant 0 : index
    %c0_39 = arith.constant 0 : index
    %c0_40 = arith.constant 0 : index
    %37 = vector.load %arg6[%c0_38, %c0_39, %c0_40] : memref<1x2x128xf32, #tpu.memory_space<vmem>>, vector<1x1x128xf32>
    %38 = vector.shape_cast %37 : vector<1x1x128xf32> to vector<1x128xf32>
    %39 = vector.shape_cast %36 : vector<1x128xf32> to vector<1x1x128xf32>
    tpu.vector_store %arg6[%c0_38, %c0_39, %c0_40], %39 {strides = array<i32>} : memref<1x2x128xf32, #tpu.memory_space<vmem>>, vector<1x1x128xf32>,
    %40 = arith.mulf %34, %34 : vector<256x128xf32>
    %cst_41 = arith.constant dense<0.000000e+00> : vector<128xf32>
    %41 = vector.multi_reduction <add>, %40, %cst_41 [0] : vector<256x128xf32> to vector<128xf32>
    %42 = vector.shape_cast %41 : vector<128xf32> to vector<1x128xf32>
    %c0_42 = arith.constant 0 : index
    %c1_43 = arith.constant 1 : index
    %c0_44 = arith.constant 0 : index
    %43 = vector.load %arg6[%c0_42, %c1_43, %c0_44] : memref<1x2x128xf32, #tpu.memory_space<vmem>>, vector<1x1x128xf32>
    %44 = vector.shape_cast %43 : vector<1x1x128xf32> to vector<1x128xf32>
    %45 = vector.shape_cast %42 : vector<1x128xf32> to vector<1x1x128xf32>
    tpu.vector_store %arg6[%c0_42, %c1_43, %c0_44], %45 {strides = array<i32>} : memref<1x2x128xf32, #tpu.memory_space<vmem>>, vector<1x1x128xf32>,
    %46 = vector.shape_cast %34 : vector<256x128xf32> to vector<16x16x128xf32>
    %c0_45 = arith.constant 0 : index
    %c0_46 = arith.constant 0 : index
    %c0_47 = arith.constant 0 : index
    %c0_48 = arith.constant 0 : index
    %47 = vector.load %arg5[%c0_45, %c0_46, %c0_47, %c0_48] : memref<1x16x16x128xf32, #tpu.memory_space<vmem>>, vector<1x16x16x128xf32>
    %48 = vector.shape_cast %47 : vector<1x16x16x128xf32> to vector<16x16x128xf32>
    %49 = vector.shape_cast %46 : vector<16x16x128xf32> to vector<1x16x16x128xf32>
    tpu.vector_store %arg5[%c0_45, %c0_46, %c0_47, %c0_48], %49 {strides = array<i32>} : memref<1x16x16x128xf32, #tpu.memory_space<vmem>>, vector<1x16x16x128xf32>,
    return
  }
  func.func @transform_0(%arg0: i32) -> (i32, i32, i32, i32) {
    %c0_i32 = arith.constant 0 : i32
    %c0_i32_0 = arith.constant 0 : i32
    %c0_i32_1 = arith.constant 0 : i32
    %c0_i32_2 = arith.constant 0 : i32
    return %arg0, %c0_i32, %c0_i32_0, %c0_i32_1 : i32, i32, i32, i32
  }
  func.func @transform_1(%arg0: i32) -> (i32, i32) {
    %c0_i32 = arith.constant 0 : i32
    %c0_i32_0 = arith.constant 0 : i32
    %c0_i32_1 = arith.constant 0 : i32
    return %c0_i32, %c0_i32_0 : i32, i32
  }
  func.func @transform_2(%arg0: i32) -> (i32, i32) {
    %c0_i32 = arith.constant 0 : i32
    %c0_i32_0 = arith.constant 0 : i32
    %c0_i32_1 = arith.constant 0 : i32
    return %c0_i32, %c0_i32_0 : i32, i32
  }
  func.func @transform_3(%arg0: i32) -> (i32, i32) {
    %c0_i32 = arith.constant 0 : i32
    %c0_i32_0 = arith.constant 0 : i32
    %c0_i32_1 = arith.constant 0 : i32
    return %c0_i32, %c0_i32_0 : i32, i32
  }
  func.func @transform_4(%arg0: i32) -> (i32, i32, i32, i32) {
    %c0_i32 = arith.constant 0 : i32
    %c0_i32_0 = arith.constant 0 : i32
    %c0_i32_1 = arith.constant 0 : i32
    %c0_i32_2 = arith.constant 0 : i32
    return %arg0, %c0_i32, %c0_i32_0, %c0_i32_1 : i32, i32, i32, i32
  }
  func.func @transform_5(%arg0: i32) -> (i32, i32, i32) {
    %c0_i32 = arith.constant 0 : i32
    %c0_i32_0 = arith.constant 0 : i32
    %c0_i32_1 = arith.constant 0 : i32
    return %arg0, %c0_i32, %c0_i32_0 : i32, i32, i32
  }
}

module attributes {stable_mosaic.version = 11 : i64} {
  func.func @bn_relu_kernel(%arg0: i32, %arg1: memref<1x16x16x128xf32, #tpu.memory_space<vmem>>, %arg2: memref<1x128xf32, #tpu.memory_space<vmem>>, %arg3: memref<1x128xf32, #tpu.memory_space<vmem>>, %arg4: memref<1x16x16x128xf32, #tpu.memory_space<vmem>>) attributes {dimension_semantics = [#tpu.dimension_semantics<parallel>], iteration_bounds = array<i64: 2>, scalar_prefetch = 0 : i64, scratch_operands = 0 : i64, tpu.core_type = #tpu.core_type<tc>, window_params = [{transform_indices = @transform_0, window_bounds = array<i64: 1, 16, 16, 128>}, {pipeline_mode = #tpu.pipeline_mode<synchronous>, transform_indices = @transform_1, window_bounds = array<i64: 1, 128>}, {pipeline_mode = #tpu.pipeline_mode<synchronous>, transform_indices = @transform_2, window_bounds = array<i64: 1, 128>}, {transform_indices = @transform_3, window_bounds = array<i64: 1, 16, 16, 128>}]} {
    %c0 = arith.constant 0 : index
    %c0_0 = arith.constant 0 : index
    %c0_1 = arith.constant 0 : index
    %c0_2 = arith.constant 0 : index
    %0 = vector.load %arg1[%c0, %c0_0, %c0_1, %c0_2] : memref<1x16x16x128xf32, #tpu.memory_space<vmem>>, vector<1x16x16x128xf32>
    %1 = vector.shape_cast %0 : vector<1x16x16x128xf32> to vector<16x16x128xf32>
    %c0_3 = arith.constant 0 : index
    %c0_4 = arith.constant 0 : index
    %2 = vector.load %arg2[%c0_3, %c0_4] : memref<1x128xf32, #tpu.memory_space<vmem>>, vector<1x128xf32>
    %3 = vector.shape_cast %2 : vector<1x128xf32> to vector<1x1x128xf32>
    %4 = vector.broadcast %3 : vector<1x1x128xf32> to vector<16x16x128xf32>
    %5 = arith.mulf %1, %4 : vector<16x16x128xf32>
    %c0_5 = arith.constant 0 : index
    %c0_6 = arith.constant 0 : index
    %6 = vector.load %arg3[%c0_5, %c0_6] : memref<1x128xf32, #tpu.memory_space<vmem>>, vector<1x128xf32>
    %7 = vector.shape_cast %6 : vector<1x128xf32> to vector<1x1x128xf32>
    %8 = vector.broadcast %7 : vector<1x1x128xf32> to vector<16x16x128xf32>
    %9 = arith.addf %5, %8 : vector<16x16x128xf32>
    %cst = arith.constant 0.000000e+00 : f32
    %10 = vector.broadcast %cst : f32 to vector<16x16x128xf32>
    %11 = arith.maximumf %9, %10 : vector<16x16x128xf32>
    %c0_7 = arith.constant 0 : index
    %c0_8 = arith.constant 0 : index
    %c0_9 = arith.constant 0 : index
    %c0_10 = arith.constant 0 : index
    %12 = vector.load %arg4[%c0_7, %c0_8, %c0_9, %c0_10] : memref<1x16x16x128xf32, #tpu.memory_space<vmem>>, vector<1x16x16x128xf32>
    %13 = vector.shape_cast %12 : vector<1x16x16x128xf32> to vector<16x16x128xf32>
    %14 = vector.shape_cast %11 : vector<16x16x128xf32> to vector<1x16x16x128xf32>
    tpu.vector_store %arg4[%c0_7, %c0_8, %c0_9, %c0_10], %14 {strides = array<i32>} : memref<1x16x16x128xf32, #tpu.memory_space<vmem>>, vector<1x16x16x128xf32>,
    return
  }
  func.func @transform_0(%arg0: i32) -> (i32, i32, i32, i32) {
    %c0_i32 = arith.constant 0 : i32
    %c0_i32_0 = arith.constant 0 : i32
    %c0_i32_1 = arith.constant 0 : i32
    %c0_i32_2 = arith.constant 0 : i32
    return %arg0, %c0_i32, %c0_i32_0, %c0_i32_1 : i32, i32, i32, i32
  }
  func.func @transform_1(%arg0: i32) -> (i32, i32) {
    %c0_i32 = arith.constant 0 : i32
    %c0_i32_0 = arith.constant 0 : i32
    %c0_i32_1 = arith.constant 0 : i32
    return %c0_i32, %c0_i32_0 : i32, i32
  }
  func.func @transform_2(%arg0: i32) -> (i32, i32) {
    %c0_i32 = arith.constant 0 : i32
    %c0_i32_0 = arith.constant 0 : i32
    %c0_i32_1 = arith.constant 0 : i32
    return %c0_i32, %c0_i32_0 : i32, i32
  }
  func.func @transform_3(%arg0: i32) -> (i32, i32, i32, i32) {
    %c0_i32 = arith.constant 0 : i32
    %c0_i32_0 = arith.constant 0 : i32
    %c0_i32_1 = arith.constant 0 : i32
    %c0_i32_2 = arith.constant 0 : i32
    return %arg0, %c0_i32, %c0_i32_0, %c0_i32_1 : i32, i32, i32, i32
  }
}

module attributes {stable_mosaic.version = 11 : i64} {
  func.func @conv_stats_kernel(%arg0: i32, %arg1: memref<1x16x16x128xf32, #tpu.memory_space<vmem>>, %arg2: memref<1152x128xbf16, #tpu.memory_space<vmem>>, %arg3: memref<1x128xf32, #tpu.memory_space<vmem>>, %arg4: memref<1x128xf32, #tpu.memory_space<vmem>>, %arg5: memref<1x16x16x128xf32, #tpu.memory_space<vmem>>, %arg6: memref<1x2x128xf32, #tpu.memory_space<vmem>>, %arg7: memref<18x18x128xf32, #tpu.memory_space<vmem>>) attributes {dimension_semantics = [#tpu.dimension_semantics<parallel>], iteration_bounds = array<i64: 2>, scalar_prefetch = 0 : i64, scratch_operands = 1 : i64, tpu.core_type = #tpu.core_type<tc>, window_params = [{transform_indices = @transform_0, window_bounds = array<i64: 1, 16, 16, 128>}, {pipeline_mode = #tpu.pipeline_mode<synchronous>, transform_indices = @transform_1, window_bounds = array<i64: 1152, 128>}, {pipeline_mode = #tpu.pipeline_mode<synchronous>, transform_indices = @transform_2, window_bounds = array<i64: 1, 128>}, {pipeline_mode = #tpu.pipeline_mode<synchronous>, transform_indices = @transform_3, window_bounds = array<i64: 1, 128>}, {transform_indices = @transform_4, window_bounds = array<i64: 1, 16, 16, 128>}, {transform_indices = @transform_5, window_bounds = array<i64: 1, 2, 128>}]} {
    %c0 = arith.constant 0 : index
    %c0_0 = arith.constant 0 : index
    %c0_1 = arith.constant 0 : index
    %c0_2 = arith.constant 0 : index
    %0 = vector.load %arg1[%c0, %c0_0, %c0_1, %c0_2] : memref<1x16x16x128xf32, #tpu.memory_space<vmem>>, vector<1x16x16x128xf32>
    %1 = vector.shape_cast %0 : vector<1x16x16x128xf32> to vector<16x16x128xf32>
    %c0_3 = arith.constant 0 : index
    %c0_4 = arith.constant 0 : index
    %2 = vector.load %arg3[%c0_3, %c0_4] : memref<1x128xf32, #tpu.memory_space<vmem>>, vector<1x128xf32>
    %3 = vector.shape_cast %2 : vector<1x128xf32> to vector<1x1x128xf32>
    %4 = vector.broadcast %3 : vector<1x1x128xf32> to vector<16x16x128xf32>
    %5 = arith.mulf %1, %4 : vector<16x16x128xf32>
    %c0_5 = arith.constant 0 : index
    %c0_6 = arith.constant 0 : index
    %6 = vector.load %arg4[%c0_5, %c0_6] : memref<1x128xf32, #tpu.memory_space<vmem>>, vector<1x128xf32>
    %7 = vector.shape_cast %6 : vector<1x128xf32> to vector<1x1x128xf32>
    %8 = vector.broadcast %7 : vector<1x1x128xf32> to vector<16x16x128xf32>
    %9 = arith.addf %5, %8 : vector<16x16x128xf32>
    %cst = arith.constant 0.000000e+00 : f32
    %10 = vector.broadcast %cst : f32 to vector<16x16x128xf32>
    %11 = arith.maximumf %9, %10 : vector<16x16x128xf32>
    %cst_7 = arith.constant 0.000000e+00 : f32
    %12 = vector.broadcast %cst_7 : f32 to vector<18x18x128xf32>
    %c0_8 = arith.constant 0 : index
    %c0_9 = arith.constant 0 : index
    %c0_10 = arith.constant 0 : index
    %13 = vector.load %arg7[%c0_8, %c0_9, %c0_10] : memref<18x18x128xf32, #tpu.memory_space<vmem>>, vector<18x18x128xf32>
    tpu.vector_store %arg7[%c0_8, %c0_9, %c0_10], %12 {strides = array<i32>} : memref<18x18x128xf32, #tpu.memory_space<vmem>>, vector<18x18x128xf32>,
    %c1 = arith.constant 1 : index
    %c1_11 = arith.constant 1 : index
    %c0_12 = arith.constant 0 : index
    %14 = vector.load %arg7[%c1, %c1_11, %c0_12] : memref<18x18x128xf32, #tpu.memory_space<vmem>>, vector<16x16x128xf32>
    tpu.vector_store %arg7[%c1, %c1_11, %c0_12], %11 {strides = array<i32>} : memref<18x18x128xf32, #tpu.memory_space<vmem>>, vector<16x16x128xf32>,
    %c0_13 = arith.constant 0 : index
    %c0_14 = arith.constant 0 : index
    %c0_15 = arith.constant 0 : index
    %15 = vector.load %arg7[%c0_13, %c0_14, %c0_15] : memref<18x18x128xf32, #tpu.memory_space<vmem>>, vector<16x16x128xf32>
    %16 = vector.shape_cast %15 : vector<16x16x128xf32> to vector<256x128xf32>
    %17 = arith.truncf %16 : vector<256x128xf32> to vector<256x128xbf16>
    %c0_16 = arith.constant 0 : index
    %c1_17 = arith.constant 1 : index
    %c0_18 = arith.constant 0 : index
    %18 = vector.load %arg7[%c0_16, %c1_17, %c0_18] : memref<18x18x128xf32, #tpu.memory_space<vmem>>, vector<16x16x128xf32>
    %19 = vector.shape_cast %18 : vector<16x16x128xf32> to vector<256x128xf32>
    %20 = arith.truncf %19 : vector<256x128xf32> to vector<256x128xbf16>
    %c0_19 = arith.constant 0 : index
    %c2 = arith.constant 2 : index
    %c0_20 = arith.constant 0 : index
    %21 = vector.load %arg7[%c0_19, %c2, %c0_20] : memref<18x18x128xf32, #tpu.memory_space<vmem>>, vector<16x16x128xf32>
    %22 = vector.shape_cast %21 : vector<16x16x128xf32> to vector<256x128xf32>
    %23 = arith.truncf %22 : vector<256x128xf32> to vector<256x128xbf16>
    %c1_21 = arith.constant 1 : index
    %c0_22 = arith.constant 0 : index
    %c0_23 = arith.constant 0 : index
    %24 = vector.load %arg7[%c1_21, %c0_22, %c0_23] : memref<18x18x128xf32, #tpu.memory_space<vmem>>, vector<16x16x128xf32>
    %25 = vector.shape_cast %24 : vector<16x16x128xf32> to vector<256x128xf32>
    %26 = arith.truncf %25 : vector<256x128xf32> to vector<256x128xbf16>
    %c1_24 = arith.constant 1 : index
    %c1_25 = arith.constant 1 : index
    %c0_26 = arith.constant 0 : index
    %27 = vector.load %arg7[%c1_24, %c1_25, %c0_26] : memref<18x18x128xf32, #tpu.memory_space<vmem>>, vector<16x16x128xf32>
    %28 = vector.shape_cast %27 : vector<16x16x128xf32> to vector<256x128xf32>
    %29 = arith.truncf %28 : vector<256x128xf32> to vector<256x128xbf16>
    %c1_27 = arith.constant 1 : index
    %c2_28 = arith.constant 2 : index
    %c0_29 = arith.constant 0 : index
    %30 = vector.load %arg7[%c1_27, %c2_28, %c0_29] : memref<18x18x128xf32, #tpu.memory_space<vmem>>, vector<16x16x128xf32>
    %31 = vector.shape_cast %30 : vector<16x16x128xf32> to vector<256x128xf32>
    %32 = arith.truncf %31 : vector<256x128xf32> to vector<256x128xbf16>
    %c2_30 = arith.constant 2 : index
    %c0_31 = arith.constant 0 : index
    %c0_32 = arith.constant 0 : index
    %33 = vector.load %arg7[%c2_30, %c0_31, %c0_32] : memref<18x18x128xf32, #tpu.memory_space<vmem>>, vector<16x16x128xf32>
    %34 = vector.shape_cast %33 : vector<16x16x128xf32> to vector<256x128xf32>
    %35 = arith.truncf %34 : vector<256x128xf32> to vector<256x128xbf16>
    %c2_33 = arith.constant 2 : index
    %c1_34 = arith.constant 1 : index
    %c0_35 = arith.constant 0 : index
    %36 = vector.load %arg7[%c2_33, %c1_34, %c0_35] : memref<18x18x128xf32, #tpu.memory_space<vmem>>, vector<16x16x128xf32>
    %37 = vector.shape_cast %36 : vector<16x16x128xf32> to vector<256x128xf32>
    %38 = arith.truncf %37 : vector<256x128xf32> to vector<256x128xbf16>
    %c2_36 = arith.constant 2 : index
    %c2_37 = arith.constant 2 : index
    %c0_38 = arith.constant 0 : index
    %39 = vector.load %arg7[%c2_36, %c2_37, %c0_38] : memref<18x18x128xf32, #tpu.memory_space<vmem>>, vector<16x16x128xf32>
    %40 = vector.shape_cast %39 : vector<16x16x128xf32> to vector<256x128xf32>
    %41 = arith.truncf %40 : vector<256x128xf32> to vector<256x128xbf16>
    %42 = tpu.concatenate %17, %20, %23, %26, %29, %32, %35, %38, %41 in 1 : vector<256x128xbf16>, vector<256x128xbf16>, vector<256x128xbf16>, vector<256x128xbf16>, vector<256x128xbf16>, vector<256x128xbf16>, vector<256x128xbf16>, vector<256x128xbf16>, vector<256x128xbf16> -> vector<256x1152xbf16>
    %c0_39 = arith.constant 0 : index
    %c0_40 = arith.constant 0 : index
    %43 = vector.load %arg2[%c0_39, %c0_40] : memref<1152x128xbf16, #tpu.memory_space<vmem>>, vector<1152x128xbf16>
    %cst_41 = arith.constant dense<0.000000e+00> : vector<256x128xf32>
    %44 = tpu.matmul %42, %43, %cst_41 {dimension_numbers = #tpu.dot_dimension_numbers<[1], [0], [0], [1], [0, 0, 1, 1], [], []>} : vector<256x1152xbf16>, vector<1152x128xbf16>, vector<256x128xf32> -> vector<256x128xf32>
    %cst_42 = arith.constant dense<0.000000e+00> : vector<128xf32>
    %45 = vector.multi_reduction <add>, %44, %cst_42 [0] : vector<256x128xf32> to vector<128xf32>
    %46 = vector.shape_cast %45 : vector<128xf32> to vector<1x128xf32>
    %c0_43 = arith.constant 0 : index
    %c0_44 = arith.constant 0 : index
    %c0_45 = arith.constant 0 : index
    %47 = vector.load %arg6[%c0_43, %c0_44, %c0_45] : memref<1x2x128xf32, #tpu.memory_space<vmem>>, vector<1x1x128xf32>
    %48 = vector.shape_cast %47 : vector<1x1x128xf32> to vector<1x128xf32>
    %49 = vector.shape_cast %46 : vector<1x128xf32> to vector<1x1x128xf32>
    tpu.vector_store %arg6[%c0_43, %c0_44, %c0_45], %49 {strides = array<i32>} : memref<1x2x128xf32, #tpu.memory_space<vmem>>, vector<1x1x128xf32>,
    %50 = arith.mulf %44, %44 : vector<256x128xf32>
    %cst_46 = arith.constant dense<0.000000e+00> : vector<128xf32>
    %51 = vector.multi_reduction <add>, %50, %cst_46 [0] : vector<256x128xf32> to vector<128xf32>
    %52 = vector.shape_cast %51 : vector<128xf32> to vector<1x128xf32>
    %c0_47 = arith.constant 0 : index
    %c1_48 = arith.constant 1 : index
    %c0_49 = arith.constant 0 : index
    %53 = vector.load %arg6[%c0_47, %c1_48, %c0_49] : memref<1x2x128xf32, #tpu.memory_space<vmem>>, vector<1x1x128xf32>
    %54 = vector.shape_cast %53 : vector<1x1x128xf32> to vector<1x128xf32>
    %55 = vector.shape_cast %52 : vector<1x128xf32> to vector<1x1x128xf32>
    tpu.vector_store %arg6[%c0_47, %c1_48, %c0_49], %55 {strides = array<i32>} : memref<1x2x128xf32, #tpu.memory_space<vmem>>, vector<1x1x128xf32>,
    %56 = vector.shape_cast %44 : vector<256x128xf32> to vector<16x16x128xf32>
    %c0_50 = arith.constant 0 : index
    %c0_51 = arith.constant 0 : index
    %c0_52 = arith.constant 0 : index
    %c0_53 = arith.constant 0 : index
    %57 = vector.load %arg5[%c0_50, %c0_51, %c0_52, %c0_53] : memref<1x16x16x128xf32, #tpu.memory_space<vmem>>, vector<1x16x16x128xf32>
    %58 = vector.shape_cast %57 : vector<1x16x16x128xf32> to vector<16x16x128xf32>
    %59 = vector.shape_cast %56 : vector<16x16x128xf32> to vector<1x16x16x128xf32>
    tpu.vector_store %arg5[%c0_50, %c0_51, %c0_52, %c0_53], %59 {strides = array<i32>} : memref<1x16x16x128xf32, #tpu.memory_space<vmem>>, vector<1x16x16x128xf32>,
    return
  }
  func.func @transform_0(%arg0: i32) -> (i32, i32, i32, i32) {
    %c0_i32 = arith.constant 0 : i32
    %c0_i32_0 = arith.constant 0 : i32
    %c0_i32_1 = arith.constant 0 : i32
    %c0_i32_2 = arith.constant 0 : i32
    return %arg0, %c0_i32, %c0_i32_0, %c0_i32_1 : i32, i32, i32, i32
  }
  func.func @transform_1(%arg0: i32) -> (i32, i32) {
    %c0_i32 = arith.constant 0 : i32
    %c0_i32_0 = arith.constant 0 : i32
    %c0_i32_1 = arith.constant 0 : i32
    return %c0_i32, %c0_i32_0 : i32, i32
  }
  func.func @transform_2(%arg0: i32) -> (i32, i32) {
    %c0_i32 = arith.constant 0 : i32
    %c0_i32_0 = arith.constant 0 : i32
    %c0_i32_1 = arith.constant 0 : i32
    return %c0_i32, %c0_i32_0 : i32, i32
  }
  func.func @transform_3(%arg0: i32) -> (i32, i32) {
    %c0_i32 = arith.constant 0 : i32
    %c0_i32_0 = arith.constant 0 : i32
    %c0_i32_1 = arith.constant 0 : i32
    return %c0_i32, %c0_i32_0 : i32, i32
  }
  func.func @transform_4(%arg0: i32) -> (i32, i32, i32, i32) {
    %c0_i32 = arith.constant 0 : i32
    %c0_i32_0 = arith.constant 0 : i32
    %c0_i32_1 = arith.constant 0 : i32
    %c0_i32_2 = arith.constant 0 : i32
    return %arg0, %c0_i32, %c0_i32_0, %c0_i32_1 : i32, i32, i32, i32
  }
  func.func @transform_5(%arg0: i32) -> (i32, i32, i32) {
    %c0_i32 = arith.constant 0 : i32
    %c0_i32_0 = arith.constant 0 : i32
    %c0_i32_1 = arith.constant 0 : i32
    return %arg0, %c0_i32, %c0_i32_0 : i32, i32, i32
  }
}

</mosaic_0001>

<bundles_post_ra>
// kernel: cnn_block_forward.5
= control target key start
LH: loop header
LB: loop body
LE: loop exit
PB: predicated region body
PF: predicated region fallthrough
CT: control target
= control target key end

     0   :  { %s451_s12 = smov 0   ;;  %s610_s0 = inlined_call_operand.vmem [shape: f32[2,16,16,128], index: 0, kind: input, shape index: {}]   ;;  %s611_s1 = inlined_call_operand.vmem [shape: f32[1,128], index: 1, kind: input, shape index: {}]   ;;  %s612_s2 = inlined_call_operand.vmem [shape: f32[1,128], index: 2, kind: input, shape index: {}]   ;;  %s613_s3 = inlined_call_operand.vmem [shape: f32[2,16,16,128], index: 3, kind: output, shape index: {}]  }
   0x1 LB: > { %s400_s13 = sadd.s32 4294967295, %s429_s12   ;;  %p404_p0 = scmp.ge.s32.totalorder %s429_s12, 1  ;;  %s429_s12 = sphi %s451_s12, %s13_s12  }
   0x2   : > { %p137_p1 = scmp.lt.s32.totalorder %s429_s12, 3 }
   0x4   : > { %p138_p2 = pnand %p404_p0, %p137_p1 }
   0x5   : > { %p161_p3 = scmp.lt.s32.totalorder (!%p138_p2), %s400_s13, 1 }
   0x6   : > { %141 = sbr.rel (%p138_p2) target bundleno = 44 (0x2c), region = 32 }
   0xb   : > { %s615_s13 = smov (!%p161_p3, %s400_s13), 1  ;;  %v462_v0 = vld [vmem:[%s611_s1] ss:$0 sm:$0xff] }
   0xc   : > { %s413_s14 = sshll.u32 %s615_s13, 8  ;;  %v472_v1 = vld [vmem:[%s612_s2] ss:$0 sm:$0xff] }
   0xd   : > { %s467_s19 = scalar_lea.vmem %s610_s0, %s413_s14  ;;  %s495_s24 = scalar_lea.vmem %s613_s3, %s413_s14 }
   0xe   : > { %v171_v2 = vld [vmem:[%s467_s19] sm:$0xff]  ;;  %v172_v3 = vld [vmem:[%s467_s19 + $0x8] sm:$0xff]  ;;  %v173_v4 = vld [vmem:[%s467_s19 + $0x10] sm:$0xff] }
   0xf   : > { %v210_v5 = vmul.f32 %v462_v0, %v171_v2  ;;  %v211_v6 = vmul.f32 %v462_v0, %v172_v3  ;;  %v212_v7 = vmul.f32 %v462_v0, %v173_v4  ;;  %v174_v8 = vld [vmem:[%s467_s19 + $0x18] sm:$0xff]  ;;  %v175_v9 = vld [vmem:[%s467_s19 + $0x20] sm:$0xff]  ;;  %v176_v10 = vld [vmem:[%s467_s19 + $0x28] sm:$0xff] }
  0x10   : > { %v213_v11 = vmul.f32 %v462_v0, %v174_v8  ;;  %v214_v12 = vmul.f32 %v462_v0, %v175_v9  ;;  %v215_v13 = vmul.f32 %v462_v0, %v176_v10  ;;  %v177_v14 = vld [vmem:[%s467_s19 + $0x30] sm:$0xff]  ;;  %v178_v15 = vld [vmem:[%s467_s19 + $0x38] sm:$0xff]  ;;  %v179_v24 = vld [vmem:[%s467_s19 + $0x40] sm:$0xff] }
  0x11   : > { %v249_v16 = vadd.f32 %v472_v1, %v210_v5  ;;  %v250_v17 = vadd.f32 %v472_v1, %v211_v6  ;;  %v251_v18 = vadd.f32 %v472_v1, %v212_v7  ;;  %v216_v19 = vmul.f32 %v462_v0, %v177_v14  ;;  %v180_v25 = vld [vmem:[%s467_s19 + $0x48] sm:$0xff]  ;;  %v181_v26 = vld [vmem:[%s467_s19 + $0x50] sm:$0xff]  ;;  %v182_v31 = vld [vmem:[%s467_s19 + $0x58] sm:$0xff] }
  0x12   : > { %v252_v20 = vadd.f32 %v472_v1, %v213_v11  ;;  %v253_v21 = vadd.f32 %v472_v1, %v214_v12  ;;  %v254_v22 = vadd.f32 %v472_v1, %v215_v13  ;;  %v217_v23 = vmul.f32 %v462_v0, %v178_v15  ;;  %v183_v32 = vld [vmem:[%s467_s19 + $0x60] sm:$0xff]  ;;  %v184_v33 = vld [vmem:[%s467_s19 + $0x68] sm:$0xff]  ;;  %v185_v38 = vld [vmem:[%s467_s19 + $0x70] sm:$0xff] }
  0x13   : > { %v281_v27 = vmax.f32 %v249_v16, 0.0  ;;  %v282_v28 = vmax.f32 %v250_v17, 0.0  ;;  %v283_v29 = vmax.f32 %v251_v18, 0.0  ;;  %v255_v30 = vadd.f32 %v472_v1, %v216_v19  ;;  %v186_v43 = vld [vmem:[%s467_s19 + $0x78] sm:$0xff]  ;;  %v187_v56 = vld [vmem:[%s467_s19 + $0x80] sm:$0xff]  ;;  %v188_v57 = vld [vmem:[%s467_s19 + $0x88] sm:$0xff] }
  0x14   : > { %v284_v34 = vmax.f32 %v252_v20, 0.0  ;;  %v285_v35 = vmax.f32 %v253_v21, 0.0  ;;  %v286_v36 = vmax.f32 %v254_v22, 0.0  ;;  %v256_v37 = vadd.f32 %v472_v1, %v217_v23  ;;  %v189_v58 = vld [vmem:[%s467_s19 + $0x90] sm:$0xff]  ;;  %v190_v63 = vld [vmem:[%s467_s19 + $0x98] sm:$0xff]  ;;  %v191_v2 = vld [vmem:[%s467_s19 + $0xa0] sm:$0xff] }
  0x15   : > { %313 = vst [vmem:[%s495_s24] sm:$0xff] %v281_v27  ;;  %314 = vst [vmem:[%s495_s24 + $0x8] sm:$0xff] %v282_v28  ;;  %v287_v39 = vmax.f32 %v255_v30, 0.0  ;;  %v218_v40 = vmul.f32 %v462_v0, %v179_v24  ;;  %v219_v41 = vmul.f32 %v462_v0, %v180_v25  ;;  %v220_v42 = vmul.f32 %v462_v0, %v181_v26  ;;  %v192_v3 = vld [vmem:[%s467_s19 + $0xa8] sm:$0xff]  ;;  %v193_v8 = vld [vmem:[%s467_s19 + $0xb0] sm:$0xff] }
  0x16   : > { %315 = vst [vmem:[%s495_s24 + $0x10] sm:$0xff] %v283_v29  ;;  %316 = vst [vmem:[%s495_s24 + $0x18] sm:$0xff] %v284_v34  ;;  %v288_v44 = vmax.f32 %v256_v37, 0.0  ;;  %v221_v45 = vmul.f32 %v462_v0, %v182_v31  ;;  %v222_v46 = vmul.f32 %v462_v0, %v183_v32  ;;  %v223_v47 = vmul.f32 %v462_v0, %v184_v33  ;;  %v194_v13 = vld [vmem:[%s467_s19 + $0xb8] sm:$0xff]  ;;  %v195_v26 = vld [vmem:[%s467_s19 + $0xc0] sm:$0xff] }
  0x17   : > { %317 = vst [vmem:[%s495_s24 + $0x20] sm:$0xff] %v285_v35  ;;  %318 = vst [vmem:[%s495_s24 + $0x28] sm:$0xff] %v286_v36  ;;  %v257_v48 = vadd.f32 %v472_v1, %v218_v40  ;;  %v258_v49 = vadd.f32 %v472_v1, %v219_v41  ;;  %v259_v50 = vadd.f32 %v472_v1, %v220_v42  ;;  %v196_v27 = vld [vmem:[%s467_s19 + $0xc8] sm:$0xff]  ;;  %v197_v28 = vld [vmem:[%s467_s19 + $0xd0] sm:$0xff] }
  0x18   : > { %319 = vst [vmem:[%s495_s24 + $0x30] sm:$0xff] %v287_v39  ;;  %v224_v51 = vmul.f32 %v462_v0, %v185_v38  ;;  %320 = vst [vmem:[%s495_s24 + $0x38] sm:$0xff] %v288_v44  ;;  %v260_v52 = vadd.f32 %v472_v1, %v221_v45  ;;  %v261_v53 = vadd.f32 %v472_v1, %v222_v46  ;;  %v198_v33 = vld [vmem:[%s467_s19 + $0xd8] sm:$0xff]  ;;  %v199_v34 = vld [vmem:[%s467_s19 + $0xe0] sm:$0xff] }
  0x19   : > { %v262_v54 = vadd.f32 %v472_v1, %v223_v47  ;;  %v225_v55 = vmul.f32 %v462_v0, %v186_v43  ;;  %v289_v59 = vmax.f32 %v257_v48, 0.0  ;;  %v290_v60 = vmax.f32 %v258_v49, 0.0  ;;  %v200_v35 = vld [vmem:[%s467_s19 + $0xe8] sm:$0xff]  ;;  %v201_v40 = vld [vmem:[%s467_s19 + $0xf0] sm:$0xff]  ;;  %v202_v45 = vld [vmem:[%s467_s19 + $0xf8] sm:$0xff] }
  0x1a   : > { %v291_v61 = vmax.f32 %v259_v50, 0.0  ;;  %v263_v62 = vadd.f32 %v472_v1, %v224_v51  ;;  %v292_v4 = vmax.f32 %v260_v52, 0.0  ;;  %v293_v5 = vmax.f32 %v261_v53, 0.0 }
  0x1b   : > { %v294_v6 = vmax.f32 %v262_v54, 0.0  ;;  %v264_v7 = vadd.f32 %v472_v1, %v225_v55  ;;  %321 = vst [vmem:[%s495_s24 + $0x40] sm:$0xff] %v289_v59  ;;  %322 = vst [vmem:[%s495_s24 + $0x48] sm:$0xff] %v290_v60  ;;  %v226_v10 = vmul.f32 %v462_v0, %v187_v56  ;;  %v227_v11 = vmul.f32 %v462_v0, %v188_v57 }
  0x1c   : > { %323 = vst [vmem:[%s495_s24 + $0x50] sm:$0xff] %v291_v61  ;;  %v295_v9 = vmax.f32 %v263_v62, 0.0  ;;  %v228_v12 = vmul.f32 %v462_v0, %v189_v58  ;;  %324 = vst [vmem:[%s495_s24 + $0x58] sm:$0xff] %v292_v4  ;;  %v229_v15 = vmul.f32 %v462_v0, %v190_v63  ;;  %v230_v16 = vmul.f32 %v462_v0, %v191_v2 }
  0x1d   : > { %325 = vst [vmem:[%s495_s24 + $0x60] sm:$0xff] %v293_v5  ;;  %326 = vst [vmem:[%s495_s24 + $0x68] sm:$0xff] %v294_v6  ;;  %v296_v14 = vmax.f32 %v264_v7, 0.0  ;;  %v231_v17 = vmul.f32 %v462_v0, %v192_v3  ;;  %v265_v18 = vadd.f32 %v472_v1, %v226_v10  ;;  %v266_v19 = vadd.f32 %v472_v1, %v227_v11 }
  0x1e   : > { %327 = vst [vmem:[%s495_s24 + $0x70] sm:$0xff] %v295_v9  ;;  %v267_v20 = vadd.f32 %v472_v1, %v228_v12  ;;  %v232_v21 = vmul.f32 %v462_v0, %v193_v8  ;;  %v268_v22 = vadd.f32 %v472_v1, %v229_v15  ;;  %v269_v23 = vadd.f32 %v472_v1, %v230_v16 }
  0x1f   : > { %328 = vst [vmem:[%s495_s24 + $0x78] sm:$0xff] %v296_v14  ;;  %v270_v24 = vadd.f32 %v472_v1, %v231_v17  ;;  %v233_v25 = vmul.f32 %v462_v0, %v194_v13  ;;  %v297_v29 = vmax.f32 %v265_v18, 0.0  ;;  %v298_v30 = vmax.f32 %v266_v19, 0.0 }
  0x20   : > { %v299_v31 = vmax.f32 %v267_v20, 0.0  ;;  %v271_v32 = vadd.f32 %v472_v1, %v232_v21  ;;  %v300_v36 = vmax.f32 %v268_v22, 0.0  ;;  %v301_v37 = vmax.f32 %v269_v23, 0.0 }
  0x21   : > { %v302_v38 = vmax.f32 %v270_v24, 0.0  ;;  %v272_v39 = vadd.f32 %v472_v1, %v233_v25  ;;  %329 = vst [vmem:[%s495_s24 + $0x80] sm:$0xff] %v297_v29  ;;  %330 = vst [vmem:[%s495_s24 + $0x88] sm:$0xff] %v298_v30  ;;  %v234_v42 = vmul.f32 %v462_v0, %v195_v26  ;;  %v235_v43 = vmul.f32 %v462_v0, %v196_v27 }
  0x22   : > { %331 = vst [vmem:[%s495_s24 + $0x90] sm:$0xff] %v299_v31  ;;  %v303_v41 = vmax.f32 %v271_v32, 0.0  ;;  %v236_v44 = vmul.f32 %v462_v0, %v197_v28  ;;  %332 = vst [vmem:[%s495_s24 + $0x98] sm:$0xff] %v300_v36  ;;  %v237_v47 = vmul.f32 %v462_v0, %v198_v33  ;;  %v238_v48 = vmul.f32 %v462_v0, %v199_v34 }
  0x23   : > { %333 = vst [vmem:[%s495_s24 + $0xa0] sm:$0xff] %v301_v37  ;;  %334 = vst [vmem:[%s495_s24 + $0xa8] sm:$0xff] %v302_v38  ;;  %v304_v46 = vmax.f32 %v272_v39, 0.0  ;;  %v239_v49 = vmul.f32 %v462_v0, %v200_v35  ;;  %v273_v50 = vadd.f32 %v472_v1, %v234_v42  ;;  %v274_v51 = vadd.f32 %v472_v1, %v235_v43 }
  0x24   : > { %335 = vst [vmem:[%s495_s24 + $0xb0] sm:$0xff] %v303_v41  ;;  %v275_v52 = vadd.f32 %v472_v1, %v236_v44  ;;  %v240_v53 = vmul.f32 %v462_v0, %v201_v40  ;;  %v276_v54 = vadd.f32 %v472_v1, %v237_v47  ;;  %v277_v55 = vadd.f32 %v472_v1, %v238_v48 }
  0x25   : > { %336 = vst [vmem:[%s495_s24 + $0xb8] sm:$0xff] %v304_v46  ;;  %v278_v56 = vadd.f32 %v472_v1, %v239_v49  ;;  %v241_v57 = vmul.f32 %v462_v0, %v202_v45  ;;  %v305_v58 = vmax.f32 %v273_v50, 0.0  ;;  %v306_v59 = vmax.f32 %v274_v51, 0.0 }
  0x26   : > { %v307_v60 = vmax.f32 %v275_v52, 0.0  ;;  %v279_v61 = vadd.f32 %v472_v1, %v240_v53  ;;  %v308_v62 = vmax.f32 %v276_v54, 0.0  ;;  %v309_v63 = vmax.f32 %v277_v55, 0.0 }
  0x27   : > { %v310_v2 = vmax.f32 %v278_v56, 0.0  ;;  %v280_v3 = vadd.f32 %v472_v1, %v241_v57  ;;  %337 = vst [vmem:[%s495_s24 + $0xc0] sm:$0xff] %v305_v58  ;;  %338 = vst [vmem:[%s495_s24 + $0xc8] sm:$0xff] %v306_v59 }
  0x28   : > { %339 = vst [vmem:[%s495_s24 + $0xd0] sm:$0xff] %v307_v60  ;;  %v311_v4 = vmax.f32 %v279_v61, 0.0  ;;  %340 = vst [vmem:[%s495_s24 + $0xd8] sm:$0xff] %v308_v62 }
  0x29   : > { %341 = vst [vmem:[%s495_s24 + $0xe0] sm:$0xff] %v309_v63  ;;  %342 = vst [vmem:[%s495_s24 + $0xe8] sm:$0xff] %v310_v2  ;;  %v312_v0 = vmax.f32 %v280_v3, 0.0 }
  0x2a   : > { %343 = vst [vmem:[%s495_s24 + $0xf0] sm:$0xff] %v311_v4 }
  0x2b   : > { %344 = vst [vmem:[%s495_s24 + $0xf8] sm:$0xff] %v312_v0 }
  0x2c PF: > { %s13_s12 = sadd.s32 1, %s429_s12  }
  0x2d   : > { %p10_p4 = scmp.ge.s32.totalorder %s13_s12, 4  }
  0x2f   :  { %12 = sbr.rel (!%p10_p4) target bundleno = 1 (0x1), region = 62 }

// kernel: cnn_block_forward.3
= control target key start
LH: loop header
LB: loop body
LE: loop exit
PB: predicated region body
PF: predicated region fallthrough
CT: control target
= control target key end

     0   :  { %s3140_s18 = smov 0   ;;  %s4148_s0 = inlined_call_operand.vmem [shape: f32[2,16,16,128], index: 0, kind: input, shape index: {}]   ;;  %s4149_s1 = inlined_call_operand.vmem [shape: bf16[1152,128], index: 1, kind: input, shape index: {}]   ;;  %s4150_s2 = inlined_call_operand.vmem [shape: f32[1,128], index: 2, kind: input, shape index: {}, may-alias: {2,3}]   ;;  %s4151_s3 = inlined_call_operand.vmem [shape: f32[1,128], index: 3, kind: input, shape index: {}, may-alias: {2,3}]   ;;  %s4152_s4 = inlined_call_operand.vmem [shape: f32[2,16,16,128], index: 4, kind: output, shape index: {0}]   ;;  %s4153_s5 = inlined_call_operand.vmem [shape: f32[2,2,128], index: 5, kind: output, shape index: {1}]  }
   0x1 LB: > { %s2396_s2 = sadd.s32 4294967295, %s3106_s18   ;;  %p2400_p0 = scmp.ge.s32.totalorder %s3106_s18, 1  ;;  %s3106_s18 = sphi %s3140_s18, %s16_s18  }
   0x2   : > { %p190_p1 = scmp.lt.s32.totalorder %s3106_s18, 3 }
   0x4   : > { %p191_p2 = pnand %p2400_p0, %p190_p1 }
   0x6   : > { %194 = sbr.rel (%p191_p2) target bundleno = 551 (0x227), region = 36 }
   0xb   : > { %v3027_v0 = vld [vmem:[%s4149_s1 + $0x78] sm:$0xff]   ;;  %v3108_v2 = vmov 0.0   ;;  %v3029_v3 = vld [vmem:[%s4149_s1 + $0x70] sm:$0xff]   ;;  %p222_p3 = scmp.lt.s32.totalorder %s2396_s2, 1  ;;  %v3031_v5 = vld [vmem:[%s4149_s1 + $0x68] sm:$0xff]   ;;  %v3109_v46 = vmov 0.0|0.0  }
   0xc   : > { %v3028_v1 = vld [vmem:[%s4149_s1 + $0x38] sm:$0xff]   ;;  %269 = vst [vmem:[#allocation2] sm:$0xff] %v3108_v2  ;;  %270 = vst [vmem:[#allocation2 + $0x8] sm:$0xff] %v3108_v2  ;;  %2482 = vmatprep.subr.bf16.mxu0 %v3027_v0  ;;  %3002 = vmatprep.subr.bf16.mxu1 %v3027_v0  ;;  %v3030_v4 = vld [vmem:[%s4149_s1 + $0x30] sm:$0xff]  }
   0xd   : > { %271 = vst [vmem:[#allocation2 + $0x10] sm:$0x3] %v3108_v2  ;;  %272 = vst [vmem:[#allocation2 + $0x18] sm:$0xff] %v3108_v2  ;;  %2483 = vmatpush3.bf16.msra.mxu0 %v3028_v1  ;;  %3010 = vmatpush3.bf16.msra.mxu1 %v3028_v1  ;;  %s4177_s2 = smov (!%p222_p3, %s2396_s2), 1  ;;  %v3032_v6 = vld [vmem:[%s4149_s1 + $0x28] sm:$0xff]   ;;  %v3033_v7 = vld [vmem:[%s4149_s1 + $0x60] sm:$0xff]  }
   0xe   : > { %273 = vst [vmem:[#allocation2 + $0x20] sm:$0xff] %v3108_v2  ;;  %274 = vst [vmem:[#allocation2 + $0x28] sm:$0x3] %v3108_v2  ;;  %2484 = vmatprep.subr.bf16.mxu0 %v3029_v3  ;;  %3003 = vmatprep.subr.bf16.mxu1 %v3029_v3  ;;  %s2480_s7 = sshll.u32 %s4177_s2, 8  ;;  %v3034_v8 = vld [vmem:[%s4149_s1 + $0x20] sm:$0xff]   ;;  %v3035_v9 = vld [vmem:[%s4149_s1 + $0x58] sm:$0xff]  }
   0xf   : > { %275 = vst [vmem:[#allocation2 + $0x30] sm:$0xff] %v3108_v2  ;;  %276 = vst [vmem:[#allocation2 + $0x38] sm:$0xff] %v3108_v2  ;;  %s3187_s14 = scalar_lea.vmem %s4148_s0, %s2480_s7  ;;  %v3036_v10 = vld [vmem:[%s4149_s1 + $0x18] sm:$0xff]   ;;  %v3037_v11 = vld [vmem:[%s4149_s1 + $0x50] sm:$0xff]   ;;  %s4013_s27 = scalar_lea.vmem %s4152_s4, %s2480_s7 }
  0x10   : > { %277 = vst [vmem:[#allocation2 + $0x40] sm:$0x3] %v3108_v2  ;;  %278 = vst [vmem:[#allocation2 + $0x48] sm:$0xff] %v3108_v2  ;;  %v259_v14 = vld [vmem:[%s3187_s14 + $0xb0] sm:$0xff]  ;;  %v260_v16 = vld [vmem:[%s3187_s14 + $0xb8] sm:$0xff]  ;;  %s2405_s7 = sshll.u32 %s4177_s2, 1 }
  0x11   : > { %279 = vst [vmem:[#allocation2 + $0x50] sm:$0xff] %v3108_v2  ;;  %280 = vst [vmem:[#allocation2 + $0x58] sm:$0x3] %v3108_v2  ;;  %2485 = vmatpush3.bf16.msra.mxu0 %v3030_v4  ;;  %3011 = vmatpush3.bf16.msra.mxu1 %v3030_v4  ;;  %v448_v17 = vpack.c.bf16 %v260_v16, %v259_v14  ;;  %v3038_v18 = vld [vmem:[%s4149_s1 + $0x10] sm:$0xff]   ;;  %v3039_v19 = vld [vmem:[%s4149_s1 + $0x48] sm:$0xff]   ;;  %s235_s30 = scalar_lea.vmem %s4153_s5, %s2405_s7 }
  0x12   : > { %281 = vst [vmem:[#allocation2 + $0x60] sm:$0xff] %v3108_v2  ;;  %282 = vst [vmem:[#allocation2 + $0x68] sm:$0xff] %v3108_v2  ;;  %2486 = vmatprep.subr.bf16.mxu0 %v3031_v5  ;;  %3004 = vmatprep.subr.bf16.mxu1 %v3031_v5  ;;  %v3040_v20 = vld [vmem:[%s4149_s1 + $0x8] sm:$0xff]   ;;  %v237_v21 = vld [vmem:[%s3187_s14] sm:$0xff] }
  0x13   : > { %283 = vst [vmem:[#allocation2 + $0x70] sm:$0x3] %v3108_v2  ;;  %284 = vst [vmem:[#allocation2 + $0x78] sm:$0xff] %v3108_v2  ;;  %v404_v12 = vld [vmem:[#allocation2 + $0x1] sm:$0xff]  ;;  %1493 = vmatprep.mubr.bf16.mxu1 %v448_v17  ;;  %v3043_v28 = vld [vmem:[%s4149_s1 + $0xf8] sm:$0xff]  }
  0x14   : > { %285 = vst [vmem:[#allocation2 + $0x80] sm:$0xff] %v3108_v2  ;;  %286 = vst [vmem:[#allocation2 + $0x88] sm:$0x3] %v3108_v2  ;;  %v405_v13 = vld [vmem:[#allocation2 + $0x9] sm:$0xff]  ;;  %v3041_v23 = vld [vmem:[%s4149_s1 + $0x40] sm:$0xff]  }
  0x15   : > { %287 = vst [vmem:[#allocation2 + $0x90] sm:$0xff] %v3108_v2  ;;  %288 = vst [vmem:[#allocation2 + $0x98] sm:$0xff] %v3108_v2  ;;  %2487 = vmatpush3.bf16.msra.mxu0 %v3032_v6  ;;  %3012 = vmatpush3.bf16.msra.mxu1 %v3032_v6  ;;  %v436_v15 = vpack.c.bf16 %v405_v13, %v404_v12  ;;  %v238_v22 = vld [vmem:[%s3187_s14 + $0x8] sm:$0xff]  ;;  %v261_v24 = vld [vmem:[%s3187_s14 + $0xc0] sm:$0xff] }
  0x16   : > { %289 = vst [vmem:[#allocation2 + $0xa0] sm:$0x3] %v3108_v2  ;;  %290 = vst [vmem:[#allocation2 + $0xa8] sm:$0xff] %v3108_v2  ;;  %2488 = vmatprep.subr.bf16.mxu0 %v3033_v7  ;;  %3005 = vmatprep.subr.bf16.mxu1 %v3033_v7  ;;  %v262_v25 = vld [vmem:[%s3187_s14 + $0xc8] sm:$0xff]  ;;  %v3042_v26 = vld [vmem:[%s4149_s1] sm:$0xff]   ;;  %v3233_v35 = vpack.c.bf16 %v238_v22, %v237_v21 }
  0x17   : > { %291 = vst [vmem:[#allocation2 + $0xb0] sm:$0xff] %v3108_v2  ;;  %292 = vst [vmem:[#allocation2 + $0xb8] sm:$0x3] %v3108_v2  ;;  %1397 = vmatprep.mubr.bf16.mxu0 %v436_v15  ;;  %v3044_v30 = vld [vmem:[%s4149_s1 + $0x178] sm:$0xff]   ;;  %v3047_v34 = vld [vmem:[%s4149_s1 + $0xf0] sm:$0xff]   ;;  %v449_v39 = vpack.c.bf16 %v262_v25, %v261_v24 }
  0x18   : > { %293 = vst [vmem:[#allocation2 + $0xc0] sm:$0xff] %v3108_v2  ;;  %294 = vst [vmem:[#allocation2 + $0xc8] sm:$0xff] %v3108_v2  ;;  %v3045_v32 = vld [vmem:[%s4149_s1 + $0xb8] sm:$0xff]   ;;  %v3052_v36 = vld [vmem:[%s4149_s1 + $0x170] sm:$0xff]  }
  0x19   : > { %295 = vst [vmem:[#allocation2 + $0xd0] sm:$0x3] %v3108_v2  ;;  %296 = vst [vmem:[#allocation2 + $0xd8] sm:$0xff] %v3108_v2  ;;  %2489 = vmatpush3.bf16.msra.mxu0 %v3034_v8  ;;  %3013 = vmatpush3.bf16.msra.mxu1 %v3034_v8  ;;  %v3046_v33 = vld [vmem:[%s4149_s1 + $0x138] sm:$0xff]   ;;  %v239_v37 = vld [vmem:[%s3187_s14 + $0x10] sm:$0xff] }
  0x1a   : > { %297 = vst [vmem:[#allocation2 + $0xe0] sm:$0xff] %v3108_v2  ;;  %298 = vst [vmem:[#allocation2 + $0xe8] sm:$0x3] %v3108_v2  ;;  %2490 = vmatprep.subr.bf16.mxu0 %v3035_v9  ;;  %3006 = vmatprep.subr.bf16.mxu1 %v3035_v9  ;;  %v3048_v38 = vld [vmem:[%s4149_s1 + $0xb0] sm:$0xff]   ;;  %v240_v43 = vld [vmem:[%s3187_s14 + $0x18] sm:$0xff] }
  0x1b   : > { %299 = vst [vmem:[#allocation2 + $0xf0] sm:$0xff] %v3108_v2  ;;  %300 = vst [vmem:[#allocation2 + $0xf8] sm:$0xff] %v3108_v2  ;;  %v3054_v42 = vld [vmem:[%s4149_s1 + $0x130] sm:$0xff]   ;;  %v264_v45 = vld [vmem:[%s3187_s14 + $0xd8] sm:$0xff]  ;;  %v3263_v56 = vpack.c.bf16 %v240_v43, %v239_v37 }
  0x1c   : > { %301 = vst [vmem:[#allocation2 + $0x100] sm:$0x3] %v3108_v2  ;;  %302 = vst [vmem:[#allocation2 + $0x108] sm:$0xff] %v3108_v2  ;;  %v263_v44 = vld [vmem:[%s3187_s14 + $0xd0] sm:$0xff]  ;;  %v3049_v49 = vld [vmem:[%s4149_s1 + $0xe8] sm:$0xff]  }
  0x1d   : > { %303 = vst [vmem:[#allocation2 + $0x110] sm:$0xff] %v3108_v2  ;;  %304 = vst [vmem:[#allocation2 + $0x118] sm:$0x3] %v3108_v2  ;;  %2491 = vmatpush3.bf16.msra.mxu0 %v3036_v10  ;;  %3014 = vmatpush3.bf16.msra.mxu1 %v3036_v10  ;;  %v3050_v50 = vld [vmem:[%s4149_s1 + $0xa8] sm:$0xff]   ;;  %v241_v53 = vld [vmem:[%s3187_s14 + $0x20] sm:$0xff]  ;;  %v450_v59 = vpack.c.bf16 %v264_v45, %v263_v44 }
  0x1e   : > { %305 = vst [vmem:[#allocation2 + $0x120] sm:$0xff] %v3108_v2  ;;  %306 = vst [vmem:[#allocation2 + $0x128] sm:$0xff] %v3108_v2  ;;  %2492 = vmatprep.subr.bf16.mxu0 %v3037_v11  ;;  %3007 = vmatprep.subr.bf16.mxu1 %v3037_v11  ;;  %v242_v54 = vld [vmem:[%s3187_s14 + $0x28] sm:$0xff]  ;;  %v265_v55 = vld [vmem:[%s3187_s14 + $0xe0] sm:$0xff] }
  0x1f   : > { %307 = vst [vmem:[#allocation2 + $0x130] sm:$0x3] %v3108_v2  ;;  %308 = vst [vmem:[#allocation2 + $0x138] sm:$0xff] %v3108_v2  ;;  %v266_v57 = vld [vmem:[%s3187_s14 + $0xe8] sm:$0xff]  ;;  %v3051_v58 = vld [vmem:[%s4149_s1 + $0xe0] sm:$0xff]   ;;  %v3291_v7 = vpack.c.bf16 %v242_v54, %v241_v53 }
  0x20   : > { %309 = vst [vmem:[#allocation2 + $0x140] sm:$0xff] %v3108_v2  ;;  %310 = vst [vmem:[#allocation2 + $0x148] sm:$0x3] %v3108_v2  ;;  %v3053_v60 = vld [vmem:[%s4149_s1 + $0xa0] sm:$0xff]   ;;  %v3055_v0 = vld [vmem:[%s4149_s1 + $0xd8] sm:$0xff]   ;;  %v451_v9 = vpack.c.bf16 %v266_v57, %v265_v55 }
  0x21   : > { %311 = vst [vmem:[#allocation2 + $0x150] sm:$0xff] %v3108_v2  ;;  %312 = vst [vmem:[#allocation2 + $0x158] sm:$0xff] %v3108_v2  ;;  %2493 = vmatpush3.bf16.msra.mxu0 %v3038_v18  ;;  %3015 = vmatpush3.bf16.msra.mxu1 %v3038_v18  ;;  %v3060_v1 = vld [vmem:[%s4149_s1 + $0x168] sm:$0xff]   ;;  %v3056_v6 = vld [vmem:[%s4149_s1 + $0x98] sm:$0xff]  }
  0x22   : > { %313 = vst [vmem:[#allocation2 + $0x160] sm:$0x3] %v3108_v2  ;;  %314 = vst [vmem:[#allocation2 + $0x168] sm:$0xff] %v3108_v2  ;;  %2494 = vmatprep.subr.bf16.mxu0 %v3039_v19  ;;  %3008 = vmatprep.subr.bf16.mxu1 %v3039_v19  ;;  %v3062_v3 = vld [vmem:[%s4149_s1 + $0x128] sm:$0xff]   ;;  %v3057_v8 = vld [vmem:[%s4149_s1 + $0xd0] sm:$0xff]  }
  0x23   : > { %315 = vst [vmem:[#allocation2 + $0x170] sm:$0xff] %v3108_v2  ;;  %316 = vst [vmem:[#allocation2 + $0x178] sm:$0x3] %v3108_v2  ;;  %v243_v10 = vld [vmem:[%s3187_s14 + $0x30] sm:$0xff]  ;;  %v244_v11 = vld [vmem:[%s3187_s14 + $0x38] sm:$0xff] }
  0x24   : > { %317 = vst [vmem:[#allocation2 + $0x180] sm:$0xff] %v3108_v2  ;;  %318 = vst [vmem:[#allocation2 + $0x188] sm:$0xff] %v3108_v2  ;;  %v3058_v12 = vld [vmem:[%s4149_s1 + $0x90] sm:$0xff]   ;;  %v3067_v18 = vld [vmem:[%s4149_s1 + $0x160] sm:$0xff]  }
  0x25   : > { %319 = vst [vmem:[#allocation2 + $0x190] sm:$0x3] %v3108_v2  ;;  %320 = vst [vmem:[#allocation2 + $0x198] sm:$0xff] %v3108_v2  ;;  %2495 = vmatpush3.bf16.msra.mxu0 %v3040_v20  ;;  %3016 = vmatpush3.bf16.msra.mxu1 %v3040_v20  ;;  %v3068_v19 = vld [vmem:[%s4149_s1 + $0x120] sm:$0xff]  }
  0x26   : > { %321 = vst [vmem:[#allocation2 + $0x1a0] sm:$0xff] %v3108_v2  ;;  %322 = vst [vmem:[#allocation2 + $0x1a8] sm:$0x3] %v3108_v2  ;;  %2496 = vmatprep.subr.bf16.mxu0 %v3041_v23  ;;  %3009 = vmatprep.subr.bf16.mxu1 %v3041_v23  ;;  %v245_v20 = vld [vmem:[%s3187_s14 + $0x40] sm:$0xff] }
  0x27   : > { %346 = vst [vmem:[#allocation2 + $0x121] sm:$0xff] %v259_v14  ;;  %347 = vst [vmem:[#allocation2 + $0x129] sm:$0xff] %v260_v16  ;;  %v3059_v16 = vld [vmem:[%s4149_s1 + $0xc8] sm:$0xff]  }
  0x28   : > { %324 = vst [vmem:[#allocation2 + $0x19] sm:$0xff] %v237_v21  ;;  %325 = vst [vmem:[#allocation2 + $0x21] sm:$0xff] %v238_v22  ;;  %v246_v21 = vld [vmem:[%s3187_s14 + $0x48] sm:$0xff] }
  0x29   : > { %348 = vst [vmem:[#allocation2 + $0x139] sm:$0xff] %v261_v24  ;;  %349 = vst [vmem:[#allocation2 + $0x141] sm:$0xff] %v262_v25  ;;  %2497 = vmatpush3.bf16.msra.mxu0 %v3042_v26  ;;  %3017 = vmatpush3.bf16.msra.mxu1 %v3042_v26  ;;  %v3320_v24 = vld [vmem:[%s3187_s14 + $0x50] sm:$0xff]  ;;  %v3061_v25 = vld [vmem:[%s4149_s1 + $0x88] sm:$0xff]   ;;  %v3325_v26 = vpack.c.bf16 %v244_v11, %v243_v10 }
  0x2a   : > { %2594 = vmatprep.subr.bf16.mxu1 %v3043_v28  ;;  %2706 = vmatprep.subr.bf16.mxu0 %v3044_v30  ;;  %326 = vst [vmem:[#allocation2 + $0x31] sm:$0xff] %v239_v37  ;;  %327 = vst [vmem:[#allocation2 + $0x39] sm:$0xff] %v240_v43  ;;  %v3063_v28 = vld [vmem:[%s4149_s1 + $0xc0] sm:$0xff]   ;;  %v3071_v37 = vld [vmem:[%s4149_s1 + $0x118] sm:$0xff]  }
  0x2b   : > { %350 = vst [vmem:[#allocation2 + $0x151] sm:$0xff] %v263_v44  ;;  %351 = vst [vmem:[#allocation2 + $0x159] sm:$0xff] %v264_v45  ;;  %v3066_v43 = vld [vmem:[%s4149_s1 + $0x1b8] sm:$0xff]   ;;  %v3361_v44 = vpack.c.bf16 %v246_v21, %v245_v20  ;;  %v3070_v45 = vld [vmem:[%s4149_s1 + $0x1f0] sm:$0xff]  }
  0x2c   : > { %1398 = vmatmul.mubr.bf16.vlgmr.msra.gmra.mxu0 %v3109_v46  ;;  %328 = vst [vmem:[#allocation2 + $0x49] sm:$0xff] %v241_v53  ;;  %329 = vst [vmem:[#allocation2 + $0x51] sm:$0xff] %v242_v54  ;;  %v3074_v54 = vld [vmem:[%s4149_s1 + $0x110] sm:$0xff]  }
  0x2d   : > { %2707 = vmatpush3.bf16.msra.mxu0 %v3046_v33  ;;  %1405 = vmatprep.mubr.bf16.mxu0 %v3233_v35  ;;  %352 = vst [vmem:[#allocation2 + $0x169] sm:$0xff] %v265_v55  ;;  %353 = vst [vmem:[#allocation2 + $0x171] sm:$0xff] %v266_v57  ;;  %v453_v33 = vld [vmem:[#allocation2 + $0xa] sm:$0xff] }
  0x2e   : > { %v380_v27 = vld [vmem:[#allocation2 + $0x120] sm:$0xff]  ;;  %v381_v29 = vld [vmem:[#allocation2 + $0x128] sm:$0xff]  ;;  %2708 = vmatprep.subr.bf16.mxu0 %v3052_v36  ;;  %330 = vst [vmem:[#allocation2 + $0x61] sm:$0xff] %v243_v10  ;;  %331 = vst [vmem:[#allocation2 + $0x69] sm:$0xff] %v244_v11 }
  0x2f   : > { %v3222_v31 = vpack.c.bf16 %v381_v29, %v380_v27  ;;  %v358_v40 = vld [vmem:[#allocation2 + $0x18] sm:$0xff]  ;;  %v359_v41 = vld [vmem:[#allocation2 + $0x20] sm:$0xff]  ;;  %332 = vst [vmem:[#allocation2 + $0x79] sm:$0xff] %v245_v20  ;;  %333 = vst [vmem:[#allocation2 + $0x81] sm:$0xff] %v246_v21 }
  0x30   : > { %v382_v47 = vld [vmem:[#allocation2 + $0x138] sm:$0xff]  ;;  %v383_v48 = vld [vmem:[#allocation2 + $0x140] sm:$0xff]  ;;  %v3256_v51 = vpack.c.bf16 %v359_v41, %v358_v40  ;;  %334 = vst [vmem:[#allocation2 + $0x91] sm:$0xff] %v3320_v24  ;;  %v3352_v40 = vld [vmem:[%s3187_s14 + $0x68] sm:$0xff] }
  0x31   : > { %1494 = vmatmul.mubr.bf16.vlgmr.msra.gmra.mxu1 %v3222_v31  ;;  %v3258_v52 = vpack.c.bf16 %v383_v48, %v382_v47  ;;  %2709 = vmatpush3.bf16.msra.mxu0 %v3054_v42  ;;  %v360_v61 = vld [vmem:[#allocation2 + $0x30] sm:$0xff]  ;;  %v361_v62 = vld [vmem:[#allocation2 + $0x38] sm:$0xff]  ;;  %v3064_v29 = vld [vmem:[%s4149_s1 + $0x80] sm:$0xff]   ;;  %337 = vst [vmem:[#allocation2 + $0xb1] sm:$0xff] %v3352_v40 }
  0x32   : > { %2595 = vmatpush3.bf16.msra.mxu1 %v3045_v32  ;;  %1501 = vmatprep.mubr.bf16.mxu1 %v449_v39  ;;  %v384_v63 = vld [vmem:[#allocation2 + $0x150] sm:$0xff]  ;;  %v385_v2 = vld [vmem:[#allocation2 + $0x158] sm:$0xff]  ;;  %v3284_v4 = vpack.c.bf16 %v361_v62, %v360_v61  ;;  %v452_v32 = vld [vmem:[#allocation2 + $0x2] sm:$0xff] }
  0x33   : > { %2596 = vmatprep.subr.bf16.mxu1 %v3047_v34  ;;  %2710 = vmatprep.subr.bf16.mxu0 %v3060_v1  ;;  %v3286_v5 = vpack.c.bf16 %v385_v2, %v384_v63  ;;  %v362_v13 = vld [vmem:[#allocation2 + $0x48] sm:$0xff]  ;;  %v363_v14 = vld [vmem:[#allocation2 + $0x50] sm:$0xff]  ;;  %v248_v27 = vld [vmem:[%s3187_s14 + $0x58] sm:$0xff]  ;;  %v484_v42 = vpack.c.bf16 %v453_v33, %v452_v32 }
  0x34   : > { %1406 = vmatmul.mubr.bf16.gmra.mxu0 %v3256_v51  ;;  %v386_v15 = vld [vmem:[#allocation2 + $0x168] sm:$0xff]  ;;  %v387_v17 = vld [vmem:[#allocation2 + $0x170] sm:$0xff]  ;;  %v3315_v22 = vpack.c.bf16 %v363_v14, %v362_v13  ;;  %335 = vst [vmem:[#allocation2 + $0x99] sm:$0xff] %v248_v27  ;;  %v3069_v34 = vld [vmem:[%s4149_s1 + $0x158] sm:$0xff]   ;;  %v3405_v63 = vpack.c.bf16 %v248_v27, %v3320_v24 }
  0x35   : > { %1413 = vmatprep.mubr.bf16.mxu0 %v3263_v56  ;;  %2711 = vmatpush3.bf16.msra.mxu0 %v3062_v3  ;;  %v3317_v23 = vpack.c.bf16 %v387_v17, %v386_v15  ;;  %v364_v30 = vld [vmem:[#allocation2 + $0x60] sm:$0xff]  ;;  %v365_v36 = vld [vmem:[#allocation2 + $0x68] sm:$0xff]  ;;  %v3072_v48 = vld [vmem:[%s4149_s1 + $0x1b0] sm:$0xff]  }
  0x36   : > { %2597 = vmatpush3.bf16.msra.mxu1 %v3048_v38  ;;  %2712 = vmatprep.subr.bf16.mxu0 %v3067_v18  ;;  %v3065_v38 = vld [vmem:[%s4149_s1 + $0x1f8] sm:$0xff]   ;;  %v3349_v39 = vld [vmem:[%s3187_s14 + $0x60] sm:$0xff]  ;;  %v3355_v41 = vpack.c.bf16 %v365_v36, %v364_v30  ;;  %v3075_v57 = vld [vmem:[%s4149_s1 + $0x1e8] sm:$0xff]  }
  0x37   : > { %2598 = vmatprep.subr.bf16.mxu1 %v3049_v49  ;;  %336 = vst [vmem:[#allocation2 + $0xa9] sm:$0xff] %v3349_v39  ;;  %v454_v46 = vld [vmem:[#allocation2 + $0x1a] sm:$0xff]  ;;  %v455_v47 = vld [vmem:[#allocation2 + $0x22] sm:$0xff]  ;;  %v3073_v49 = vld [vmem:[%s4149_s1 + $0x150] sm:$0xff]  }
  0x38   : > { %v366_v53 = vld [vmem:[#allocation2 + $0x78] sm:$0xff]  ;;  %v367_v55 = vld [vmem:[#allocation2 + $0x80] sm:$0xff]  ;;  %v3397_v61 = vpack.c.bf16 %v455_v47, %v454_v46  ;;  %v3076_v62 = vld [vmem:[%s4149_s1 + $0x1a8] sm:$0xff]  }
  0x39   : > { %1502 = vmatmul.mubr.bf16.gmra.mxu1 %v3258_v52  ;;  %2713 = vmatpush3.bf16.msra.mxu0 %v3068_v19  ;;  %v3078_v1 = vld [vmem:[%s4149_s1 + $0x108] sm:$0xff]   ;;  %v3414_v2 = vld [vmem:[%s3187_s14 + $0x90] sm:$0xff]  ;;  %v3079_v11 = vld [vmem:[%s4149_s1 + $0x1e0] sm:$0xff]  }
  0x3a   : > { %2599 = vmatpush3.bf16.msra.mxu1 %v3050_v50  ;;  %1509 = vmatprep.mubr.bf16.mxu1 %v450_v59  ;;  %v3373_v50 = vld [vmem:[%s3187_s14 + $0x70] sm:$0xff]  ;;  %v3393_v59 = vld [vmem:[%s3187_s14 + $0x88] sm:$0xff]  ;;  %342 = vst [vmem:[#allocation2 + $0xf1] sm:$0xff] %v3414_v2  ;;  %v3081_v15 = vld [vmem:[%s4149_s1 + $0x140] sm:$0xff]  }
  0x3b   : > { %2600 = vmatprep.subr.bf16.mxu1 %v3051_v58  ;;  %2714 = vmatprep.subr.bf16.mxu0 %v3069_v34  ;;  %338 = vst [vmem:[#allocation2 + $0xc1] sm:$0xff] %v3373_v50  ;;  %v3390_v58 = vld [vmem:[%s3187_s14 + $0x80] sm:$0xff]  ;;  %341 = vst [vmem:[#allocation2 + $0xe1] sm:$0xff] %v3393_v59  ;;  %v456_v3 = vld [vmem:[#allocation2 + $0x32] sm:$0xff] }
  0x3c   : > { %1414 = vmatmul.mubr.bf16.gmra.mxu0 %v3284_v4  ;;  %340 = vst [vmem:[#allocation2 + $0xd9] sm:$0xff] %v3390_v58  ;;  %v369_v10 = vld [vmem:[#allocation2 + $0x98] sm:$0xff]  ;;  %v3082_v17 = vld [vmem:[%s4149_s1 + $0x100] sm:$0xff]   ;;  %v3449_v19 = vld [vmem:[%s3187_s14 + $0xa8] sm:$0xff]  ;;  %v3499_v47 = vpack.c.bf16 %v3393_v59, %v3390_v58 }
  0x3d   : > { %1421 = vmatprep.mubr.bf16.mxu0 %v3291_v7  ;;  %2715 = vmatpush3.bf16.msra.mxu0 %v3071_v37  ;;  %v3446_v18 = vld [vmem:[%s3187_s14 + $0xa0] sm:$0xff]  ;;  %345 = vst [vmem:[#allocation2 + $0x111] sm:$0xff] %v3449_v19  ;;  %v458_v24 = vld [vmem:[#allocation2 + $0x4a] sm:$0xff]  ;;  %v3083_v27 = vld [vmem:[%s4149_s1 + $0x1d8] sm:$0xff]  }
  0x3e   : > { %2601 = vmatpush3.bf16.msra.mxu1 %v3053_v60  ;;  %2716 = vmatprep.subr.bf16.mxu0 %v3073_v49  ;;  %v3395_v60 = vpack.c.bf16 %v367_v55, %v366_v53  ;;  %344 = vst [vmem:[#allocation2 + $0x109] sm:$0xff] %v3446_v18  ;;  %v370_v20 = vld [vmem:[#allocation2 + $0xa8] sm:$0xff]  ;;  %v371_v21 = vld [vmem:[#allocation2 + $0xb0] sm:$0xff]  ;;  %v462_v49 = vld [vmem:[#allocation2 + $0x7a] sm:$0xff] }
  0x3f   : > { %2602 = vmatprep.subr.bf16.mxu1 %v3055_v0  ;;  %v3077_v0 = vld [vmem:[%s4149_s1 + $0x148] sm:$0xff]   ;;  %v3469_v30 = vpack.c.bf16 %v371_v21, %v370_v20  ;;  %v3086_v34 = vld [vmem:[%s4149_s1 + $0x1d0] sm:$0xff]  }
  0x40   : > { %v3088_v36 = vld [vmem:[%s4149_s1 + $0x190] sm:$0xff]   ;;  %v3091_v46 = vld [vmem:[%s4149_s1 + $0x188] sm:$0xff]  }
  0x41   : > { %1510 = vmatmul.mubr.bf16.gmra.mxu1 %v3286_v5  ;;  %2717 = vmatpush3.bf16.msra.mxu0 %v3074_v54  ;;  %v267_v53 = vld [vmem:[%s3187_s14 + $0xf0] sm:$0xff] }
  0x42   : > { %2603 = vmatpush3.bf16.msra.mxu1 %v3056_v6  ;;  %1517 = vmatprep.mubr.bf16.mxu1 %v451_v9  ;;  %v457_v6 = vld [vmem:[#allocation2 + $0x3a] sm:$0xff]  ;;  %v368_v9 = vld [vmem:[#allocation2 + $0x90] sm:$0xff]  ;;  %354 = vst [vmem:[#allocation2 + $0x181] sm:$0xff] %v267_v53 }
  0x43   : > { %2604 = vmatprep.subr.bf16.mxu1 %v3057_v8  ;;  %2718 = vmatprep.subr.bf16.mxu0 %v3077_v0  ;;  %v3417_v8 = vld [vmem:[%s3187_s14 + $0x98] sm:$0xff]  ;;  %v3431_v13 = vpack.c.bf16 %v369_v10, %v368_v9  ;;  %v3433_v14 = vpack.c.bf16 %v457_v6, %v456_v3  ;;  %v372_v37 = vld [vmem:[#allocation2 + $0xc0] sm:$0xff] }
  0x44   : > { %1422 = vmatmul.mubr.bf16.gmra.mxu0 %v3315_v22  ;;  %343 = vst [vmem:[#allocation2 + $0xf9] sm:$0xff] %v3417_v8  ;;  %v374_v54 = vld [vmem:[#allocation2 + $0xd8] sm:$0xff]  ;;  %v375_v55 = vld [vmem:[#allocation2 + $0xe0] sm:$0xff] }
  0x45   : > { %1429 = vmatprep.mubr.bf16.mxu0 %v3325_v26  ;;  %2719 = vmatpush3.bf16.msra.mxu0 %v3078_v1  ;;  %v3513_v58 = vpack.c.bf16 %v375_v55, %v374_v54  ;;  %v464_v0 = vld [vmem:[#allocation2 + $0x92] sm:$0xff]  ;;  %v465_v6 = vld [vmem:[#allocation2 + $0x9a] sm:$0xff] }
  0x46   : > { %2605 = vmatpush3.bf16.msra.mxu1 %v3058_v12  ;;  %v3080_v12 = vld [vmem:[%s4149_s1 + $0x1a0] sm:$0xff]   ;;  %2720 = vmatprep.subr.bf16.mxu0 %v3081_v15  ;;  %v376_v1 = vld [vmem:[#allocation2 + $0xf0] sm:$0xff]  ;;  %v3527_v10 = vpack.c.bf16 %v465_v6, %v464_v0 }
  0x47   : > { %2606 = vmatprep.subr.bf16.mxu1 %v3059_v16  ;;  %v3440_v16 = vpack.c.bf16 %v3352_v40, %v3349_v39  ;;  %v461_v39 = vld [vmem:[#allocation2 + $0x6a] sm:$0xff]  ;;  %v467_v15 = vld [vmem:[#allocation2 + $0xb2] sm:$0xff]  ;;  %v481_v54 = vld [vmem:[#allocation2 + $0x15a] sm:$0xff] }
  0x49   : > { %1518 = vmatmul.mubr.bf16.gmra.mxu1 %v3317_v23  ;;  %2721 = vmatpush3.bf16.msra.mxu0 %v3082_v17  ;;  %v530_v55 = vld [vmem:[#allocation2 + $0x180] sm:$0xff] }
  0x4a   : > { %2607 = vmatpush3.bf16.msra.mxu1 %v3061_v25  ;;  %1558 = vmatprep.mubr.bf16.mxu1 %v3256_v51  ;;  %v3376_v51 = vld [vmem:[%s3187_s14 + $0x78] sm:$0xff] }
  0x4b   : > { %2608 = vmatprep.subr.bf16.mxu1 %v3063_v28  ;;  %339 = vst [vmem:[#allocation2 + $0xc9] sm:$0xff] %v3376_v51  ;;  %v459_v25 = vld [vmem:[#allocation2 + $0x52] sm:$0xff]  ;;  %v3475_v33 = vpack.c.bf16 %v3376_v51, %v3373_v50  ;;  %v463_v50 = vld [vmem:[#allocation2 + $0x82] sm:$0xff] }
  0x4c   : > { %1430 = vmatmul.mubr.bf16.gmra.mxu0 %v3355_v41  ;;  %v3463_v28 = vld [vmem:[%s4149_s1 + $0x238] sm:$0xff]   ;;  %v3471_v32 = vpack.c.bf16 %v459_v25, %v458_v24  ;;  %v3094_v51 = vld [vmem:[%s4149_s1 + $0x180] sm:$0xff]   ;;  %v3515_v59 = vpack.c.bf16 %v463_v50, %v462_v49  ;;  %v3087_v25 = vld [vmem:[%s4149_s1 + $0x230] sm:$0xff]  }
  0x4d   : > { %1437 = vmatprep.mubr.bf16.mxu0 %v3361_v44  ;;  %2954 = vmatprep.subr.bf16.mxu0 %v3463_v28  ;;  %v377_v3 = vld [vmem:[#allocation2 + $0xf8] sm:$0xff] }
  0x4e   : > { %2609 = vmatpush3.bf16.msra.mxu1 %v3064_v29  ;;  %v3085_v29 = vld [vmem:[%s4149_s1 + $0x198] sm:$0xff]   ;;  %v3525_v9 = vpack.c.bf16 %v377_v3, %v376_v1  ;;  %v482_v1 = vld [vmem:[#allocation2 + $0x16a] sm:$0xff] }
  0x4f   : > { %2818 = vmatprep.subr.bf16.mxu1 %v3065_v38  ;;  %v460_v38 = vld [vmem:[#allocation2 + $0x62] sm:$0xff]  ;;  %v478_v50 = vld [vmem:[#allocation2 + $0x13a] sm:$0xff] }
  0x51   : > { %1559 = vmatmul.mubr.bf16.vlgmr.msra.gmra.mxu1 %v484_v42  ;;  %v3089_v42 = vld [vmem:[%s4149_s1 + $0x1c8] sm:$0xff]  }
  0x52   : > { %2819 = vmatpush3.bf16.msra.mxu1 %v3066_v43  ;;  %1566 = vmatprep.mubr.bf16.mxu1 %v3284_v4  ;;  %v373_v40 = vld [vmem:[#allocation2 + $0xc8] sm:$0xff] }
  0x53   : > { %2820 = vmatprep.subr.bf16.mxu1 %v3070_v45  ;;  %v3490_v43 = vpack.c.bf16 %v373_v40, %v372_v37  ;;  %v3492_v45 = vpack.c.bf16 %v461_v39, %v460_v38  ;;  %v3096_v38 = vld [vmem:[%s4149_s1 + $0x210] sm:$0xff]   ;;  %v3097_v40 = vld [vmem:[%s4149_s1 + $0x208] sm:$0xff]  }
  0x54   : > { %1438 = vmatmul.mubr.bf16.gmra.mxu0 %v3395_v60  ;;  %v475_v39 = vld [vmem:[#allocation2 + $0x112] sm:$0xff] }
  0x55   : > { %1445 = vmatprep.mubr.bf16.mxu0 %v3405_v63 }
  0x56   : > { %2821 = vmatpush3.bf16.msra.mxu1 %v3072_v48  ;;  %v3092_v48 = vld [vmem:[%s4149_s1 + $0x1c0] sm:$0xff]  }
  0x57   : > { %2822 = vmatprep.subr.bf16.mxu1 %v3075_v57  ;;  %v268_v57 = vld [vmem:[%s3187_s14 + $0xf8] sm:$0xff] }
  0x58   : > { %355 = vst [vmem:[#allocation2 + $0x189] sm:$0xff] %v268_v57  ;;  %v3541_v21 = vpack.c.bf16 %v268_v57, %v267_v53  ;;  %v480_v53 = vld [vmem:[#allocation2 + $0x152] sm:$0xff] }
  0x59   : > { %1567 = vmatmul.mubr.bf16.gmra.mxu1 %v3397_v61  ;;  %v3605_v0 = vpack.c.bf16 %v481_v54, %v480_v53 }
  0x5a   : > { %1574 = vmatprep.mubr.bf16.mxu1 %v3315_v22  ;;  %2823 = vmatpush3.bf16.msra.mxu1 %v3076_v62  ;;  %v3519_v62 = vpack.c.bf16 %v3417_v8, %v3414_v2  ;;  %v3531_v2 = vpack.c.bf16 %v3449_v19, %v3446_v18  ;;  %v466_v8 = vld [vmem:[#allocation2 + $0xaa] sm:$0xff]  ;;  %v468_v18 = vld [vmem:[#allocation2 + $0xc2] sm:$0xff] }
  0x5b   : > { %2824 = vmatprep.subr.bf16.mxu1 %v3079_v11  ;;  %v378_v11 = vld [vmem:[#allocation2 + $0x108] sm:$0xff]  ;;  %v3539_v20 = vpack.c.bf16 %v467_v15, %v466_v8 }
  0x5c   : > { %1446 = vmatmul.mubr.bf16.gmra.mxu0 %v3431_v13  ;;  %v469_v19 = vld [vmem:[#allocation2 + $0xca] sm:$0xff] }
  0x5d   : > { %1453 = vmatprep.mubr.bf16.mxu0 %v3440_v16  ;;  %v3547_v24 = vpack.c.bf16 %v469_v19, %v468_v18 }
  0x5e   : > { %2825 = vmatpush3.bf16.msra.mxu1 %v3080_v12  ;;  %v379_v12 = vld [vmem:[#allocation2 + $0x110] sm:$0xff] }
  0x5f   : > { %2826 = vmatprep.subr.bf16.mxu1 %v3083_v27  ;;  %v3537_v17 = vpack.c.bf16 %v379_v12, %v378_v11  ;;  %v470_v27 = vld [vmem:[#allocation2 + $0xda] sm:$0xff]  ;;  %v531_v57 = vld [vmem:[#allocation2 + $0x188] sm:$0xff] }
  0x61   : > { %1575 = vmatmul.mubr.bf16.gmra.mxu1 %v3433_v14 }
  0x62   : > { %1582 = vmatprep.mubr.bf16.mxu1 %v3355_v41  ;;  %2827 = vmatpush3.bf16.msra.mxu1 %v3085_v29  ;;  %v471_v29 = vld [vmem:[#allocation2 + $0xe2] sm:$0xff] }
  0x63   : > { %2828 = vmatprep.subr.bf16.mxu1 %v3086_v34  ;;  %v3560_v34 = vpack.c.bf16 %v471_v29, %v470_v27 }
  0x64   : > { %1454 = vmatmul.mubr.bf16.gmra.mxu0 %v3469_v30 }
  0x65   : > { %1461 = vmatprep.mubr.bf16.mxu0 %v3475_v33 }
  0x66   : > { %2829 = vmatpush3.bf16.msra.mxu1 %v3088_v36  ;;  %v3095_v36 = vld [vmem:[%s4149_s1 + $0x218] sm:$0xff]  }
  0x67   : > { %2830 = vmatprep.subr.bf16.mxu1 %v3089_v42 }
  0x69   : > { %1583 = vmatmul.mubr.bf16.gmra.mxu1 %v3471_v32 }
  0x6a   : > { %1590 = vmatprep.mubr.bf16.mxu1 %v3395_v60  ;;  %2831 = vmatpush3.bf16.msra.mxu1 %v3091_v46  ;;  %v3098_v46 = vld [vmem:[%s4149_s1 + $0x200] sm:$0xff]  }
  0x6b   : > { %2832 = vmatprep.subr.bf16.mxu1 %v3092_v48  ;;  %v477_v48 = vld [vmem:[#allocation2 + $0x12a] sm:$0xff] }
  0x6c   : > { %1462 = vmatmul.mubr.bf16.gmra.mxu0 %v3490_v43 }
  0x6d   : > { %1469 = vmatprep.mubr.bf16.mxu0 %v3499_v47 }
  0x6e   : > { %2833 = vmatpush3.bf16.msra.mxu1 %v3094_v51  ;;  %v479_v51 = vld [vmem:[#allocation2 + $0x142] sm:$0xff] }
  0x71   : > { %1591 = vmatmul.mubr.bf16.gmra.mxu1 %v3492_v45 }
  0x72   : > { %1598 = vmatprep.mubr.bf16.mxu1 %v3431_v13 }
  0x74   : > { %1470 = vmatmul.mubr.bf16.gmra.mxu0 %v3513_v58 }
  0x75   : > { %1477 = vmatprep.mubr.bf16.mxu0 %v3519_v62 }
  0x79   : > { %1599 = vmatmul.mubr.bf16.gmra.mxu1 %v3515_v59 }
  0x7a   : > { %1606 = vmatprep.mubr.bf16.mxu1 %v3469_v30 }
  0x7c   : > { %1478 = vmatmul.mubr.bf16.gmra.mxu0 %v3525_v9 }
  0x7d   : > { %1485 = vmatprep.mubr.bf16.mxu0 %v3531_v2 }
  0x81   : > { %1607 = vmatmul.mubr.bf16.gmra.mxu1 %v3527_v10 }
  0x82   : > { %1614 = vmatprep.mubr.bf16.mxu1 %v3490_v43 }
  0x84   : > { %1486 = vmatmul.mubr.bf16.gmra.mxu0 %v3537_v17 }
  0x85   : > { %1719 = vmatprep.mubr.bf16.mxu0 %v3397_v61  ;;  %v3090_v61 = vld [vmem:[%s4149_s1 + $0x228] sm:$0xff]  }
  0x89   : > { %1615 = vmatmul.mubr.bf16.gmra.mxu1 %v3539_v20 }
  0x8a   : > { %1622 = vmatprep.mubr.bf16.mxu1 %v3513_v58 }
  0x8c   : > { %1720 = vmatmul.mubr.bf16.vlgmr.msra.gmra.mxu0 %v3233_v35  ;;  %v3093_v35 = vld [vmem:[%s4149_s1 + $0x220] sm:$0xff]  }
  0x8d   : > { %2955 = vmatpush3.bf16.msra.mxu0 %v3463_v28  ;;  %1727 = vmatprep.mubr.bf16.mxu0 %v3433_v14  ;;  %v472_v14 = vld [vmem:[#allocation2 + $0xf2] sm:$0xff]  ;;  %v473_v28 = vld [vmem:[#allocation2 + $0xfa] sm:$0xff] }
  0x8e   : > { %2956 = vmatprep.subr.bf16.mxu0 %v3087_v25  ;;  %v3572_v37 = vpack.c.bf16 %v473_v28, %v472_v14  ;;  %v576_v14 = vld [vmem:[#allocation2 + $0x169] sm:$0xff]  ;;  %v577_v28 = vld [vmem:[#allocation2 + $0x171] sm:$0xff] }
  0x91   : > { %1623 = vmatmul.mubr.bf16.gmra.mxu1 %v3547_v24  ;;  %2957 = vmatpush3.bf16.msra.mxu0 %v3087_v25 }
  0x92   : > { %1630 = vmatprep.mubr.bf16.mxu1 %v3525_v9  ;;  %2958 = vmatprep.subr.bf16.mxu0 %v3090_v61 }
  0x94   : > { %1728 = vmatmul.mubr.bf16.gmra.mxu0 %v3263_v56 }
  0x95   : > { %1735 = vmatprep.mubr.bf16.mxu0 %v3471_v32  ;;  %2959 = vmatpush3.bf16.msra.mxu0 %v3090_v61  ;;  %v474_v32 = vld [vmem:[#allocation2 + $0x10a] sm:$0xff] }
  0x96   : > { %2960 = vmatprep.subr.bf16.mxu0 %v3093_v35  ;;  %v3584_v42 = vpack.c.bf16 %v475_v39, %v474_v32  ;;  %v626_v32 = vld [vmem:[#allocation2 + $0x182] sm:$0xff]  ;;  %v627_v39 = vld [vmem:[#allocation2 + $0x18a] sm:$0xff] }
  0x99   : > { %1631 = vmatmul.mubr.bf16.gmra.mxu1 %v3560_v34  ;;  %2961 = vmatpush3.bf16.msra.mxu0 %v3093_v35 }
  0x9a   : > { %1638 = vmatprep.mubr.bf16.mxu1 %v3537_v17  ;;  %2962 = vmatprep.subr.bf16.mxu0 %v3095_v36 }
  0x9c   : > { %1736 = vmatmul.mubr.bf16.gmra.mxu0 %v3291_v7 }
  0x9d   : > { %1743 = vmatprep.mubr.bf16.mxu0 %v3492_v45  ;;  %2963 = vmatpush3.bf16.msra.mxu0 %v3095_v36 }
  0x9e   : > { %2964 = vmatprep.subr.bf16.mxu0 %v3096_v38 }
  0xa1   : > { %1639 = vmatmul.mubr.bf16.gmra.mxu1 %v3572_v37  ;;  %2965 = vmatpush3.bf16.msra.mxu0 %v3096_v38 }
  0xa2   : > { %1646 = vmatprep.mubr.bf16.mxu1 %v3222_v31  ;;  %2966 = vmatprep.subr.bf16.mxu0 %v3097_v40  ;;  %v476_v31 = vld [vmem:[#allocation2 + $0x122] sm:$0xff] }
  0xa3   : > { %v3593_v49 = vpack.c.bf16 %v477_v48, %v476_v31 }
  0xa4   : > { %1744 = vmatmul.mubr.bf16.gmra.mxu0 %v3325_v26 }
  0xa5   : > { %1751 = vmatprep.mubr.bf16.mxu0 %v3515_v59  ;;  %2967 = vmatpush3.bf16.msra.mxu0 %v3097_v40 }
  0xa6   : > { %2968 = vmatprep.subr.bf16.mxu0 %v3098_v46 }
  0xa9   : > { %1647 = vmatmul.mubr.bf16.gmra.mxu1 %v3584_v42  ;;  %2969 = vmatpush3.bf16.msra.mxu0 %v3098_v46 }
  0xaa   : > { %1654 = vmatprep.mubr.bf16.mxu1 %v3258_v52  ;;  %v3599_v52 = vpack.c.bf16 %v479_v51, %v478_v50  ;;  %v3661_v50 = vpack.c.bf16 %v577_v28, %v576_v14  ;;  %v3663_v51 = vpack.c.bf16 %v627_v39, %v626_v32 }
  0xac   : > { %1752 = vmatmul.mubr.bf16.gmra.mxu0 %v3361_v44 }
  0xad   : > { %1759 = vmatprep.mubr.bf16.mxu0 %v3527_v10 }
  0xb1   : > { %1655 = vmatmul.mubr.bf16.gmra.mxu1 %v3593_v49 }
  0xb2   : > { %1662 = vmatprep.mubr.bf16.mxu1 %v3286_v5  ;;  %v3607_v5 = vpack.c.bf16 %v531_v57, %v530_v55 }
  0xb4   : > { %1760 = vmatmul.mubr.bf16.gmra.mxu0 %v3405_v63 }
  0xb5   : > { %1767 = vmatprep.mubr.bf16.mxu0 %v3539_v20 }
  0xb9   : > { %1663 = vmatmul.mubr.bf16.gmra.mxu1 %v3599_v52 }
  0xba   : > { %1670 = vmatprep.mubr.bf16.mxu1 %v3317_v23  ;;  %v483_v23 = vld [vmem:[#allocation2 + $0x172] sm:$0xff] }
  0xbb   : > { %v3613_v3 = vpack.c.bf16 %v483_v23, %v482_v1 }
  0xbc   : > { %1768 = vmatmul.mubr.bf16.gmra.mxu0 %v3440_v16 }
  0xbd   : > { %1775 = vmatprep.mubr.bf16.mxu0 %v3547_v24 }
  0xc1   : > { %1671 = vmatmul.mubr.bf16.gmra.mxu1 %v3605_v0 }
  0xc2   : > { %1678 = vmatprep.mubr.bf16.mxu1 %v3607_v5 }
  0xc4   : > { %1776 = vmatmul.mubr.bf16.gmra.mxu0 %v3475_v33 }
  0xc5   : > { %1783 = vmatprep.mubr.bf16.mxu0 %v3560_v34 }
  0xc9   : > { %1679 = vmatmul.mubr.bf16.gmra.mxu1 %v3613_v3 }
  0xca   : > { %1880 = vmatprep.mubr.bf16.mxu1 %v3263_v56  ;;  %v570_v56 = vld [vmem:[#allocation2 + $0x121] sm:$0xff] }
  0xcc   : > { %1784 = vmatmul.mubr.bf16.gmra.mxu0 %v3499_v47 }
  0xcd   : > { %1791 = vmatprep.mubr.bf16.mxu0 %v3572_v37 }
  0xd1   : > { %1881 = vmatmul.mubr.bf16.vlgmr.msra.gmra.mxu1 %v3284_v4  ;;  %v571_v4 = vld [vmem:[#allocation2 + $0x129] sm:$0xff] }
  0xd2   : > { %1888 = vmatprep.mubr.bf16.mxu1 %v3291_v7  ;;  %v3631_v6 = vpack.c.bf16 %v571_v4, %v570_v56  ;;  %v572_v7 = vld [vmem:[#allocation2 + $0x139] sm:$0xff] }
  0xd3   : > { %v741_v56 = vld [vmem:[#allocation2 + $0x32] sm:$0xff]  ;;  %v742_v4 = vld [vmem:[#allocation2 + $0x3a] sm:$0xff] }
  0xd4   : > { %1792 = vmatmul.mubr.bf16.gmra.mxu0 %v3519_v62 }
  0xd5   : > { %1799 = vmatprep.mubr.bf16.mxu0 %v3584_v42 }
  0xd9   : > { %1889 = vmatmul.mubr.bf16.gmra.mxu1 %v3315_v22  ;;  %v573_v22 = vld [vmem:[#allocation2 + $0x141] sm:$0xff] }
  0xda   : > { %1896 = vmatprep.mubr.bf16.mxu1 %v3325_v26  ;;  %v3637_v26 = vpack.c.bf16 %v573_v22, %v572_v7 }
  0xdc   : > { %1800 = vmatmul.mubr.bf16.gmra.mxu0 %v3531_v2 }
  0xdd   : > { %1807 = vmatprep.mubr.bf16.mxu0 %v3593_v49 }
  0xe1   : > { %1897 = vmatmul.mubr.bf16.gmra.mxu1 %v3355_v41 }
  0xe2   : > { %1904 = vmatprep.mubr.bf16.mxu1 %v3361_v44  ;;  %v574_v44 = vld [vmem:[#allocation2 + $0x151] sm:$0xff] }
  0xe4   : > { %1808 = vmatmul.mubr.bf16.gmra.mxu0 %v3631_v6 }
  0xe5   : > { %1815 = vmatprep.mubr.bf16.mxu0 %v3599_v52 }
  0xe9   : > { %1905 = vmatmul.mubr.bf16.gmra.mxu1 %v3395_v60  ;;  %v575_v60 = vld [vmem:[#allocation2 + $0x159] sm:$0xff] }
  0xea   : > { %1912 = vmatprep.mubr.bf16.mxu1 %v3405_v63  ;;  %v3647_v25 = vpack.c.bf16 %v575_v60, %v574_v44  ;;  %v773_v44 = vpack.c.bf16 %v742_v4, %v741_v56 }
  0xec   : > { %v2498_v41 = vpop.f32.mrf.mxu0  ;;  %1816 = vmatmul.mubr.bf16.gmra.mxu0 %v3637_v26 }
  0xed   : > { %1823 = vmatprep.mubr.bf16.mxu0 %v3605_v0 }
  0xee   : > { %v2499_v11 = vpop.f32.mrf.mxu0 }
  0xef   : > { %v3643_v15 = vadd.f32 %v2499_v11, %v2498_v41 }
  0xf0   : > { %v2501_v18 = vpop.f32.mrf.mxu0 }
  0xf1   : > { %v2570_v8 = vpop.f32.mrf.mxu1  ;;  %1913 = vmatmul.mubr.bf16.gmra.mxu1 %v3431_v13 }
  0xf2   : > { %1920 = vmatprep.mubr.bf16.mxu1 %v3440_v16  ;;  %v2502_v27 = vpop.f32.mrf.mxu0 }
  0xf3   : > { %v2571_v12 = vpop.f32.mrf.mxu1  ;;  %v3649_v61 = vadd.f32 %v2502_v27, %v2501_v18  ;;  %v744_v27 = vld [vmem:[#allocation2 + $0x52] sm:$0xff] }
  0xf4   : > { %v3645_v63 = vadd.f32 %v2571_v12, %v2570_v8  ;;  %v2504_v35 = vpop.f32.mrf.mxu0  ;;  %1824 = vmatmul.mubr.bf16.gmra.mxu0 %v3647_v25 }
  0xf5   : > { %v2573_v19 = vpop.f32.mrf.mxu1  ;;  %1831 = vmatprep.mubr.bf16.mxu0 %v3613_v3 }
  0xf6   : > { %v2505_v36 = vpop.f32.mrf.mxu0 }
  0xf7   : > { %v2574_v29 = vpop.f32.mrf.mxu1  ;;  %v3657_v40 = vadd.f32 %v2505_v36, %v2504_v35 }
  0xf8   : > { %v3651_v13 = vadd.f32 %v2574_v29, %v2573_v19  ;;  %v2507_v31 = vpop.f32.mrf.mxu0 }
  0xf9   : > { %v2576_v16 = vpop.f32.mrf.mxu1  ;;  %1921 = vmatmul.mubr.bf16.gmra.mxu1 %v3469_v30 }
  0xfa   : > { %1928 = vmatprep.mubr.bf16.mxu1 %v3475_v33  ;;  %v2508_v30 = vpop.f32.mrf.mxu0 }
  0xfb   : > { %v2577_v38 = vpop.f32.mrf.mxu1  ;;  %v3665_v54 = vadd.f32 %v2508_v30, %v2507_v31 }
  0xfc   : > { %v3659_v46 = vadd.f32 %v2577_v38, %v2576_v16  ;;  %v2510_v55 = vpop.f32.mrf.mxu0  ;;  %1832 = vmatmul.mubr.bf16.gmra.mxu0 %v3661_v50 }
  0xfd   : > { %v2579_v48 = vpop.f32.mrf.mxu1  ;;  %1839 = vmatprep.mubr.bf16.mxu0 %v3663_v51 }
  0xfe   : > { %v2511_v1 = vpop.f32.mrf.mxu0 }
  0xff   : > { %v2580_v53 = vpop.f32.mrf.mxu1  ;;  %v3673_v7 = vadd.f32 %v2511_v1, %v2510_v55 }
 0x100   : > { %v3667_v33 = vadd.f32 %v2580_v53, %v2579_v48  ;;  %v2513_v41 = vpop.f32.mrf.mxu0 }
 0x101   : > { %v2582_v57 = vpop.f32.mrf.mxu1  ;;  %1929 = vmatmul.mubr.bf16.gmra.mxu1 %v3490_v43 }
 0x102   : > { %1936 = vmatprep.mubr.bf16.mxu1 %v3499_v47  ;;  %v2514_v60 = vpop.f32.mrf.mxu0  ;;  %v743_v47 = vld [vmem:[#allocation2 + $0x4a] sm:$0xff] }
 0x103   : > { %v2583_v23 = vpop.f32.mrf.mxu1  ;;  %v3677_v12 = vadd.f32 %v2514_v60, %v2513_v41  ;;  %v774_v38 = vpack.c.bf16 %v744_v27, %v743_v47 }
 0x104   : > { %v3675_v22 = vadd.f32 %v2583_v23, %v2582_v57  ;;  %v2516_v18 = vpop.f32.mrf.mxu0  ;;  %1840 = vmatmul.mubr.bf16.gmra.mxu0 %v3541_v21 }
 0x105   : > { %v2585_v8 = vpop.f32.mrf.mxu1  ;;  %2970 = vmatprep.mubr.bf16.mxu0 %v773_v44 }
 0x106   : > { %v2517_v29 = vpop.f32.mrf.mxu0 }
 0x107   : > { %v2586_v11 = vpop.f32.mrf.mxu1  ;;  %v3684_v16 = vadd.f32 %v2517_v29, %v2516_v18 }
 0x108   : > { %v3679_v43 = vadd.f32 %v2586_v11, %v2585_v8  ;;  %v2519_v28 = vpop.f32.mrf.mxu0 }
 0x109   : > { %v2588_v19 = vpop.f32.mrf.mxu1  ;;  %1937 = vmatmul.mubr.bf16.gmra.mxu1 %v3513_v58 }
 0x10a   : > { %1944 = vmatprep.mubr.bf16.mxu1 %v3519_v62  ;;  %v2520_v32 = vpop.f32.mrf.mxu0 }
 0x10b   : > { %v2589_v35 = vpop.f32.mrf.mxu1  ;;  %v3688_v31 = vadd.f32 %v2520_v32, %v2519_v28  ;;  %v667_v32 = vld [vmem:[#allocation2 + $0x138] sm:$0xff] }
 0x10c   : > { %v3686_v14 = vadd.f32 %v2589_v35, %v2588_v19  ;;  %v2522_v58 = vpop.f32.mrf.mxu0  ;;  %2971 = vmatmul.mubr.bf16.vlgmr.msra.gmra.mxu0 %v774_v38 }
 0x10d   : > { %v2591_v36 = vpop.f32.mrf.mxu1  ;;  %2974 = vmatprep.mubr.bf16.mxu0 %v3492_v45 }
 0x10e   : > { %v2523_v30 = vpop.f32.mrf.mxu0 }
 0x10f   : > { %v2592_v39 = vpop.f32.mrf.mxu1  ;;  %v3695_v55 = vadd.f32 %v2523_v30, %v2522_v58 }
 0x110   : > { %v3690_v48 = vadd.f32 %v2592_v39, %v2591_v36  ;;  %v2525_v1 = vpop.f32.mrf.mxu0 }
 0x111   : > { %v2610_v62 = vpop.f32.mrf.mxu1  ;;  %1945 = vmatmul.mubr.bf16.gmra.mxu1 %v3525_v9 }
 0x112   : > { %1952 = vmatprep.mubr.bf16.mxu1 %v3531_v2  ;;  %v2526_v4 = vpop.f32.mrf.mxu0  ;;  %v665_v2 = vld [vmem:[#allocation2 + $0x120] sm:$0xff] }
 0x113   : > { %v2611_v53 = vpop.f32.mrf.mxu1  ;;  %v3700_v8 = vadd.f32 %v2526_v4, %v2525_v1 }
 0x114   : > { %v2612_v57 = vadd.f32 %v2611_v53, %v2610_v62  ;;  %v2528_v44 = vpop.f32.mrf.mxu0  ;;  %2975 = vmatmul.mubr.bf16.gmra.mxu0 %v3515_v59 }
 0x115   : > { %v2613_v23 = vpop.f32.mrf.mxu1  ;;  %2978 = vmatprep.mubr.bf16.mxu0 %v3527_v10 }
 0x116   : > { %v3698_v56 = vadd.f32 %v2612_v57, %v3643_v15  ;;  %v666_v15 = vld [vmem:[#allocation2 + $0x128] sm:$0xff]  ;;  %v2529_v11 = vpop.f32.mrf.mxu0 }
 0x117   : > { %v2614_v41 = vpop.f32.mrf.mxu1  ;;  %v3709_v19 = vadd.f32 %v2529_v11, %v2528_v44  ;;  %v687_v35 = vpack.c.bf16 %v666_v15, %v665_v2  ;;  %v669_v44 = vld [vmem:[#allocation2 + $0x150] sm:$0xff] }
 0x118   : > { %v2615_v9 = vadd.f32 %v2614_v41, %v2613_v23  ;;  %v2531_v27 = vpop.f32.mrf.mxu0 }
 0x119   : > { %v2616_v60 = vpop.f32.mrf.mxu1  ;;  %1953 = vmatmul.mubr.bf16.gmra.mxu1 %v3537_v17 }
 0x11a   : > { %v3705_v45 = vadd.f32 %v2615_v9, %v3649_v61  ;;  %1960 = vmatprep.mubr.bf16.mxu1 %v3631_v6  ;;  %v2532_v59 = vpop.f32.mrf.mxu0 }
 0x11b   : > { %v2617_v18 = vpop.f32.mrf.mxu1  ;;  %v3714_v28 = vadd.f32 %v2532_v59, %v2531_v27 }
 0x11c   : > { %v2618_v47 = vadd.f32 %v2617_v18, %v2616_v60  ;;  %v2534_v36 = vpop.f32.mrf.mxu0  ;;  %2979 = vmatmul.mubr.bf16.gmra.mxu0 %v3539_v20 }
 0x11d   : > { %v2619_v29 = vpop.f32.mrf.mxu1  ;;  %2982 = vmatprep.mubr.bf16.mxu0 %v3547_v24 }
 0x11e   : > { %v3712_v17 = vadd.f32 %v2618_v47, %v3657_v40  ;;  %v668_v40 = vld [vmem:[#allocation2 + $0x140] sm:$0xff]  ;;  %v2535_v39 = vpop.f32.mrf.mxu0 }
 0x11f   : > { %v2620_v61 = vpop.f32.mrf.mxu1  ;;  %v3722_v62 = vadd.f32 %v2535_v39, %v2534_v36  ;;  %v688_v1 = vpack.c.bf16 %v668_v40, %v667_v32 }
 0x120   : > { %v2621_v6 = vadd.f32 %v2620_v61, %v2619_v29  ;;  %v2537_v53 = vpop.f32.mrf.mxu0 }
 0x121   : > { %v2622_v10 = vpop.f32.mrf.mxu1  ;;  %1961 = vmatmul.mubr.bf16.gmra.mxu1 %v687_v35 }
 0x122   : > { %v3718_v38 = vadd.f32 %v2621_v6, %v3665_v54  ;;  %1968 = vmatprep.mubr.bf16.mxu1 %v3637_v26  ;;  %v2538_v20 = vpop.f32.mrf.mxu0  ;;  %v671_v6 = vld [vmem:[#allocation2 + $0x168] sm:$0xff] }
 0x123   : > { %v2623_v58 = vpop.f32.mrf.mxu1  ;;  %v3727_v4 = vadd.f32 %v2538_v20, %v2537_v53 }
 0x124   : > { %v2624_v30 = vadd.f32 %v2623_v58, %v2622_v10  ;;  %v2540_v41 = vpop.f32.mrf.mxu0  ;;  %2983 = vmatmul.mubr.bf16.gmra.mxu0 %v3560_v34 }
 0x125   : > { %v2625_v57 = vpop.f32.mrf.mxu1  ;;  %2986 = vmatprep.mubr.bf16.mxu0 %v3572_v37 }
 0x126   : > { %v3725_v23 = vadd.f32 %v2624_v30, %v3673_v7  ;;  %v670_v7 = vld [vmem:[#allocation2 + $0x158] sm:$0xff]  ;;  %v2541_v60 = vpop.f32.mrf.mxu0 }
 0x127   : > { %v2626_v54 = vpop.f32.mrf.mxu1  ;;  %v3735_v15 = vadd.f32 %v2541_v60, %v2540_v41  ;;  %v689_v27 = vpack.c.bf16 %v670_v7, %v669_v44  ;;  %v724_v41 = vld [vmem:[#allocation2 + $0x1a1] sm:$0xff] }
 0x128   : > { %v2627_v26 = vadd.f32 %v2626_v54, %v2625_v57  ;;  %v2543_v18 = vpop.f32.mrf.mxu0 }
 0x129   : > { %v2628_v24 = vpop.f32.mrf.mxu1  ;;  %1969 = vmatmul.mubr.bf16.gmra.mxu1 %v688_v1 }
 0x12a   : > { %v3731_v9 = vadd.f32 %v2627_v26, %v3677_v12  ;;  %1976 = vmatprep.mubr.bf16.mxu1 %v3647_v25  ;;  %v2544_v34 = vpop.f32.mrf.mxu0  ;;  %v723_v26 = vld [vmem:[#allocation2 + $0x199] sm:$0xff] }
 0x12b   : > { %v2629_v2 = vpop.f32.mrf.mxu1  ;;  %v3740_v35 = vadd.f32 %v2544_v34, %v2543_v18  ;;  %v772_v34 = vld [vmem:[#allocation2 + $0x1a2] sm:$0xff] }
 0x12c   : > { %v2630_v11 = vadd.f32 %v2629_v2, %v2628_v24  ;;  %v2546_v59 = vpop.f32.mrf.mxu0  ;;  %2987 = vmatmul.mubr.bf16.gmra.mxu0 %v3584_v42 }
 0x12d   : > { %v2631_v47 = vpop.f32.mrf.mxu1  ;;  %2990 = vmatprep.mubr.bf16.mxu0 %v3593_v49 }
 0x12e   : > { %v3738_v29 = vadd.f32 %v2630_v11, %v3684_v16  ;;  %v672_v16 = vld [vmem:[#allocation2 + $0x170] sm:$0xff]  ;;  %v2547_v36 = vpop.f32.mrf.mxu0 }
 0x12f   : > { %v2632_v12 = vpop.f32.mrf.mxu1  ;;  %v3748_v32 = vadd.f32 %v2547_v36, %v2546_v59  ;;  %v690_v30 = vpack.c.bf16 %v672_v16, %v671_v6  ;;  %v3099_v36 = vld [vmem:[#allocation2] sm:$0xff] }
 0x130   : > { %v2633_v25 = vadd.f32 %v2632_v12, %v2631_v47  ;;  %v2549_v39 = vpop.f32.mrf.mxu0 }
 0x131   : > { %v2634_v37 = vpop.f32.mrf.mxu1  ;;  %1977 = vmatmul.mubr.bf16.gmra.mxu1 %v689_v27 }
 0x132   : > { %v3744_v61 = vadd.f32 %v2633_v25, %v3688_v31  ;;  %1984 = vmatprep.mubr.bf16.mxu1 %v3661_v50  ;;  %v2550_v42 = vpop.f32.mrf.mxu0 }
 0x133   : > { %v2635_v10 = vpop.f32.mrf.mxu1  ;;  %v3753_v57 = vadd.f32 %v2550_v42, %v2549_v39 }
 0x134   : > { %v2636_v40 = vadd.f32 %v2635_v10, %v2634_v37  ;;  %v2552_v1 = vpop.f32.mrf.mxu0  ;;  %2991 = vmatmul.mubr.bf16.gmra.mxu0 %v3599_v52  ;;  %v740_v52 = vpack.c.bf16 %v724_v41, %v723_v26  ;;  %v692_v10 = vpack.c.bf16 %v3099_v36, %v3099_v36 }
 0x135   : > { %v2637_v58 = vpop.f32.mrf.mxu1  ;;  %2994 = vmatprep.mubr.bf16.mxu0 %v3605_v0 }
 0x136   : > { %v3751_v53 = vadd.f32 %v2636_v40, %v3695_v55  ;;  %v2553_v54 = vpop.f32.mrf.mxu0 }
 0x137   : > { %v2638_v31 = vpop.f32.mrf.mxu1  ;;  %v3761_v24 = vadd.f32 %v2553_v54, %v2552_v1 }
 0x138   : > { %v2639_v50 = vadd.f32 %v2638_v31, %v2637_v58  ;;  %v2555_v7 = vpop.f32.mrf.mxu0 }
 0x139   : > { %v2640_v49 = vpop.f32.mrf.mxu1  ;;  %1985 = vmatmul.mubr.bf16.gmra.mxu1 %v690_v30 }
 0x13a   : > { %v3757_v20 = vadd.f32 %v2639_v50, %v3700_v8  ;;  %1992 = vmatprep.mubr.bf16.mxu1 %v3541_v21  ;;  %v2556_v11 = vpop.f32.mrf.mxu0 }
 0x13b   : > { %v2641_v55 = vpop.f32.mrf.mxu1  ;;  %v3766_v18 = vadd.f32 %v2556_v11, %v2555_v7 }
 0x13c   : > { %v2642_v44 = vadd.f32 %v2641_v55, %v2640_v49  ;;  %v2558_v47 = vpop.f32.mrf.mxu0  ;;  %2995 = vmatmul.mubr.bf16.gmra.mxu0 %v3613_v3 }
 0x13d   : > { %v2643_v60 = vpop.f32.mrf.mxu1  ;;  %2998 = vmatprep.mubr.bf16.mxu0 %v3663_v51 }
 0x13e   : > { %v3764_v2 = vadd.f32 %v2642_v44, %v3709_v19  ;;  %v771_v19 = vld [vmem:[#allocation2 + $0x19a] sm:$0xff]  ;;  %v2559_v12 = vpop.f32.mrf.mxu0 }
 0x13f   : > { %v2644_v8 = vpop.f32.mrf.mxu1  ;;  %v3774_v59 = vadd.f32 %v2559_v12, %v2558_v47 }
 0x140   : > { %v2645_v21 = vadd.f32 %v2644_v8, %v2643_v60  ;;  %v2561_v6 = vpop.f32.mrf.mxu0 }
 0x141   : > { %v2646_v0 = vpop.f32.mrf.mxu1  ;;  %1993 = vmatmul.mubr.bf16.gmra.mxu1 %v3607_v5  ;;  %v788_v5 = vpack.c.bf16 %v772_v34, %v771_v19 }
 0x142   : > { %v3771_v27 = vadd.f32 %v2645_v21, %v3714_v28  ;;  %2000 = vmatprep.mubr.bf16.mxu1 %v740_v52  ;;  %v2562_v28 = vpop.f32.mrf.mxu0 }
 0x143   : > { %v2647_v25 = vpop.f32.mrf.mxu1  ;;  %v3779_v39 = vadd.f32 %v2562_v28, %v2561_v6 }
 0x144   : > { %v2648_v37 = vadd.f32 %v2647_v25, %v2646_v0  ;;  %v2564_v58 = vpop.f32.mrf.mxu0  ;;  %2999 = vmatmul.mubr.bf16.gmra.mxu0 %v788_v5 }
 0x145   : > { %v2649_v16 = vpop.f32.mrf.mxu1 }
 0x146   : > { %v3777_v3 = vadd.f32 %v2648_v37, %v3722_v62  ;;  %v2565_v31 = vpop.f32.mrf.mxu0 }
 0x147   : > { %v2650_v40 = vpop.f32.mrf.mxu1  ;;  %v3784_v1 = vadd.f32 %v2565_v31, %v2564_v58 }
 0x148   : > { %v2651_v51 = vadd.f32 %v2650_v40, %v2649_v16  ;;  %v2567_v54 = vpop.f32.mrf.mxu0 }
 0x149   : > { %v2652_v30 = vpop.f32.mrf.mxu1  ;;  %2001 = vmatmul.mubr.bf16.gmra.mxu1 %v692_v10 }
 0x14a   : > { %v3782_v42 = vadd.f32 %v2651_v51, %v3727_v4  ;;  %v2568_v26 = vpop.f32.mrf.mxu0 }
 0x14b   : > { %v2653_v50 = vpop.f32.mrf.mxu1  ;;  %v3789_v44 = vadd.f32 %v2568_v26, %v2567_v54 }
 0x14c   : > { %v2654_v49 = vadd.f32 %v2653_v50, %v2652_v30  ;;  %v2722_v52 = vpop.f32.mrf.mxu0 }
 0x14d   : > { %v2655_v62 = vpop.f32.mrf.mxu1 }
 0x14e   : > { %v3787_v55 = vadd.f32 %v2654_v49, %v3735_v15  ;;  %v2723_v8 = vpop.f32.mrf.mxu0 }
 0x14f   : > { %v2656_v41 = vpop.f32.mrf.mxu1  ;;  %v2724_v47 = vadd.f32 %v2723_v8, %v2722_v52 }
 0x150   : > { %v2657_v7 = vadd.f32 %v2656_v41, %v2655_v62  ;;  %v2725_v19 = vpop.f32.mrf.mxu0 }
 0x151   : > { %v2658_v60 = vpop.f32.mrf.mxu1  ;;  %v3798_v15 = vadd.f32 %v2724_v47, %v3698_v56 }
 0x152   : > { %v3792_v4 = vadd.f32 %v2657_v7, %v3740_v35  ;;  %v2726_v25 = vpop.f32.mrf.mxu0 }
 0x153   : > { %v2659_v11 = vpop.f32.mrf.mxu1  ;;  %v2727_v6 = vadd.f32 %v2726_v25, %v2725_v19 }
 0x154   : > { %v2660_v21 = vadd.f32 %v2659_v11, %v2658_v60  ;;  %v2728_v36 = vpop.f32.mrf.mxu0 }
 0x155   : > { %v2661_v0 = vpop.f32.mrf.mxu1  ;;  %v3804_v10 = vadd.f32 %v2727_v6, %v3705_v45 }
 0x156   : > { %v3795_v34 = vadd.f32 %v2660_v21, %v3748_v32  ;;  %v2729_v28 = vpop.f32.mrf.mxu0 }
 0x157   : > { %v2662_v12 = vpop.f32.mrf.mxu1  ;;  %v2730_v32 = vadd.f32 %v2729_v28, %v2728_v36 }
 0x158   : > { %v2663_v37 = vadd.f32 %v2662_v12, %v2661_v0  ;;  %v2731_v58 = vpop.f32.mrf.mxu0 }
 0x159   : > { %v2664_v16 = vpop.f32.mrf.mxu1  ;;  %v3810_v30 = vadd.f32 %v2730_v32, %v3712_v17 }
 0x15a   : > { %v3801_v35 = vadd.f32 %v2663_v37, %v3753_v57  ;;  %v2732_v50 = vpop.f32.mrf.mxu0 }
 0x15b   : > { %v2665_v5 = vpop.f32.mrf.mxu1  ;;  %v2733_v57 = vadd.f32 %v2732_v50, %v2731_v58 }
 0x15c   : > { %v2666_v40 = vadd.f32 %v2665_v5, %v2664_v16  ;;  %v2734_v62 = vpop.f32.mrf.mxu0 }
 0x15d   : > { %v2667_v51 = vpop.f32.mrf.mxu1  ;;  %v3816_v26 = vadd.f32 %v2733_v57, %v3718_v38 }
 0x15e   : > { %v3807_v56 = vadd.f32 %v2666_v40, %v3761_v24  ;;  %v2735_v7 = vpop.f32.mrf.mxu0 }
 0x15f   : > { %v2668_v31 = vpop.f32.mrf.mxu1  ;;  %v2736_v24 = vadd.f32 %v2735_v7, %v2734_v62 }
 0x160   : > { %v2669_v49 = vadd.f32 %v2668_v31, %v2667_v51  ;;  %v2737_v11 = vpop.f32.mrf.mxu0 }
 0x161   : > { %v2670_v54 = vpop.f32.mrf.mxu1  ;;  %v3822_v8 = vadd.f32 %v2736_v24, %v3725_v23 }
 0x162   : > { %v3813_v45 = vadd.f32 %v2669_v49, %v3766_v18  ;;  %v2738_v47 = vpop.f32.mrf.mxu0 }
 0x163   : > { %v2671_v41 = vpop.f32.mrf.mxu1  ;;  %v2739_v18 = vadd.f32 %v2738_v47, %v2737_v11 }
 0x164   : > { %v2672_v60 = vadd.f32 %v2671_v41, %v2670_v54  ;;  %v2740_v12 = vpop.f32.mrf.mxu0 }
 0x165   : > { %v2673_v52 = vpop.f32.mrf.mxu1  ;;  %v3828_v25 = vadd.f32 %v2739_v18, %v3731_v9 }
 0x166   : > { %v3819_v17 = vadd.f32 %v2672_v60, %v3774_v59  ;;  %v2741_v6 = vpop.f32.mrf.mxu0 }
 0x167   : > { %v2674_v21 = vpop.f32.mrf.mxu1  ;;  %v2742_v59 = vadd.f32 %v2741_v6, %v2740_v12 }
 0x168   : > { %v2675_v0 = vadd.f32 %v2674_v21, %v2673_v52  ;;  %v2743_v5 = vpop.f32.mrf.mxu0 }
 0x169   : > { %v2676_v19 = vpop.f32.mrf.mxu1  ;;  %v3834_v28 = vadd.f32 %v2742_v59, %v3738_v29 }
 0x16a   : > { %v3825_v38 = vadd.f32 %v2675_v0, %v3779_v39  ;;  %v2744_v32 = vpop.f32.mrf.mxu0 }
 0x16b   : > { %v2677_v37 = vpop.f32.mrf.mxu1  ;;  %v2745_v39 = vadd.f32 %v2744_v32, %v2743_v5 }
 0x16c   : > { %v2678_v16 = vadd.f32 %v2677_v37, %v2676_v19  ;;  %v2746_v31 = vpop.f32.mrf.mxu0 }
 0x16d   : > { %v2679_v36 = vpop.f32.mrf.mxu1  ;;  %v3840_v50 = vadd.f32 %v2745_v39, %v3744_v61 }
 0x16e   : > { %v3831_v23 = vadd.f32 %v2678_v16, %v3784_v1  ;;  %v2747_v57 = vpop.f32.mrf.mxu0 }
 0x16f   : > { %v2680_v40 = vpop.f32.mrf.mxu1  ;;  %v2748_v1 = vadd.f32 %v2747_v57, %v2746_v31 }
 0x170   : > { %v2681_v51 = vadd.f32 %v2680_v40, %v2679_v36  ;;  %v2749_v41 = vpop.f32.mrf.mxu0 }
 0x171   : > { %v2682_v58 = vpop.f32.mrf.mxu1  ;;  %v3846_v7 = vadd.f32 %v2748_v1, %v3751_v53 }
 0x172   : > { %v3837_v9 = vadd.f32 %v2681_v51, %v3789_v44  ;;  %v2750_v24 = vpop.f32.mrf.mxu0 }
 0x173   : > { %v2683_v49 = vpop.f32.mrf.mxu1  ;;  %v2751_v44 = vadd.f32 %v2750_v24, %v2749_v41 }
 0x174   : > { %v2684_v54 = vadd.f32 %v2683_v49, %v2682_v58  ;;  %v2752_v21 = vpop.f32.mrf.mxu0 }
 0x175   : > { %v2685_v62 = vpop.f32.mrf.mxu1  ;;  %v3852_v47 = vadd.f32 %v2751_v44, %v3757_v20 }
 0x176   : > { %v3843_v29 = vadd.f32 %v2684_v54, %v3645_v63  ;;  %v2753_v18 = vpop.f32.mrf.mxu0 }
 0x177   : > { %v2686_v60 = vpop.f32.mrf.mxu1  ;;  %v2754_v63 = vadd.f32 %v2753_v18, %v2752_v21 }
 0x178   : > { %v2687_v52 = vadd.f32 %v2686_v60, %v2685_v62  ;;  %v2755_v37 = vpop.f32.mrf.mxu0 }
 0x179   : > { %v2688_v11 = vpop.f32.mrf.mxu1  ;;  %v3858_v6 = vadd.f32 %v2754_v63, %v3764_v2 }
 0x17a   : > { %v3849_v61 = vadd.f32 %v2687_v52, %v3651_v13  ;;  %v2756_v59 = vpop.f32.mrf.mxu0 }
 0x17b   : > { %v2689_v0 = vpop.f32.mrf.mxu1  ;;  %v2757_v13 = vadd.f32 %v2756_v59, %v2755_v37 }
 0x17c   : > { %v2690_v19 = vadd.f32 %v2689_v0, %v2688_v11  ;;  %v2758_v40 = vpop.f32.mrf.mxu0 }
 0x17d   : > { %v2691_v12 = vpop.f32.mrf.mxu1  ;;  %v3864_v32 = vadd.f32 %v2757_v13, %v3771_v27 }
 0x17e   : > { %v3855_v53 = vadd.f32 %v2690_v19, %v3659_v46  ;;  %v2759_v39 = vpop.f32.mrf.mxu0 }
 0x17f   : > { %v2692_v16 = vpop.f32.mrf.mxu1  ;;  %v2760_v46 = vadd.f32 %v2759_v39, %v2758_v40 }
 0x180   : > { %v2693_v36 = vadd.f32 %v2692_v16, %v2691_v12  ;;  %v2761_v49 = vpop.f32.mrf.mxu0 }
 0x181   : > { %v2694_v5 = vpop.f32.mrf.mxu1  ;;  %v3870_v57 = vadd.f32 %v2760_v46, %v3777_v3 }
 0x182   : > { %v3861_v20 = vadd.f32 %v2693_v36, %v3667_v33  ;;  %v2762_v1 = vpop.f32.mrf.mxu0 }
 0x183   : > { %v2695_v51 = vpop.f32.mrf.mxu1  ;;  %v2763_v33 = vadd.f32 %v2762_v1, %v2761_v49 }
 0x184   : > { %v2696_v58 = vadd.f32 %v2695_v51, %v2694_v5  ;;  %v2764_v60 = vpop.f32.mrf.mxu0 }
 0x185   : > { %v2697_v31 = vpop.f32.mrf.mxu1  ;;  %v3876_v24 = vadd.f32 %v2763_v33, %v3782_v42 }
 0x186   : > { %v3867_v2 = vadd.f32 %v2696_v58, %v3675_v22  ;;  %v2765_v44 = vpop.f32.mrf.mxu0 }
 0x187   : > { %v2698_v54 = vpop.f32.mrf.mxu1  ;;  %v2766_v22 = vadd.f32 %v2765_v44, %v2764_v60 }
 0x188   : > { %v2699_v62 = vadd.f32 %v2698_v54, %v2697_v31  ;;  %v2767_v0 = vpop.f32.mrf.mxu0 }
 0x189   : > { %v2700_v41 = vpop.f32.mrf.mxu1  ;;  %v3882_v18 = vadd.f32 %v2766_v22, %v3787_v55 }
 0x18a   : > { %v3873_v27 = vadd.f32 %v2699_v62, %v3679_v43  ;;  %v2768_v63 = vpop.f32.mrf.mxu0 }
 0x18b   : > { %v2701_v52 = vpop.f32.mrf.mxu1  ;;  %v2769_v43 = vadd.f32 %v2768_v63, %v2767_v0 }
 0x18c   : > { %v2702_v11 = vadd.f32 %v2701_v52, %v2700_v41  ;;  %v2770_v37 = vpop.f32.mrf.mxu0 }
 0x18d   : > { %v2703_v21 = vpop.f32.mrf.mxu1  ;;  %v3890_v59 = vadd.f32 %v2769_v43, %v3792_v4 }
 0x18e   : > { %v3879_v3 = vadd.f32 %v2702_v11, %v3686_v14  ;;  %v2771_v36 = vpop.f32.mrf.mxu0 }
 0x18f   : > { %v2704_v19 = vpop.f32.mrf.mxu1  ;;  %v2772_v14 = vadd.f32 %v2771_v36, %v2770_v37 }
 0x190   : > { %v2705_v12 = vadd.f32 %v2704_v19, %v2703_v21  ;;  %v2773_v5 = vpop.f32.mrf.mxu0 }
 0x191   : > { %v3884_v16 = vpop.f32.mrf.mxu1  ;;  %v3897_v40 = vadd.f32 %v2772_v14, %v3795_v34 }
 0x192   : > { %v3887_v42 = vadd.f32 %v2705_v12, %v3690_v48  ;;  %v2774_v51 = vpop.f32.mrf.mxu0 }
 0x193   : > { %v3892_v13 = vpop.f32.mrf.mxu1  ;;  %v2775_v58 = vadd.f32 %v2774_v51, %v2773_v5 }
 0x194   : > { %v2776_v46 = vpop.f32.mrf.mxu0 }
 0x195   : > { %v3894_v55 = vpop.f32.mrf.mxu1  ;;  %v3904_v4 = vadd.f32 %v2775_v58, %v3801_v35 }
 0x196   : > { %v2777_v31 = vpop.f32.mrf.mxu0 }
 0x197   : > { %v3899_v39 = vpop.f32.mrf.mxu1  ;;  %4154 = vst [vmem:[#allocation3_spill] sm:$0xff] %v3904_v4  ;;  %v2778_v54 = vadd.f32 %v2777_v31, %v2776_v46 }
 0x198   : > { %v2779_v1 = vpop.f32.mrf.mxu0 }
 0x199   : > { %v3901_v48 = vpop.f32.mrf.mxu1  ;;  %v3911_v34 = vadd.f32 %v2778_v54, %v3807_v56 }
 0x19a   : > { %v2780_v33 = vpop.f32.mrf.mxu0 }
 0x19b   : > { %v3906_v49 = vpop.f32.mrf.mxu1  ;;  %v2781_v60 = vadd.f32 %v2780_v33, %v2779_v1 }
 0x19c   : > { %v2782_v52 = vpop.f32.mrf.mxu0 }
 0x19d   : > { %v3908_v62 = vpop.f32.mrf.mxu1  ;;  %v3918_v35 = vadd.f32 %v2781_v60, %v3813_v45 }
 0x19e   : > { %v2783_v11 = vpop.f32.mrf.mxu0 }
 0x19f   : > { %v3913_v41 = vpop.f32.mrf.mxu1  ;;  %v2784_v21 = vadd.f32 %v2783_v11, %v2782_v52 }
 0x1a0   : > { %v2785_v0 = vpop.f32.mrf.mxu0 }
 0x1a1   : > { %v3915_v44 = vpop.f32.mrf.mxu1  ;;  %v3925_v56 = vadd.f32 %v2784_v21, %v3819_v17 }
 0x1a2   : > { %v2786_v63 = vpop.f32.mrf.mxu0 }
 0x1a3   : > { %v3920_v22 = vpop.f32.mrf.mxu1  ;;  %4155 = vst [vmem:[#allocation4_spill] sm:$0xff] %v3925_v56  ;;  %v2787_v43 = vadd.f32 %v2786_v63, %v2785_v0 }
 0x1a4   : > { %v2788_v37 = vpop.f32.mrf.mxu0 }
 0x1a5   : > { %v3922_v19 = vpop.f32.mrf.mxu1  ;;  %v3932_v45 = vadd.f32 %v2787_v43, %v3825_v38 }
 0x1a6   : > { %v2789_v14 = vpop.f32.mrf.mxu0 }
 0x1a7   : > { %v3927_v12 = vpop.f32.mrf.mxu1  ;;  %4156 = vst [vmem:[#allocation5_spill] sm:$0xff] %v3932_v45  ;;  %v2790_v51 = vadd.f32 %v2789_v14, %v2788_v37 }
 0x1a8   : > { %v2791_v58 = vpop.f32.mrf.mxu0 }
 0x1a9   : > { %v3929_v36 = vpop.f32.mrf.mxu1  ;;  %v3939_v17 = vadd.f32 %v2790_v51, %v3831_v23 }
 0x1aa   : > { %v2792_v31 = vpop.f32.mrf.mxu0 }
 0x1ab   : > { %v3934_v5 = vpop.f32.mrf.mxu1  ;;  %4157 = vst [vmem:[#allocation6_spill] sm:$0xff] %v3939_v17  ;;  %v2793_v1 = vadd.f32 %v2792_v31, %v2791_v58 }
 0x1ac   : > { %v2794_v33 = vpop.f32.mrf.mxu0 }
 0x1ad   : > { %v3936_v46 = vpop.f32.mrf.mxu1  ;;  %v3946_v38 = vadd.f32 %v2793_v1, %v3837_v9 }
 0x1ae   : > { %v2795_v52 = vpop.f32.mrf.mxu0 }
 0x1af   : > { %v3941_v54 = vpop.f32.mrf.mxu1  ;;  %4158 = vst [vmem:[#allocation7_spill] sm:$0xff] %v3946_v38  ;;  %v2796_v21 = vadd.f32 %v2795_v52, %v2794_v33 }
 0x1b0   : > { %v2797_v0 = vpop.f32.mrf.mxu0 }
 0x1b1   : > { %v3943_v60 = vpop.f32.mrf.mxu1  ;;  %v3953_v23 = vadd.f32 %v2796_v21, %v3843_v29 }
 0x1b2   : > { %v2798_v43 = vpop.f32.mrf.mxu0 }
 0x1b3   : > { %v3948_v11 = vpop.f32.mrf.mxu1  ;;  %4159 = vst [vmem:[#allocation8_spill] sm:$0xff] %v3953_v23  ;;  %v2799_v14 = vadd.f32 %v2798_v43, %v2797_v0 }
 0x1b4   : > { %v2800_v51 = vpop.f32.mrf.mxu0 }
 0x1b5   : > { %v3950_v63 = vpop.f32.mrf.mxu1  ;;  %v3960_v9 = vadd.f32 %v2799_v14, %v3849_v61 }
 0x1b6   : > { %v2801_v31 = vpop.f32.mrf.mxu0 }
 0x1b7   : > { %v3955_v37 = vpop.f32.mrf.mxu1  ;;  %4160 = vst [vmem:[#allocation9_spill] sm:$0xff] %v3960_v9  ;;  %v2802_v33 = vadd.f32 %v2801_v31, %v2800_v51 }
 0x1b8   : > { %v2803_v52 = vpop.f32.mrf.mxu0 }
 0x1b9   : > { %v3957_v58 = vpop.f32.mrf.mxu1  ;;  %v3967_v29 = vadd.f32 %v2802_v33, %v3855_v53 }
 0x1ba   : > { %v2804_v21 = vpop.f32.mrf.mxu0 }
 0x1bb   : > { %v3962_v1 = vpop.f32.mrf.mxu1  ;;  %4161 = vst [vmem:[#allocation10_spill] sm:$0xff] %v3967_v29  ;;  %v2805_v0 = vadd.f32 %v2804_v21, %v2803_v52 }
 0x1bc   : > { %v2806_v43 = vpop.f32.mrf.mxu0 }
 0x1bd   : > { %v3964_v45 = vpop.f32.mrf.mxu1  ;;  %v3974_v61 = vadd.f32 %v2805_v0, %v3861_v20 }
 0x1be   : > { %v2807_v14 = vpop.f32.mrf.mxu0 }
 0x1bf   : > { %v3969_v23 = vpop.f32.mrf.mxu1  ;;  %4162 = vst [vmem:[#allocation11_spill] sm:$0xff] %v3974_v61  ;;  %v2808_v51 = vadd.f32 %v2807_v14, %v2806_v43  ;;  %v2842_v43 = vadd.f32 %v3906_v49, %v3901_v48 }
 0x1c0   : > { %v2809_v31 = vpop.f32.mrf.mxu0 }
 0x1c1   : > { %v3971_v38 = vpop.f32.mrf.mxu1  ;;  %v3981_v53 = vadd.f32 %v2808_v51, %v3867_v2 }
 0x1c2   : > { %v2810_v33 = vpop.f32.mrf.mxu0 }
 0x1c3   : > { %v3976_v9 = vpop.f32.mrf.mxu1  ;;  %4163 = vst [vmem:[#allocation12_spill] sm:$0xff] %v3981_v53  ;;  %v2811_v52 = vadd.f32 %v2810_v33, %v2809_v31  ;;  %v2836_v31 = vadd.f32 %v3892_v13, %v3884_v16  ;;  %v2839_v16 = vadd.f32 %v3899_v39, %v3894_v55 }
 0x1c4   : > { %v2812_v21 = vpop.f32.mrf.mxu0 }
 0x1c5   : > { %v3978_v56 = vpop.f32.mrf.mxu1  ;;  %v3988_v20 = vadd.f32 %v2811_v52, %v3873_v27  ;;  %v2845_v27 = vadd.f32 %v3913_v41, %v3908_v62  ;;  %v1886_v39 = vadd.f32 %v2839_v16, %v3804_v10 }
 0x1c6   : > { %v2813_v0 = vpop.f32.mrf.mxu0 }
 0x1c7   : > { %v3983_v29 = vpop.f32.mrf.mxu1  ;;  %4164 = vst [vmem:[#allocation13_spill] sm:$0xff] %v3988_v20  ;;  %v2814_v14 = vadd.f32 %v2813_v0, %v2812_v21  ;;  %v1891_v20 = vadd.f32 %v2842_v43, %v3810_v30  ;;  %v1883_v30 = vadd.f32 %v2836_v31, %v3798_v15  ;;  %v1894_v0 = vadd.f32 %v2845_v27, %v3816_v26 }
 0x1c8   : > { %v2815_v2 = vpop.f32.mrf.mxu0  ;;  %v2848_v15 = vadd.f32 %v3920_v22, %v3915_v44  ;;  %v2851_v44 = vadd.f32 %v3927_v12, %v3922_v19  ;;  %v2866_v22 = vadd.f32 %v3962_v1, %v3957_v58 }
 0x1c9   : > { %v3985_v17 = vpop.f32.mrf.mxu1  ;;  %v3999_v33 = vadd.f32 %v2814_v14, %v3879_v3 }
 0x1ca   : > { %v2816_v53 = vpop.f32.mrf.mxu0 }
 0x1cb   : > { %v3990_v61 = vpop.f32.mrf.mxu1  ;;  %v2817_v52 = vadd.f32 %v2816_v53, %v2815_v2  ;;  %v2854_v53 = vadd.f32 %v3934_v5, %v3929_v36  ;;  %v2857_v36 = vadd.f32 %v3941_v54, %v3936_v46 }
 0x1cc   : > { %v2972_v3 = vpop.f32.mrf.mxu0 }
 0x1cd   : > { %v3994_v51 = vpop.f32.mrf.mxu1  ;;  %v4018_v13 = vadd.f32 %v2817_v52, %v3887_v42  ;;  %v2052_v49 = vadd.f32 %v2972_v3, %v1891_v20  ;;  %v1907_v26 = vadd.f32 %v2854_v53, %v3834_v28  ;;  %v1899_v28 = vadd.f32 %v2848_v15, %v3822_v8 }
 0x1ce   : > { %v2043_v41 = vpop.f32.mrf.mxu0  ;;  %v1910_v53 = vadd.f32 %v2857_v36, %v3840_v50  ;;  %v1923_v50 = vadd.f32 %v2866_v22, %v3858_v6 }
 0x1cf   : > { %v4001_v4 = vpop.f32.mrf.mxu1  ;;  %2280 = vst [vmem:[%s4013_s27 + $0x10] sm:$0xff] %v2052_v49  ;;  %v2044_v21 = vadd.f32 %v2043_v41, %v1883_v30  ;;  %v2210_v16 = vmul.f32 %v2052_v49, %v2052_v49 }
 0x1d0   : > { %v2973_v55 = vpop.f32.mrf.mxu0 }
 0x1d1   : > { %v4006_v48 = vpop.f32.mrf.mxu1  ;;  %2278 = vst [vmem:[%s4013_s27] sm:$0xff] %v2044_v21  ;;  %v2055_v42 = vadd.f32 %v2973_v55, %v1894_v0  ;;  %v2208_v27 = vmul.f32 %v2044_v21, %v2044_v21 }
 0x1d2   : > { %v2046_v14 = vpop.f32.mrf.mxu0 }
 0x1d3   : > { %v4021_v62 = vpop.f32.mrf.mxu1  ;;  %2281 = vst [vmem:[%s4013_s27 + $0x18] sm:$0xff] %v2055_v42  ;;  %v2047_v5 = vadd.f32 %v2046_v14, %v1886_v39  ;;  %v2211_v58 = vmul.f32 %v2055_v42, %v2055_v42 }
 0x1d4   : > { %v2976_v31 = vpop.f32.mrf.mxu0 }
 0x1d5   : > { %v4027_v43 = vpop.f32.mrf.mxu1  ;;  %v2170_v52 = vadd.f32 %v2047_v5, %v2044_v21  ;;  %v2209_v10 = vmul.f32 %v2047_v5, %v2047_v5  ;;  %2279 = vst [vmem:[%s4013_s27 + $0x8] sm:$0xff] %v2047_v5  ;;  %v2068_v3 = vadd.f32 %v2976_v31, %v1907_v26  ;;  %v2860_v21 = vadd.f32 %v3948_v11, %v3943_v60 }
 0x1d6   : > { %v2059_v54 = vpop.f32.mrf.mxu0  ;;  %v2869_v60 = vadd.f32 %v3969_v23, %v3964_v45  ;;  %v2863_v31 = vadd.f32 %v3955_v37, %v3950_v63 }
 0x1d7   : > { %v4033_v20 = vpop.f32.mrf.mxu1  ;;  %v2171_v30 = vadd.f32 %v2170_v52, %v2052_v49  ;;  %v2240_v41 = vadd.f32 %v2209_v10, %v2208_v27  ;;  %2284 = vst [vmem:[%s4013_s27 + $0x30] sm:$0xff] %v2068_v3  ;;  %v2060_v0 = vadd.f32 %v2059_v54, %v1899_v28  ;;  %v1902_v49 = vadd.f32 %v2851_v44, %v3828_v25 }
 0x1d8   : > { %v2977_v12 = vpop.f32.mrf.mxu0  ;;  %v1915_v52 = vadd.f32 %v2860_v21, %v3846_v7  ;;  %v2878_v44 = vadd.f32 %v3990_v61, %v3985_v17  ;;  %v1926_v28 = vadd.f32 %v2869_v60, %v3864_v32  ;;  %v2214_v63 = vmul.f32 %v2068_v3, %v2068_v3 }
 0x1d9   : > { %v4039_v2 = vpop.f32.mrf.mxu1  ;;  %v2241_v1 = vadd.f32 %v2240_v41, %v2210_v16  ;;  %v2172_v55 = vadd.f32 %v2171_v30, %v2055_v42  ;;  %v2071_v39 = vadd.f32 %v2977_v12, %v1910_v53  ;;  %2282 = vst [vmem:[%s4013_s27 + $0x20] sm:$0xff] %v2060_v0  ;;  %v2212_v14 = vmul.f32 %v2060_v0, %v2060_v0 }
 0x1da   : > { %v2062_v15 = vpop.f32.mrf.mxu0  ;;  %v2872_v30 = vadd.f32 %v3976_v9, %v3971_v38  ;;  %v1918_v53 = vadd.f32 %v2863_v31, %v3852_v47 }
 0x1db   : > { %v4046_v46 = vpop.f32.mrf.mxu1  ;;  %v2173_v11 = vadd.f32 %v2172_v55, %v2060_v0  ;;  %v2242_v36 = vadd.f32 %v2241_v1, %v2211_v58  ;;  %2285 = vst [vmem:[%s4013_s27 + $0x38] sm:$0xff] %v2071_v39  ;;  %v2063_v5 = vadd.f32 %v2062_v15, %v1902_v49  ;;  %v2215_v21 = vmul.f32 %v2071_v39, %v2071_v39 }
 0x1dc   : > { %v2980_v26 = vpop.f32.mrf.mxu0  ;;  %v1939_v58 = vadd.f32 %v2878_v44, %v3882_v18  ;;  %v2875_v49 = vadd.f32 %v3983_v29, %v3978_v56  ;;  %v2890_v18 = vadd.f32 %v4046_v46, %v4039_v2 }
 0x1dd   : > { %v4053_v19 = vpop.f32.mrf.mxu1  ;;  %v2243_v25 = vadd.f32 %v2242_v36, %v2212_v14  ;;  %v2084_v27 = vadd.f32 %v2980_v26, %v1923_v50  ;;  %v2174_v6 = vadd.f32 %v2173_v11, %v2063_v5  ;;  %v2213_v10 = vmul.f32 %v2063_v5, %v2063_v5  ;;  %2283 = vst [vmem:[%s4013_s27 + $0x28] sm:$0xff] %v2063_v5 }
 0x1de   : > { %v2075_v23 = vpop.f32.mrf.mxu0  ;;  %v1931_v50 = vadd.f32 %v2872_v30, %v3870_v57  ;;  %v2884_v57 = vadd.f32 %v4021_v62, %v4006_v48  ;;  %v1955_v44 = vadd.f32 %v2890_v18, %v3911_v34 }
 0x1df   : > { %v4056_v8 = vpop.f32.mrf.mxu1  ;;  %2288 = vst [vmem:[%s4013_s27 + $0x50] sm:$0xff] %v2084_v27  ;;  %v2076_v22 = vadd.f32 %v2075_v23, %v1915_v52  ;;  %v2175_v37 = vadd.f32 %v2174_v6, %v2068_v3  ;;  %v2244_v54 = vadd.f32 %v2243_v25, %v2213_v10  ;;  %v2881_v3 = vadd.f32 %v4001_v4, %v3994_v51 }
 0x1e0   : > { %v2981_v7 = vpop.f32.mrf.mxu0  ;;  %v2218_v5 = vmul.f32 %v2084_v27, %v2084_v27  ;;  %v1934_v52 = vadd.f32 %v2875_v49, %v3876_v24  ;;  %v2887_v24 = vadd.f32 %v4033_v20, %v4027_v43 }
 0x1e1   : > { %v4063_v42 = vpop.f32.mrf.mxu1  ;;  %2286 = vst [vmem:[%s4013_s27 + $0x40] sm:$0xff] %v2076_v22  ;;  %v2087_v41 = vadd.f32 %v2981_v7, %v1926_v28  ;;  %v2245_v17 = vadd.f32 %v2244_v54, %v2214_v63  ;;  %v2176_v61 = vadd.f32 %v2175_v37, %v2071_v39  ;;  %v2216_v9 = vmul.f32 %v2076_v22, %v2076_v22 }
 0x1e2   : > { %v2078_v32 = vpop.f32.mrf.mxu0  ;;  %v1942_v36 = vadd.f32 %v2881_v3, %v3890_v59  ;;  %v2893_v59 = vadd.f32 %v4056_v8, %v4053_v19  ;;  %v1947_v7 = vadd.f32 %v2884_v57, %v3897_v40 }
 0x1e3   : > { %v4069_v45 = vpop.f32.mrf.mxu1  ;;  %2289 = vst [vmem:[%s4013_s27 + $0x58] sm:$0xff] %v2087_v41  ;;  %v2079_v12 = vadd.f32 %v2078_v32, %v1918_v53  ;;  %v2177_v38 = vadd.f32 %v2176_v61, %v2076_v22  ;;  %v2246_v1 = vadd.f32 %v2245_v17, %v2215_v21  ;;  %v2219_v6 = vmul.f32 %v2087_v41, %v2087_v41 }
 0x1e4   : > { %v2984_v47 = vpop.f32.mrf.mxu0  ;;  %v1958_v21 = vadd.f32 %v2893_v59, %v3918_v35  ;;  %v2896_v3 = vadd.f32 %v4069_v45, %v4063_v42  ;;  %v4169_v59 = vld [vmem:[#allocation5_spill] sm:$0xff] }
 0x1e5   : > { %v4075_v16 = vpop.f32.mrf.mxu1  ;;  %v2217_v39 = vmul.f32 %v2079_v12, %v2079_v12  ;;  %2287 = vst [vmem:[%s4013_s27 + $0x48] sm:$0xff] %v2079_v12  ;;  %v2100_v15 = vadd.f32 %v2984_v47, %v1939_v58  ;;  %v2247_v4 = vadd.f32 %v2246_v1, %v2216_v9  ;;  %v2178_v51 = vadd.f32 %v2177_v38, %v2079_v12  ;;  %v4165_v12 = vld [vmem:[#allocation3_spill] sm:$0xff] }
 0x1e6   : > { %v2091_v11 = vpop.f32.mrf.mxu0  ;;  %v1950_v58 = vadd.f32 %v2887_v24, %v4165_v12 }
 0x1e7   : > { %v4081_v0 = vpop.f32.mrf.mxu1  ;;  %2292 = vst [vmem:[%s4013_s27 + $0x70] sm:$0xff] %v2100_v15  ;;  %v2092_v14 = vadd.f32 %v2091_v11, %v1931_v50  ;;  %v2179_v56 = vadd.f32 %v2178_v51, %v2084_v27  ;;  %v2248_v29 = vadd.f32 %v2247_v4, %v2217_v39  ;;  %v2222_v17 = vmul.f32 %v2100_v15, %v2100_v15  ;;  %v4166_v39 = vld [vmem:[#allocation6_spill] sm:$0xff] }
 0x1e8   : > { %v2985_v31 = vpop.f32.mrf.mxu0 }
 0x1e9   : > { %v2900_v55 = vpop.f32.mrf.mxu1  ;;  %2290 = vst [vmem:[%s4013_s27 + $0x60] sm:$0xff] %v2092_v14  ;;  %v2103_v25 = vadd.f32 %v2985_v31, %v1942_v36  ;;  %v2249_v2 = vadd.f32 %v2248_v29, %v2218_v5  ;;  %v2180_v46 = vadd.f32 %v2179_v56, %v2087_v41  ;;  %v2220_v48 = vmul.f32 %v2092_v14, %v2092_v14 }
 0x1ea   : > { %v2094_v23 = vpop.f32.mrf.mxu0 }
 0x1eb   : > { %v2901_v60 = vpop.f32.mrf.mxu1  ;;  %2293 = vst [vmem:[%s4013_s27 + $0x78] sm:$0xff] %v2103_v25  ;;  %v2095_v27 = vadd.f32 %v2094_v23, %v1934_v52  ;;  %v2181_v22 = vadd.f32 %v2180_v46, %v2092_v14  ;;  %v2250_v62 = vadd.f32 %v2249_v2, %v2219_v6  ;;  %v2223_v38 = vmul.f32 %v2103_v25, %v2103_v25  ;;  %v4167_v14 = vld [vmem:[#allocation4_spill] sm:$0xff] }
 0x1ec   : > { %v2988_v63 = vpop.f32.mrf.mxu0  ;;  %v2902_v34 = vadd.f32 %v2901_v60, %v2900_v55  ;;  %v2899_v60 = vadd.f32 %v4081_v0, %v4075_v16  ;;  %v1963_v36 = vadd.f32 %v2896_v3, %v4167_v14 }
 0x1ed   : > { %v2903_v26 = vpop.f32.mrf.mxu1  ;;  %v2221_v37 = vmul.f32 %v2095_v27, %v2095_v27  ;;  %2291 = vst [vmem:[%s4013_s27 + $0x68] sm:$0xff] %v2095_v27  ;;  %v2116_v54 = vadd.f32 %v2988_v63, %v1955_v44  ;;  %v2251_v19 = vadd.f32 %v2250_v62, %v2220_v48  ;;  %v2182_v8 = vadd.f32 %v2181_v22, %v2095_v27 }
 0x1ee   : > { %v2107_v41 = vpop.f32.mrf.mxu0  ;;  %v1966_v27 = vadd.f32 %v2899_v60, %v4169_v59 }
 0x1ef   : > { %v2904_v10 = vpop.f32.mrf.mxu1  ;;  %2296 = vst [vmem:[%s4013_s27 + $0x90] sm:$0xff] %v2116_v54  ;;  %v2108_v53 = vadd.f32 %v2107_v41, %v1947_v7  ;;  %v2183_v61 = vadd.f32 %v2182_v8, %v2100_v15  ;;  %v2252_v32 = vadd.f32 %v2251_v19, %v2221_v37  ;;  %v1971_v15 = vadd.f32 %v2902_v34, %v4166_v39  ;;  %v4170_v7 = vld [vmem:[#allocation10_spill] sm:$0xff]  ;;  %v4173_v39 = vld [vmem:[#allocation9_spill] sm:$0xff] }
 0x1f0   : > { %v2989_v20 = vpop.f32.mrf.mxu0  ;;  %v2905_v35 = vadd.f32 %v2904_v10, %v2903_v26  ;;  %v2226_v6 = vmul.f32 %v2116_v54, %v2116_v54 }
 0x1f1   : > { %v2906_v28 = vpop.f32.mrf.mxu1  ;;  %2294 = vst [vmem:[%s4013_s27 + $0x80] sm:$0xff] %v2108_v53  ;;  %v2119_v40 = vadd.f32 %v2989_v20, %v1958_v21  ;;  %v2253_v9 = vadd.f32 %v2252_v32, %v2222_v17  ;;  %v2184_v1 = vadd.f32 %v2183_v61, %v2103_v25  ;;  %v2224_v4 = vmul.f32 %v2108_v53, %v2108_v53  ;;  %v4168_v25 = vld [vmem:[#allocation7_spill] sm:$0xff]  ;;  %v4171_v17 = vld [vmem:[#allocation8_spill] sm:$0xff] }
 0x1f2   : > { %v2110_v47 = vpop.f32.mrf.mxu0  ;;  %v1974_v52 = vadd.f32 %v2905_v35, %v4168_v25 }
 0x1f3   : > { %v2907_v30 = vpop.f32.mrf.mxu1  ;;  %2297 = vst [vmem:[%s4013_s27 + $0x98] sm:$0xff] %v2119_v40  ;;  %v2111_v49 = vadd.f32 %v2110_v47, %v1950_v58  ;;  %v2185_v50 = vadd.f32 %v2184_v1, %v2108_v53  ;;  %v2254_v51 = vadd.f32 %v2253_v9, %v2223_v38  ;;  %v2227_v44 = vmul.f32 %v2119_v40, %v2119_v40  ;;  %v4172_v58 = vld [vmem:[#allocation11_spill] sm:$0xff] }
 0x1f4   : > { %v2992_v45 = vpop.f32.mrf.mxu0  ;;  %v2908_v10 = vadd.f32 %v2907_v30, %v2906_v28 }
 0x1f5   : > { %v2909_v43 = vpop.f32.mrf.mxu1  ;;  %v2225_v11 = vmul.f32 %v2111_v49, %v2111_v49  ;;  %2295 = vst [vmem:[%s4013_s27 + $0x88] sm:$0xff] %v2111_v49  ;;  %v2132_v18 = vadd.f32 %v2992_v45, %v1971_v15  ;;  %v2255_v5 = vadd.f32 %v2254_v51, %v2224_v4  ;;  %v2186_v56 = vadd.f32 %v2185_v50, %v2111_v49 }
 0x1f6   : > { %v2123_v26 = vpop.f32.mrf.mxu0  ;;  %v1979_v61 = vadd.f32 %v2908_v10, %v4171_v17 }
 0x1f7   : > { %v2910_v55 = vpop.f32.mrf.mxu1  ;;  %2300 = vst [vmem:[%s4013_s27 + $0xb0] sm:$0xff] %v2132_v18  ;;  %v2124_v57 = vadd.f32 %v2123_v26, %v1963_v36  ;;  %v2187_v2 = vadd.f32 %v2186_v56, %v2116_v54  ;;  %v2256_v46 = vadd.f32 %v2255_v5, %v2225_v11  ;;  %v2230_v9 = vmul.f32 %v2132_v18, %v2132_v18  ;;  %v4174_v26 = vld [vmem:[#allocation12_spill] sm:$0xff] }
 0x1f8   : > { %v2993_v0 = vpop.f32.mrf.mxu0  ;;  %v2911_v34 = vadd.f32 %v2910_v55, %v2909_v43 }
 0x1f9   : > { %v2912_v42 = vpop.f32.mrf.mxu1  ;;  %2298 = vst [vmem:[%s4013_s27 + $0xa0] sm:$0xff] %v2124_v57  ;;  %v2135_v23 = vadd.f32 %v2993_v0, %v1974_v52  ;;  %v2257_v22 = vadd.f32 %v2256_v46, %v2226_v6  ;;  %v2188_v48 = vadd.f32 %v2187_v2, %v2119_v40  ;;  %v2228_v8 = vmul.f32 %v2124_v57, %v2124_v57 }
 0x1fa   : > { %v2126_v63 = vpop.f32.mrf.mxu0  ;;  %v1982_v15 = vadd.f32 %v2911_v34, %v4173_v39 }
 0x1fb   : > { %v2913_v29 = vpop.f32.mrf.mxu1  ;;  %2301 = vst [vmem:[%s4013_s27 + $0xb8] sm:$0xff] %v2135_v23  ;;  %v2127_v37 = vadd.f32 %v2126_v63, %v1966_v27  ;;  %v2189_v19 = vadd.f32 %v2188_v48, %v2124_v57  ;;  %v2258_v41 = vadd.f32 %v2257_v22, %v2227_v44  ;;  %v2231_v50 = vmul.f32 %v2135_v23, %v2135_v23  ;;  %v4175_v44 = vld [vmem:[#allocation13_spill] sm:$0xff] }
 0x1fc   : > { %v2914_v31 = vadd.f32 %v2913_v29, %v2912_v42  ;;  %v2996_v30 = vpop.f32.mrf.mxu0 }
 0x1fd   : > { %v2915_v16 = vpop.f32.mrf.mxu1  ;;  %v2229_v53 = vmul.f32 %v2127_v37, %v2127_v37  ;;  %2299 = vst [vmem:[%s4013_s27 + $0xa8] sm:$0xff] %v2127_v37  ;;  %v2259_v32 = vadd.f32 %v2258_v41, %v2228_v8  ;;  %v2190_v20 = vadd.f32 %v2189_v19, %v2127_v37 }
 0x1fe   : > { %v1987_v54 = vadd.f32 %v2914_v31, %v4170_v7  ;;  %v2139_v40 = vpop.f32.mrf.mxu0 }
 0x1ff   : > { %v2916_v62 = vpop.f32.mrf.mxu1  ;;  %v2140_v12 = vadd.f32 %v2139_v40, %v1979_v61  ;;  %v2191_v1 = vadd.f32 %v2190_v20, %v2132_v18  ;;  %v2260_v47 = vadd.f32 %v2259_v32, %v2229_v53 }
 0x200   : > { %v2917_v24 = vadd.f32 %v2916_v62, %v2915_v16  ;;  %v2148_v21 = vadd.f32 %v2996_v30, %v1987_v54  ;;  %v2997_v43 = vpop.f32.mrf.mxu0 }
 0x201   : > { %v2918_v28 = vpop.f32.mrf.mxu1  ;;  %2302 = vst [vmem:[%s4013_s27 + $0xc0] sm:$0xff] %v2140_v12  ;;  %v2261_v4 = vadd.f32 %v2260_v47, %v2230_v9  ;;  %v2192_v51 = vadd.f32 %v2191_v1, %v2135_v23  ;;  %v2232_v14 = vmul.f32 %v2140_v12, %v2140_v12 }
 0x202   : > { %2304 = vst [vmem:[%s4013_s27 + $0xd0] sm:$0xff] %v2148_v21  ;;  %v1990_v38 = vadd.f32 %v2917_v24, %v4172_v58  ;;  %v2142_v45 = vpop.f32.mrf.mxu0  ;;  %v2234_v16 = vmul.f32 %v2148_v21, %v2148_v21 }
 0x203   : > { %v2919_v3 = vpop.f32.mrf.mxu1  ;;  %v2143_v60 = vadd.f32 %v2142_v45, %v1982_v15  ;;  %v2193_v11 = vadd.f32 %v2192_v51, %v2140_v12  ;;  %v2262_v36 = vadd.f32 %v2261_v4, %v2231_v50 }
 0x204   : > { %v2920_v55 = vadd.f32 %v2919_v3, %v2918_v28  ;;  %v2151_v49 = vadd.f32 %v2997_v43, %v1990_v38  ;;  %v3000_v5 = vpop.f32.mrf.mxu0 }
 0x205   : > { %v2921_v35 = vpop.f32.mrf.mxu1  ;;  %v2233_v29 = vmul.f32 %v2143_v60, %v2143_v60  ;;  %2303 = vst [vmem:[%s4013_s27 + $0xc8] sm:$0xff] %v2143_v60  ;;  %v2263_v57 = vadd.f32 %v2262_v36, %v2232_v14  ;;  %v2194_v25 = vadd.f32 %v2193_v11, %v2143_v60 }
 0x206   : > { %2305 = vst [vmem:[%s4013_s27 + $0xd8] sm:$0xff] %v2151_v49  ;;  %v1995_v31 = vadd.f32 %v2920_v55, %v4174_v26  ;;  %v2155_v6 = vpop.f32.mrf.mxu0  ;;  %v2235_v48 = vmul.f32 %v2151_v49, %v2151_v49 }
 0x207   : > { %v2922_v42 = vpop.f32.mrf.mxu1  ;;  %v2195_v0 = vadd.f32 %v2194_v25, %v2148_v21  ;;  %v2264_v10 = vadd.f32 %v2263_v57, %v2233_v29 }
 0x208   : > { %v2923_v56 = vadd.f32 %v2922_v42, %v2921_v35  ;;  %v2156_v46 = vadd.f32 %v2155_v6, %v1995_v31  ;;  %v3001_v59 = vpop.f32.mrf.mxu0 }
 0x209   : > { %v2924_v18 = vpop.f32.mrf.mxu1  ;;  %v2265_v62 = vadd.f32 %v2264_v10, %v2234_v16  ;;  %v2196_v63 = vadd.f32 %v2195_v0, %v2151_v49 }
 0x20a   : > { %2306 = vst [vmem:[%s4013_s27 + $0xe0] sm:$0xff] %v2156_v46  ;;  %v1998_v22 = vadd.f32 %v2923_v56, %v4175_v44  ;;  %v2158_v37 = vpop.f32.mrf.mxu0  ;;  %v2236_v41 = vmul.f32 %v2156_v46, %v2156_v46 }
 0x20b   : > { %v2925_v52 = vpop.f32.mrf.mxu1  ;;  %v2197_v8 = vadd.f32 %v2196_v63, %v2156_v46  ;;  %v2266_v28 = vadd.f32 %v2265_v62, %v2235_v48 }
 0x20c   : > { %v2926_v2 = vadd.f32 %v2925_v52, %v2924_v18  ;;  %v2159_v19 = vadd.f32 %v2158_v37, %v1998_v22 }
 0x20d   : > { %v2927_v23 = vpop.f32.mrf.mxu1  ;;  %v2267_v34 = vadd.f32 %v2266_v28, %v2236_v41 }
 0x20e   : > { %v2003_v27 = vadd.f32 %v2926_v2, %v3999_v33  ;;  %v2237_v33 = vmul.f32 %v2159_v19, %v2159_v19  ;;  %2307 = vst [vmem:[%s4013_s27 + $0xe8] sm:$0xff] %v2159_v19  ;;  %v2198_v53 = vadd.f32 %v2197_v8, %v2159_v19 }
 0x20f   : > { %v2928_v24 = vpop.f32.mrf.mxu1 }
 0x210   : > { %v2164_v7 = vadd.f32 %v3000_v5, %v2003_v27  ;;  %v2929_v54 = vadd.f32 %v2928_v24, %v2927_v23  ;;  %v2268_v32 = vadd.f32 %v2267_v34, %v2237_v33 }
 0x212   : > { %2308 = vst [vmem:[%s4013_s27 + $0xf0] sm:$0xff] %v2164_v7  ;;  %v2006_v30 = vadd.f32 %v2929_v54, %v4018_v13  ;;  %v2238_v17 = vmul.f32 %v2164_v7, %v2164_v7  ;;  %v2199_v61 = vadd.f32 %v2198_v53, %v2164_v7 }
 0x214   : > { %v2167_v21 = vadd.f32 %v3001_v59, %v2006_v30  ;;  %v2269_v40 = vadd.f32 %v2268_v32, %v2238_v17 }
 0x216   : > { %v2239_v20 = vmul.f32 %v2167_v21, %v2167_v21  ;;  %2309 = vst [vmem:[%s4013_s27 + $0xf8] sm:$0xff] %v2167_v21  ;;  %v2200_v3 = vadd.f32 %v2199_v61, %v2167_v21 }
 0x218   : > { %v2201_v12 = vrot.slane %v2200_v3, 4  ;;  %v2270_v58 = vadd.f32 %v2269_v40, %v2239_v20 }
 0x21a   : > { %v2202_v38 = vadd.f32 %v2201_v12, %v2200_v3  ;;  %v2271_v9 = vrot.slane %v2270_v58, 4 }
 0x21c   : > { %v2203_v1 = vrot.slane %v2202_v38, 2  ;;  %v2272_v47 = vadd.f32 %v2271_v9, %v2270_v58 }
 0x21e   : > { %v2204_v13 = vadd.f32 %v2203_v1, %v2202_v38  ;;  %v2273_v35 = vrot.slane %v2272_v47, 2 }
 0x220   : > { %v2205_v43 = vrot.slane %v2204_v13, 1  ;;  %v2274_v55 = vadd.f32 %v2273_v35, %v2272_v47 }
 0x222   : > { %v2206_v49 = vadd.f32 %v2205_v43, %v2204_v13  ;;  %v2275_v39 = vrot.slane %v2274_v55, 1 }
 0x224   : > { %2207 = vst [vmem:[%s235_s30] sm:$0x1] %v2206_v49  ;;  %v2276_v15 = vadd.f32 %v2275_v39, %v2274_v55 }
 0x226   : > { %2277 = vst [vmem:[%s235_s30 + $0x1] sm:$0x1] %v2276_v15 }
 0x227 PF: > { %s16_s18 = sadd.s32 1, %s3106_s18  }
 0x228   : > { %p13_p4 = scmp.ge.s32.totalorder %s16_s18, 4  }
 0x22a   :  { %15 = sbr.rel (!%p13_p4) target bundleno = 1 (0x1), region = 80 }

// kernel: cnn_block_forward.4
= control target key start
LH: loop header
LB: loop body
LE: loop exit
PB: predicated region body
PF: predicated region fallthrough
CT: control target
= control target key end

     0   :  { %s3252_s18 = smov 0   ;;  %s4358_s0 = inlined_call_operand.vmem [shape: f32[2,16,16,128], index: 0, kind: input, shape index: {}]   ;;  %s4359_s1 = inlined_call_operand.vmem [shape: bf16[1152,128], index: 1, kind: input, shape index: {}]   ;;  %s4360_s2 = inlined_call_operand.vmem [shape: f32[1,128], index: 2, kind: input, shape index: {}]   ;;  %s4361_s3 = inlined_call_operand.vmem [shape: f32[1,128], index: 3, kind: input, shape index: {}]   ;;  %s4362_s4 = inlined_call_operand.vmem [shape: f32[2,16,16,128], index: 4, kind: output, shape index: {0}]   ;;  %s4363_s5 = inlined_call_operand.vmem [shape: f32[2,2,128], index: 5, kind: output, shape index: {1}]  }
   0x1 LB: > { %s2506_s19 = sadd.s32 4294967295, %s3218_s18   ;;  %p2510_p0 = scmp.ge.s32.totalorder %s3218_s18, 1  ;;  %s3218_s18 = sphi %s3252_s18, %s16_s18  }
   0x2   : > { %p190_p1 = scmp.lt.s32.totalorder %s3218_s18, 3 }
   0x4   : > { %p191_p2 = pnand %p2510_p0, %p190_p1 }
   0x6   : > { %194 = sbr.rel (%p191_p2) target bundleno = 551 (0x227), region = 36 }
   0xb   : > { %v3139_v0 = vld [vmem:[%s4359_s1 + $0x78] sm:$0xff]   ;;  %v3220_v2 = vmov 0.0   ;;  %v3141_v3 = vld [vmem:[%s4359_s1 + $0x70] sm:$0xff]   ;;  %p222_p3 = scmp.lt.s32.totalorder %s2506_s19, 1  ;;  %v3143_v5 = vld [vmem:[%s4359_s1 + $0x68] sm:$0xff]   ;;  %v3221_v63 = vmov 0.0|0.0  }
   0xc   : > { %v3140_v1 = vld [vmem:[%s4359_s1 + $0x38] sm:$0xff]   ;;  %379 = vst [vmem:[#allocation2] sm:$0xff] %v3220_v2  ;;  %380 = vst [vmem:[#allocation2 + $0x8] sm:$0xff] %v3220_v2  ;;  %2594 = vmatprep.subr.bf16.mxu0 %v3139_v0  ;;  %3114 = vmatprep.subr.bf16.mxu1 %v3139_v0  ;;  %v3142_v4 = vld [vmem:[%s4359_s1 + $0x30] sm:$0xff]  }
   0xd   : > { %381 = vst [vmem:[#allocation2 + $0x10] sm:$0x3] %v3220_v2  ;;  %382 = vst [vmem:[#allocation2 + $0x18] sm:$0xff] %v3220_v2  ;;  %2595 = vmatpush3.bf16.msra.mxu0 %v3140_v1  ;;  %3122 = vmatpush3.bf16.msra.mxu1 %v3140_v1  ;;  %s4387_s19 = smov (!%p222_p3, %s2506_s19), 1  ;;  %v3144_v6 = vld [vmem:[%s4359_s1 + $0x28] sm:$0xff]   ;;  %v3145_v7 = vld [vmem:[%s4359_s1 + $0x60] sm:$0xff]  }
   0xe   : > { %383 = vst [vmem:[#allocation2 + $0x20] sm:$0xff] %v3220_v2  ;;  %384 = vst [vmem:[#allocation2 + $0x28] sm:$0x3] %v3220_v2  ;;  %2596 = vmatprep.subr.bf16.mxu0 %v3141_v3  ;;  %3115 = vmatprep.subr.bf16.mxu1 %v3141_v3  ;;  %s2592_s9 = sshll.u32 %s4387_s19, 8  ;;  %v3146_v8 = vld [vmem:[%s4359_s1 + $0x20] sm:$0xff]   ;;  %v3147_v9 = vld [vmem:[%s4359_s1 + $0x58] sm:$0xff]  }
   0xf   : > { %385 = vst [vmem:[#allocation2 + $0x30] sm:$0xff] %v3220_v2  ;;  %386 = vst [vmem:[#allocation2 + $0x38] sm:$0xff] %v3220_v2  ;;  %s3299_s16 = scalar_lea.vmem %s4358_s0, %s2592_s9  ;;  %v3148_v10 = vld [vmem:[%s4359_s1 + $0x18] sm:$0xff]   ;;  %v3149_v11 = vld [vmem:[%s4359_s1 + $0x50] sm:$0xff]   ;;  %s4223_s24 = scalar_lea.vmem %s4362_s4, %s2592_s9 }
  0x10   : > { %387 = vst [vmem:[#allocation2 + $0x40] sm:$0x3] %v3220_v2  ;;  %388 = vst [vmem:[#allocation2 + $0x48] sm:$0xff] %v3220_v2  ;;  %v259_v14 = vld [vmem:[%s3299_s16 + $0xb0] sm:$0xff]  ;;  %v260_v16 = vld [vmem:[%s3299_s16 + $0xb8] sm:$0xff]  ;;  %s2515_s9 = sshll.u32 %s4387_s19, 1 }
  0x11   : > { %389 = vst [vmem:[#allocation2 + $0x50] sm:$0xff] %v3220_v2  ;;  %390 = vst [vmem:[#allocation2 + $0x58] sm:$0x3] %v3220_v2  ;;  %2597 = vmatpush3.bf16.msra.mxu0 %v3142_v4  ;;  %3123 = vmatpush3.bf16.msra.mxu1 %v3142_v4  ;;  %v3312_v17 = vld [vmem:[%s4360_s2] ss:$0 sm:$0xff]  ;;  %v3150_v21 = vld [vmem:[%s4359_s1 + $0x10] sm:$0xff]   ;;  %s235_s27 = scalar_lea.vmem %s4363_s5, %s2515_s9 }
  0x12   : > { %391 = vst [vmem:[#allocation2 + $0x60] sm:$0xff] %v3220_v2  ;;  %392 = vst [vmem:[#allocation2 + $0x68] sm:$0xff] %v3220_v2  ;;  %2598 = vmatprep.subr.bf16.mxu0 %v3143_v5  ;;  %3116 = vmatprep.subr.bf16.mxu1 %v3143_v5  ;;  %v3317_v18 = vld [vmem:[%s4361_s3] ss:$0 sm:$0xff]  ;;  %v298_v19 = vmul.f32 %v3312_v17, %v259_v14  ;;  %v299_v20 = vmul.f32 %v3312_v17, %v260_v16  ;;  %v3151_v22 = vld [vmem:[%s4359_s1 + $0x48] sm:$0xff]  }
  0x13   : > { %393 = vst [vmem:[#allocation2 + $0x70] sm:$0x3] %v3220_v2  ;;  %394 = vst [vmem:[#allocation2 + $0x78] sm:$0xff] %v3220_v2  ;;  %v514_v12 = vld [vmem:[#allocation2 + $0x1] sm:$0xff]  ;;  %v3155_v39 = vld [vmem:[%s4359_s1 + $0xf8] sm:$0xff]  }
  0x14   : > { %395 = vst [vmem:[#allocation2 + $0x80] sm:$0xff] %v3220_v2  ;;  %396 = vst [vmem:[#allocation2 + $0x88] sm:$0x3] %v3220_v2  ;;  %v515_v13 = vld [vmem:[#allocation2 + $0x9] sm:$0xff]  ;;  %v337_v23 = vadd.f32 %v3317_v18, %v298_v19  ;;  %v338_v24 = vadd.f32 %v3317_v18, %v299_v20  ;;  %v3153_v28 = vld [vmem:[%s4359_s1 + $0x40] sm:$0xff]  }
  0x15   : > { %397 = vst [vmem:[#allocation2 + $0x90] sm:$0xff] %v3220_v2  ;;  %398 = vst [vmem:[#allocation2 + $0x98] sm:$0xff] %v3220_v2  ;;  %2599 = vmatpush3.bf16.msra.mxu0 %v3144_v6  ;;  %3124 = vmatpush3.bf16.msra.mxu1 %v3144_v6  ;;  %v546_v15 = vpack.c.bf16 %v515_v13, %v514_v12  ;;  %v3152_v27 = vld [vmem:[%s4359_s1 + $0x8] sm:$0xff]   ;;  %v237_v30 = vld [vmem:[%s3299_s16] sm:$0xff] }
  0x16   : > { %399 = vst [vmem:[#allocation2 + $0xa0] sm:$0x3] %v3220_v2  ;;  %400 = vst [vmem:[#allocation2 + $0xa8] sm:$0xff] %v3220_v2  ;;  %2600 = vmatprep.subr.bf16.mxu0 %v3145_v7  ;;  %3117 = vmatprep.subr.bf16.mxu1 %v3145_v7  ;;  %v369_v25 = vmax.f32 %v337_v23, 0.0  ;;  %v370_v26 = vmax.f32 %v338_v24, 0.0  ;;  %v238_v31 = vld [vmem:[%s3299_s16 + $0x8] sm:$0xff]  ;;  %v276_v32 = vmul.f32 %v3312_v17, %v237_v30 }
  0x17   : > { %401 = vst [vmem:[#allocation2 + $0xb0] sm:$0xff] %v3220_v2  ;;  %402 = vst [vmem:[#allocation2 + $0xb8] sm:$0x3] %v3220_v2  ;;  %1507 = vmatprep.mubr.bf16.mxu0 %v546_v15  ;;  %v277_v33 = vmul.f32 %v3312_v17, %v238_v31  ;;  %v261_v34 = vld [vmem:[%s3299_s16 + $0xc0] sm:$0xff]  ;;  %v262_v35 = vld [vmem:[%s3299_s16 + $0xc8] sm:$0xff] }
  0x18   : > { %403 = vst [vmem:[#allocation2 + $0xc0] sm:$0xff] %v3220_v2  ;;  %404 = vst [vmem:[#allocation2 + $0xc8] sm:$0xff] %v3220_v2  ;;  %v558_v29 = vpack.c.bf16 %v370_v26, %v369_v25  ;;  %v3154_v36 = vld [vmem:[%s4359_s1] sm:$0xff]   ;;  %v300_v37 = vmul.f32 %v3312_v17, %v261_v34  ;;  %v301_v38 = vmul.f32 %v3312_v17, %v262_v35  ;;  %v3156_v42 = vld [vmem:[%s4359_s1 + $0x178] sm:$0xff]  }
  0x19   : > { %405 = vst [vmem:[#allocation2 + $0xd0] sm:$0x3] %v3220_v2  ;;  %406 = vst [vmem:[#allocation2 + $0xd8] sm:$0xff] %v3220_v2  ;;  %2601 = vmatpush3.bf16.msra.mxu0 %v3146_v8  ;;  %3125 = vmatpush3.bf16.msra.mxu1 %v3146_v8  ;;  %v315_v40 = vadd.f32 %v3317_v18, %v276_v32  ;;  %v316_v41 = vadd.f32 %v3317_v18, %v277_v33  ;;  %v3157_v45 = vld [vmem:[%s4359_s1 + $0xb8] sm:$0xff]   ;;  %v3159_v49 = vld [vmem:[%s4359_s1 + $0xf0] sm:$0xff]  }
  0x1a   : > { %407 = vst [vmem:[#allocation2 + $0xe0] sm:$0xff] %v3220_v2  ;;  %408 = vst [vmem:[#allocation2 + $0xe8] sm:$0x3] %v3220_v2  ;;  %2602 = vmatprep.subr.bf16.mxu0 %v3147_v9  ;;  %3118 = vmatprep.subr.bf16.mxu1 %v3147_v9  ;;  %v339_v43 = vadd.f32 %v3317_v18, %v300_v37  ;;  %v340_v44 = vadd.f32 %v3317_v18, %v301_v38  ;;  %v3158_v46 = vld [vmem:[%s4359_s1 + $0x138] sm:$0xff]   ;;  %v3164_v56 = vld [vmem:[%s4359_s1 + $0x170] sm:$0xff]  }
  0x1b   : > { %409 = vst [vmem:[#allocation2 + $0xf0] sm:$0xff] %v3220_v2  ;;  %410 = vst [vmem:[#allocation2 + $0xf8] sm:$0xff] %v3220_v2  ;;  %1603 = vmatprep.mubr.bf16.mxu1 %v558_v29  ;;  %v347_v47 = vmax.f32 %v315_v40, 0.0  ;;  %v348_v48 = vmax.f32 %v316_v41, 0.0  ;;  %v239_v57 = vld [vmem:[%s3299_s16 + $0x10] sm:$0xff]  ;;  %v240_v59 = vld [vmem:[%s3299_s16 + $0x18] sm:$0xff] }
  0x1c   : > { %411 = vst [vmem:[#allocation2 + $0x100] sm:$0x3] %v3220_v2  ;;  %412 = vst [vmem:[#allocation2 + $0x108] sm:$0xff] %v3220_v2  ;;  %v371_v50 = vmax.f32 %v339_v43, 0.0  ;;  %v372_v51 = vmax.f32 %v340_v44, 0.0  ;;  %v278_v60 = vmul.f32 %v3312_v17, %v239_v57  ;;  %v263_v61 = vld [vmem:[%s3299_s16 + $0xd0] sm:$0xff]  ;;  %v279_v1 = vmul.f32 %v3312_v17, %v240_v59 }
  0x1d   : > { %413 = vst [vmem:[#allocation2 + $0x110] sm:$0xff] %v3220_v2  ;;  %414 = vst [vmem:[#allocation2 + $0x118] sm:$0x3] %v3220_v2  ;;  %2603 = vmatpush3.bf16.msra.mxu0 %v3148_v10  ;;  %3126 = vmatpush3.bf16.msra.mxu1 %v3148_v10  ;;  %v3365_v55 = vpack.c.bf16 %v348_v48, %v347_v47  ;;  %v264_v62 = vld [vmem:[%s3299_s16 + $0xd8] sm:$0xff]  ;;  %v3160_v0 = vld [vmem:[%s4359_s1 + $0xb0] sm:$0xff]  }
  0x1e   : > { %415 = vst [vmem:[#allocation2 + $0x120] sm:$0xff] %v3220_v2  ;;  %416 = vst [vmem:[#allocation2 + $0x128] sm:$0xff] %v3220_v2  ;;  %2604 = vmatprep.subr.bf16.mxu0 %v3149_v11  ;;  %3119 = vmatprep.subr.bf16.mxu1 %v3149_v11  ;;  %v559_v58 = vpack.c.bf16 %v372_v51, %v371_v50  ;;  %v303_v3 = vmul.f32 %v3312_v17, %v264_v62  ;;  %v3166_v4 = vld [vmem:[%s4359_s1 + $0x130] sm:$0xff]   ;;  %v3161_v6 = vld [vmem:[%s4359_s1 + $0xe8] sm:$0xff]  }
  0x1f   : > { %417 = vst [vmem:[#allocation2 + $0x130] sm:$0x3] %v3220_v2  ;;  %418 = vst [vmem:[#allocation2 + $0x138] sm:$0xff] %v3220_v2  ;;  %v317_v5 = vadd.f32 %v3317_v18, %v278_v60  ;;  %v318_v7 = vadd.f32 %v3317_v18, %v279_v1  ;;  %v3162_v10 = vld [vmem:[%s4359_s1 + $0xa8] sm:$0xff]   ;;  %v3163_v14 = vld [vmem:[%s4359_s1 + $0xe0] sm:$0xff]  }
  0x20   : > { %419 = vst [vmem:[#allocation2 + $0x140] sm:$0xff] %v3220_v2  ;;  %420 = vst [vmem:[#allocation2 + $0x148] sm:$0x3] %v3220_v2  ;;  %v342_v9 = vadd.f32 %v3317_v18, %v303_v3  ;;  %v241_v20 = vld [vmem:[%s3299_s16 + $0x20] sm:$0xff]  ;;  %v242_v24 = vld [vmem:[%s3299_s16 + $0x28] sm:$0xff] }
  0x21   : > { %421 = vst [vmem:[#allocation2 + $0x150] sm:$0xff] %v3220_v2  ;;  %422 = vst [vmem:[#allocation2 + $0x158] sm:$0xff] %v3220_v2  ;;  %2605 = vmatpush3.bf16.msra.mxu0 %v3150_v21  ;;  %3127 = vmatpush3.bf16.msra.mxu1 %v3150_v21  ;;  %v349_v11 = vmax.f32 %v317_v5, 0.0  ;;  %v350_v15 = vmax.f32 %v318_v7, 0.0  ;;  %v281_v29 = vmul.f32 %v3312_v17, %v242_v24  ;;  %v265_v30 = vld [vmem:[%s3299_s16 + $0xe0] sm:$0xff]  ;;  %v266_v31 = vld [vmem:[%s3299_s16 + $0xe8] sm:$0xff] }
  0x22   : > { %423 = vst [vmem:[#allocation2 + $0x160] sm:$0x3] %v3220_v2  ;;  %424 = vst [vmem:[#allocation2 + $0x168] sm:$0xff] %v3220_v2  ;;  %2606 = vmatprep.subr.bf16.mxu0 %v3151_v22  ;;  %3120 = vmatprep.subr.bf16.mxu1 %v3151_v22  ;;  %v374_v19 = vmax.f32 %v342_v9, 0.0  ;;  %v3165_v32 = vld [vmem:[%s4359_s1 + $0xa0] sm:$0xff]   ;;  %v304_v34 = vmul.f32 %v3312_v17, %v265_v30  ;;  %v305_v35 = vmul.f32 %v3312_v17, %v266_v31  ;;  %v3172_v37 = vld [vmem:[%s4359_s1 + $0x168] sm:$0xff]  }
  0x23   : > { %425 = vst [vmem:[#allocation2 + $0x170] sm:$0xff] %v3220_v2  ;;  %426 = vst [vmem:[#allocation2 + $0x178] sm:$0x3] %v3220_v2  ;;  %v3167_v38 = vld [vmem:[%s4359_s1 + $0xd8] sm:$0xff]   ;;  %v3174_v43 = vld [vmem:[%s4359_s1 + $0x128] sm:$0xff]  }
  0x24   : > { %427 = vst [vmem:[#allocation2 + $0x180] sm:$0xff] %v3220_v2  ;;  %428 = vst [vmem:[#allocation2 + $0x188] sm:$0xff] %v3220_v2  ;;  %v343_v40 = vadd.f32 %v3317_v18, %v304_v34  ;;  %v344_v41 = vadd.f32 %v3317_v18, %v305_v35  ;;  %v3168_v44 = vld [vmem:[%s4359_s1 + $0x98] sm:$0xff]   ;;  %v243_v57 = vld [vmem:[%s3299_s16 + $0x30] sm:$0xff] }
  0x25   : > { %429 = vst [vmem:[#allocation2 + $0x190] sm:$0x3] %v3220_v2  ;;  %430 = vst [vmem:[#allocation2 + $0x198] sm:$0xff] %v3220_v2  ;;  %2607 = vmatpush3.bf16.msra.mxu0 %v3152_v27  ;;  %3128 = vmatpush3.bf16.msra.mxu1 %v3152_v27  ;;  %v3405_v27 = vpack.c.bf16 %v350_v15, %v349_v11  ;;  %v282_v59 = vmul.f32 %v3312_v17, %v243_v57  ;;  %v3171_v62 = vld [vmem:[%s4359_s1 + $0xc8] sm:$0xff]  }
  0x26   : > { %431 = vst [vmem:[#allocation2 + $0x1a0] sm:$0xff] %v3220_v2  ;;  %432 = vst [vmem:[#allocation2 + $0x1a8] sm:$0x3] %v3220_v2  ;;  %2608 = vmatprep.subr.bf16.mxu0 %v3153_v28  ;;  %3121 = vmatprep.subr.bf16.mxu1 %v3153_v28  ;;  %v302_v2 = vmul.f32 %v3312_v17, %v263_v61  ;;  %v3170_v61 = vld [vmem:[%s4359_s1 + $0x90] sm:$0xff]   ;;  %v562_v24 = vld [vmem:[#allocation2 + $0x2] sm:$0xff] }
  0x27   : > { %456 = vst [vmem:[#allocation2 + $0x121] sm:$0xff] %v369_v25  ;;  %457 = vst [vmem:[#allocation2 + $0x129] sm:$0xff] %v370_v26  ;;  %v280_v25 = vmul.f32 %v3312_v17, %v241_v20  ;;  %v247_v20 = vld [vmem:[%s3299_s16 + $0x50] sm:$0xff] }
  0x28   : > { %434 = vst [vmem:[#allocation2 + $0x19] sm:$0xff] %v347_v47  ;;  %435 = vst [vmem:[#allocation2 + $0x21] sm:$0xff] %v348_v48  ;;  %v341_v8 = vadd.f32 %v3317_v18, %v302_v2  ;;  %v3179_v2 = vld [vmem:[%s4359_s1 + $0x160] sm:$0xff]  }
  0x29   : > { %2609 = vmatpush3.bf16.msra.mxu0 %v3154_v36  ;;  %3129 = vmatpush3.bf16.msra.mxu1 %v3154_v36  ;;  %458 = vst [vmem:[#allocation2 + $0x139] sm:$0xff] %v371_v50  ;;  %459 = vst [vmem:[#allocation2 + $0x141] sm:$0xff] %v372_v51  ;;  %v319_v33 = vadd.f32 %v3317_v18, %v280_v25  ;;  %v320_v36 = vadd.f32 %v3317_v18, %v281_v29  ;;  %v563_v25 = vld [vmem:[#allocation2 + $0xa] sm:$0xff] }
  0x2a   : > { %2706 = vmatprep.subr.bf16.mxu1 %v3155_v39  ;;  %2818 = vmatprep.subr.bf16.mxu0 %v3156_v42  ;;  %v373_v16 = vmax.f32 %v341_v8, 0.0  ;;  %436 = vst [vmem:[#allocation2 + $0x31] sm:$0xff] %v349_v11  ;;  %437 = vst [vmem:[#allocation2 + $0x39] sm:$0xff] %v350_v15  ;;  %v286_v29 = vmul.f32 %v3312_v17, %v247_v20 }
  0x2b   : > { %461 = vst [vmem:[#allocation2 + $0x159] sm:$0xff] %v374_v19  ;;  %v351_v39 = vmax.f32 %v319_v33, 0.0  ;;  %v352_v42 = vmax.f32 %v320_v36, 0.0  ;;  %v3177_v33 = vld [vmem:[%s4359_s1 + $0x1f8] sm:$0xff]  }
  0x2c   : > { %1508 = vmatmul.mubr.bf16.vlgmr.msra.gmra.mxu0 %v3221_v63  ;;  %460 = vst [vmem:[#allocation2 + $0x151] sm:$0xff] %v373_v16  ;;  %v560_v28 = vpack.c.bf16 %v374_v19, %v373_v16  ;;  %v321_v63 = vadd.f32 %v3317_v18, %v282_v59  ;;  %v3175_v16 = vld [vmem:[%s4359_s1 + $0xc0] sm:$0xff]   ;;  %v3499_v35 = vadd.f32 %v3317_v18, %v286_v29  ;;  %v251_v59 = vld [vmem:[%s3299_s16 + $0x70] sm:$0xff]  ;;  %v3190_v29 = vld [vmem:[%s4359_s1 + $0x108] sm:$0xff]  }
  0x2d   : > { %2819 = vmatpush3.bf16.msra.mxu0 %v3158_v46  ;;  %1515 = vmatprep.mubr.bf16.mxu0 %v3365_v55  ;;  %438 = vst [vmem:[#allocation2 + $0x49] sm:$0xff] %v351_v39  ;;  %v376_v46 = vmax.f32 %v344_v41, 0.0  ;;  %439 = vst [vmem:[#allocation2 + $0x51] sm:$0xff] %v352_v42  ;;  %v3434_v51 = vpack.c.bf16 %v352_v42, %v351_v39  ;;  %v249_v41 = vld [vmem:[%s3299_s16 + $0x60] sm:$0xff]  ;;  %v250_v42 = vld [vmem:[%s3299_s16 + $0x68] sm:$0xff] }
  0x2e   : > { %v490_v52 = vld [vmem:[#allocation2 + $0x120] sm:$0xff]  ;;  %v491_v53 = vld [vmem:[#allocation2 + $0x128] sm:$0xff]  ;;  %2820 = vmatprep.subr.bf16.mxu0 %v3164_v56  ;;  %v357_v39 = vmax.f32 %v3499_v35, 0.0 }
  0x2f   : > { %v510_v54 = vpack.c.bf16 %v491_v53, %v490_v52  ;;  %v468_v12 = vld [vmem:[#allocation2 + $0x18] sm:$0xff]  ;;  %v469_v13 = vld [vmem:[#allocation2 + $0x20] sm:$0xff]  ;;  %463 = vst [vmem:[#allocation2 + $0x171] sm:$0xff] %v376_v46 }
  0x30   : > { %v3399_v21 = vpack.c.bf16 %v469_v13, %v468_v12  ;;  %v492_v22 = vld [vmem:[#allocation2 + $0x138] sm:$0xff]  ;;  %v493_v23 = vld [vmem:[#allocation2 + $0x140] sm:$0xff]  ;;  %v3173_v12 = vld [vmem:[%s4359_s1 + $0x88] sm:$0xff]   ;;  %444 = vst [vmem:[#allocation2 + $0x91] sm:$0xff] %v357_v39 }
  0x31   : > { %1604 = vmatmul.mubr.bf16.vlgmr.msra.gmra.mxu1 %v510_v54  ;;  %2821 = vmatpush3.bf16.msra.mxu0 %v3166_v4  ;;  %v3403_v26 = vpack.c.bf16 %v493_v23, %v492_v22  ;;  %v470_v47 = vld [vmem:[#allocation2 + $0x30] sm:$0xff]  ;;  %v471_v48 = vld [vmem:[#allocation2 + $0x38] sm:$0xff]  ;;  %v353_v4 = vmax.f32 %v321_v63, 0.0  ;;  %v3176_v23 = vld [vmem:[%s4359_s1 + $0x80] sm:$0xff]  }
  0x32   : > { %2707 = vmatpush3.bf16.msra.mxu1 %v3157_v45  ;;  %1611 = vmatprep.mubr.bf16.mxu1 %v559_v58  ;;  %v375_v45 = vmax.f32 %v343_v40, 0.0  ;;  %v3436_v52 = vpack.c.bf16 %v471_v48, %v470_v47  ;;  %v3169_v54 = vld [vmem:[%s4359_s1 + $0xd0] sm:$0xff]   ;;  %v244_v58 = vld [vmem:[%s3299_s16 + $0x38] sm:$0xff] }
  0x33   : > { %2708 = vmatprep.subr.bf16.mxu1 %v3159_v49  ;;  %2822 = vmatprep.subr.bf16.mxu0 %v3172_v37  ;;  %v494_v49 = vld [vmem:[#allocation2 + $0x150] sm:$0xff]  ;;  %v495_v50 = vld [vmem:[#allocation2 + $0x158] sm:$0xff]  ;;  %v283_v60 = vmul.f32 %v3312_v17, %v244_v58  ;;  %440 = vst [vmem:[#allocation2 + $0x61] sm:$0xff] %v353_v4 }
  0x34   : > { %1516 = vmatmul.mubr.bf16.gmra.mxu0 %v3399_v21  ;;  %462 = vst [vmem:[#allocation2 + $0x169] sm:$0xff] %v375_v45  ;;  %v3438_v53 = vpack.c.bf16 %v495_v50, %v494_v49  ;;  %v561_v56 = vpack.c.bf16 %v376_v46, %v375_v45  ;;  %v472_v1 = vld [vmem:[#allocation2 + $0x48] sm:$0xff]  ;;  %v473_v3 = vld [vmem:[#allocation2 + $0x50] sm:$0xff]  ;;  %v248_v22 = vld [vmem:[%s3299_s16 + $0x58] sm:$0xff]  ;;  %v594_v45 = vpack.c.bf16 %v563_v25, %v562_v24 }
  0x35   : > { %1523 = vmatprep.mubr.bf16.mxu0 %v3405_v27  ;;  %2823 = vmatpush3.bf16.msra.mxu0 %v3174_v43  ;;  %v3464_v7 = vpack.c.bf16 %v473_v3, %v472_v1  ;;  %v287_v30 = vmul.f32 %v3312_v17, %v248_v22  ;;  %v289_v46 = vmul.f32 %v3312_v17, %v250_v42  ;;  %v3178_v48 = vld [vmem:[%s4359_s1 + $0x1b8] sm:$0xff]   ;;  %v3185_v58 = vld [vmem:[%s4359_s1 + $0x150] sm:$0xff]   ;;  %v3188_v22 = vld [vmem:[%s4359_s1 + $0x1a8] sm:$0xff]  }
  0x36   : > { %2709 = vmatpush3.bf16.msra.mxu1 %v3160_v0  ;;  %v322_v0 = vadd.f32 %v3317_v18, %v283_v60  ;;  %2824 = vmatprep.subr.bf16.mxu0 %v3179_v2  ;;  %v564_v50 = vld [vmem:[#allocation2 + $0x1a] sm:$0xff]  ;;  %v290_v1 = vmul.f32 %v3312_v17, %v251_v59  ;;  %v3184_v3 = vld [vmem:[%s4359_s1 + $0x1b0] sm:$0xff]   ;;  %v3189_v25 = vld [vmem:[%s4359_s1 + $0x148] sm:$0xff]  }
  0x37   : > { %2710 = vmatprep.subr.bf16.mxu1 %v3161_v6  ;;  %v3180_v6 = vld [vmem:[%s4359_s1 + $0x120] sm:$0xff]   ;;  %v326_v36 = vadd.f32 %v3317_v18, %v287_v30  ;;  %v3525_v57 = vadd.f32 %v3317_v18, %v289_v46  ;;  %v252_v60 = vld [vmem:[%s3299_s16 + $0x78] sm:$0xff]  ;;  %v255_v30 = vld [vmem:[%s3299_s16 + $0x90] sm:$0xff] }
  0x38   : > { %v354_v5 = vmax.f32 %v322_v0, 0.0  ;;  %v3186_v0 = vld [vmem:[%s4359_s1 + $0x110] sm:$0xff]   ;;  %v291_v2 = vmul.f32 %v3312_v17, %v252_v60  ;;  %v294_v35 = vmul.f32 %v3312_v17, %v255_v30  ;;  %v3191_v42 = vld [vmem:[%s4359_s1 + $0x1e0] sm:$0xff]  }
  0x39   : > { %1612 = vmatmul.mubr.bf16.gmra.mxu1 %v3403_v26  ;;  %2825 = vmatpush3.bf16.msra.mxu0 %v3180_v6  ;;  %v358_v40 = vmax.f32 %v326_v36, 0.0  ;;  %v360_v63 = vmax.f32 %v3525_v57, 0.0  ;;  %v3193_v46 = vld [vmem:[%s4359_s1 + $0x140] sm:$0xff]   ;;  %v568_v60 = vld [vmem:[#allocation2 + $0x4a] sm:$0xff] }
  0x3a   : > { %2711 = vmatpush3.bf16.msra.mxu1 %v3162_v10  ;;  %1619 = vmatprep.mubr.bf16.mxu1 %v560_v28  ;;  %v245_v10 = vld [vmem:[%s3299_s16 + $0x40] sm:$0xff]  ;;  %441 = vst [vmem:[#allocation2 + $0x69] sm:$0xff] %v354_v5  ;;  %v3472_v13 = vpack.c.bf16 %v354_v5, %v353_v4  ;;  %v3550_v5 = vadd.f32 %v3317_v18, %v290_v1 }
  0x3b   : > { %2712 = vmatprep.subr.bf16.mxu1 %v3163_v14  ;;  %v496_v8 = vld [vmem:[#allocation2 + $0x168] sm:$0xff]  ;;  %v497_v9 = vld [vmem:[#allocation2 + $0x170] sm:$0xff]  ;;  %v284_v15 = vmul.f32 %v3312_v17, %v245_v10  ;;  %v474_v43 = vld [vmem:[#allocation2 + $0x60] sm:$0xff]  ;;  %445 = vst [vmem:[#allocation2 + $0x99] sm:$0xff] %v358_v40  ;;  %v3553_v6 = vadd.f32 %v3317_v18, %v291_v2  ;;  %v3567_v20 = vpack.c.bf16 %v358_v40, %v357_v39 }
  0x3c   : > { %1524 = vmatmul.mubr.bf16.gmra.mxu0 %v3436_v52  ;;  %v3467_v11 = vpack.c.bf16 %v497_v9, %v496_v8  ;;  %v246_v14 = vld [vmem:[%s3299_s16 + $0x48] sm:$0xff]  ;;  %447 = vst [vmem:[#allocation2 + $0xb1] sm:$0xff] %v360_v63  ;;  %v253_v10 = vld [vmem:[%s3299_s16 + $0x80] sm:$0xff]  ;;  %v3602_v40 = vadd.f32 %v3317_v18, %v294_v35  ;;  %v3657_v2 = vld [vmem:[%s4359_s1 + $0x238] sm:$0xff]  }
  0x3d   : > { %1531 = vmatprep.mubr.bf16.mxu0 %v3434_v51  ;;  %v285_v19 = vmul.f32 %v3312_v17, %v246_v14  ;;  %v323_v28 = vadd.f32 %v3317_v18, %v284_v15  ;;  %v3187_v8 = vld [vmem:[%s4359_s1 + $0x1e8] sm:$0xff]   ;;  %v361_v15 = vmax.f32 %v3550_v5, 0.0 }
  0x3e   : > { %2713 = vmatpush3.bf16.msra.mxu1 %v3165_v32  ;;  %v3181_v32 = vld [vmem:[%s4359_s1 + $0x158] sm:$0xff]  }
  0x3f   : > { %2714 = vmatprep.subr.bf16.mxu1 %v3167_v38  ;;  %v324_v31 = vadd.f32 %v3317_v18, %v285_v19  ;;  %v355_v34 = vmax.f32 %v323_v28, 0.0  ;;  %v3183_v38 = vld [vmem:[%s4359_s1 + $0x118] sm:$0xff]   ;;  %2826 = vmatprep.subr.bf16.mxu0 %v3181_v32  ;;  %v292_v19 = vmul.f32 %v3312_v17, %v253_v10  ;;  %448 = vst [vmem:[#allocation2 + $0xc1] sm:$0xff] %v361_v15 }
  0x40   : > { %2827 = vmatpush3.bf16.msra.mxu0 %v3183_v38  ;;  %v566_v32 = vld [vmem:[#allocation2 + $0x32] sm:$0xff] }
  0x41   : > { %1620 = vmatmul.mubr.bf16.gmra.mxu1 %v3438_v53  ;;  %v356_v37 = vmax.f32 %v324_v31, 0.0  ;;  %442 = vst [vmem:[#allocation2 + $0x79] sm:$0xff] %v355_v34  ;;  %2828 = vmatprep.subr.bf16.mxu0 %v3185_v58  ;;  %v3578_v24 = vadd.f32 %v3317_v18, %v292_v19  ;;  %v256_v31 = vld [vmem:[%s3299_s16 + $0x98] sm:$0xff]  ;;  %v258_v58 = vld [vmem:[%s3299_s16 + $0xa8] sm:$0xff]  ;;  %v3198_v19 = vld [vmem:[%s4359_s1 + $0x1d0] sm:$0xff]  }
  0x42   : > { %2715 = vmatpush3.bf16.msra.mxu1 %v3168_v44  ;;  %1627 = vmatprep.mubr.bf16.mxu1 %v561_v56  ;;  %v475_v44 = vld [vmem:[#allocation2 + $0x68] sm:$0xff]  ;;  %v295_v36 = vmul.f32 %v3312_v17, %v256_v31  ;;  %v479_v38 = vld [vmem:[#allocation2 + $0x98] sm:$0xff]  ;;  %v297_v57 = vmul.f32 %v3312_v17, %v258_v58 }
  0x43   : > { %2716 = vmatprep.subr.bf16.mxu1 %v3169_v54  ;;  %443 = vst [vmem:[#allocation2 + $0x81] sm:$0xff] %v356_v37  ;;  %v3511_v47 = vpack.c.bf16 %v475_v44, %v474_v43  ;;  %v3516_v49 = vpack.c.bf16 %v356_v37, %v355_v34  ;;  %v3182_v54 = vld [vmem:[%s4359_s1 + $0x1f0] sm:$0xff]   ;;  %v363_v34 = vmax.f32 %v3578_v24, 0.0  ;;  %v570_v5 = vld [vmem:[#allocation2 + $0x62] sm:$0xff] }
  0x44   : > { %1532 = vmatmul.mubr.bf16.gmra.mxu0 %v3464_v7  ;;  %v478_v37 = vld [vmem:[#allocation2 + $0x90] sm:$0xff]  ;;  %v3652_v1 = vadd.f32 %v3317_v18, %v297_v57  ;;  %v3203_v31 = vld [vmem:[%s4359_s1 + $0x188] sm:$0xff]   ;;  %v3204_v24 = vld [vmem:[%s4359_s1 + $0x1c0] sm:$0xff]  }
  0x45   : > { %1539 = vmatprep.mubr.bf16.mxu0 %v3472_v13  ;;  %2829 = vmatpush3.bf16.msra.mxu0 %v3186_v0  ;;  %450 = vst [vmem:[#allocation2 + $0xd9] sm:$0xff] %v363_v34  ;;  %v3615_v43 = vpack.c.bf16 %v479_v38, %v478_v37  ;;  %v268_v37 = vld [vmem:[%s3299_s16 + $0xf8] sm:$0xff] }
  0x46   : > { %2717 = vmatpush3.bf16.msra.mxu1 %v3170_v61  ;;  %v565_v61 = vld [vmem:[#allocation2 + $0x22] sm:$0xff]  ;;  %2830 = vmatprep.subr.bf16.mxu0 %v3189_v25 }
  0x47   : > { %2718 = vmatprep.subr.bf16.mxu1 %v3171_v62 }
  0x48   : > { %v476_v4 = vld [vmem:[#allocation2 + $0x78] sm:$0xff] }
  0x49   : > { %1628 = vmatmul.mubr.bf16.gmra.mxu1 %v3467_v11  ;;  %2831 = vmatpush3.bf16.msra.mxu0 %v3190_v29 }
  0x4a   : > { %2719 = vmatpush3.bf16.msra.mxu1 %v3173_v12  ;;  %1668 = vmatprep.mubr.bf16.mxu1 %v3399_v21  ;;  %v288_v21 = vmul.f32 %v3312_v17, %v249_v41  ;;  %v477_v9 = vld [vmem:[#allocation2 + $0x80] sm:$0xff]  ;;  %v254_v12 = vld [vmem:[%s3299_s16 + $0x88] sm:$0xff]  ;;  %v3605_v41 = vadd.f32 %v3317_v18, %v295_v36  ;;  %v267_v36 = vld [vmem:[%s3299_s16 + $0xf0] sm:$0xff] }
  0x4b   : > { %2720 = vmatprep.subr.bf16.mxu1 %v3175_v16  ;;  %v3562_v14 = vpack.c.bf16 %v477_v9, %v476_v4  ;;  %v362_v16 = vmax.f32 %v3553_v6, 0.0  ;;  %2832 = vmatprep.subr.bf16.mxu0 %v3193_v46  ;;  %v368_v4 = vmax.f32 %v3652_v1, 0.0  ;;  %v3200_v6 = vld [vmem:[%s4359_s1 + $0x190] sm:$0xff]   ;;  %v573_v35 = vld [vmem:[#allocation2 + $0x82] sm:$0xff]  ;;  %v306_v38 = vmul.f32 %v3312_v17, %v267_v36  ;;  %v588_v36 = vld [vmem:[#allocation2 + $0x13a] sm:$0xff] }
  0x4c   : > { %v3522_v56 = vadd.f32 %v3317_v18, %v288_v21  ;;  %1540 = vmatmul.mubr.bf16.gmra.mxu0 %v3511_v47  ;;  %v366_v21 = vmax.f32 %v3605_v41, 0.0  ;;  %v575_v41 = vld [vmem:[#allocation2 + $0x9a] sm:$0xff] }
  0x4d   : > { %1547 = vmatprep.mubr.bf16.mxu0 %v3516_v49  ;;  %449 = vst [vmem:[#allocation2 + $0xc9] sm:$0xff] %v362_v16  ;;  %455 = vst [vmem:[#allocation2 + $0x111] sm:$0xff] %v368_v4 }
  0x4e   : > { %2721 = vmatpush3.bf16.msra.mxu1 %v3176_v23  ;;  %v359_v62 = vmax.f32 %v3522_v56, 0.0  ;;  %v293_v23 = vmul.f32 %v3312_v17, %v254_v12  ;;  %453 = vst [vmem:[#allocation2 + $0xf9] sm:$0xff] %v366_v21  ;;  %v3673_v12 = vpack.c.bf16 %v362_v16, %v361_v15  ;;  %v482_v15 = vld [vmem:[#allocation2 + $0xc0] sm:$0xff] }
  0x4f   : > { %2930 = vmatprep.subr.bf16.mxu1 %v3177_v33  ;;  %v567_v33 = vld [vmem:[#allocation2 + $0x3a] sm:$0xff] }
  0x50   : > { %446 = vst [vmem:[#allocation2 + $0xa9] sm:$0xff] %v359_v62  ;;  %v3584_v28 = vadd.f32 %v3317_v18, %v293_v23  ;;  %v3617_v44 = vpack.c.bf16 %v567_v33, %v566_v32  ;;  %v3201_v23 = vld [vmem:[%s4359_s1 + $0x1c8] sm:$0xff]   ;;  %v484_v32 = vld [vmem:[#allocation2 + $0xd8] sm:$0xff] }
  0x51   : > { %1669 = vmatmul.mubr.bf16.vlgmr.msra.gmra.mxu1 %v594_v45  ;;  %v365_v45 = vmax.f32 %v3602_v40, 0.0  ;;  %v572_v33 = vld [vmem:[#allocation2 + $0x7a] sm:$0xff] }
  0x52   : > { %2931 = vmatpush3.bf16.msra.mxu1 %v3178_v48  ;;  %1676 = vmatprep.mubr.bf16.mxu1 %v3436_v52  ;;  %v3558_v52 = vpack.c.bf16 %v565_v61, %v564_v50  ;;  %v364_v39 = vmax.f32 %v3584_v28, 0.0  ;;  %v3194_v48 = vld [vmem:[%s4359_s1 + $0x100] sm:$0xff]   ;;  %v3631_v50 = vpack.c.bf16 %v360_v63, %v359_v62  ;;  %v569_v61 = vld [vmem:[#allocation2 + $0x52] sm:$0xff] }
  0x53   : > { %2932 = vmatprep.subr.bf16.mxu1 %v3182_v54  ;;  %452 = vst [vmem:[#allocation2 + $0xf1] sm:$0xff] %v365_v45  ;;  %v257_v54 = vld [vmem:[%s3299_s16 + $0xa0] sm:$0xff]  ;;  %2833 = vmatpush3.bf16.msra.mxu0 %v3194_v48  ;;  %v3195_v62 = vld [vmem:[%s4359_s1 + $0x1d8] sm:$0xff]   ;;  %v3666_v10 = vpack.c.bf16 %v569_v61, %v568_v60  ;;  %v3727_v46 = vpack.c.bf16 %v366_v21, %v365_v45 }
  0x54   : > { %1548 = vmatmul.mubr.bf16.gmra.mxu0 %v3562_v14  ;;  %451 = vst [vmem:[#allocation2 + $0xe1] sm:$0xff] %v364_v39  ;;  %v296_v56 = vmul.f32 %v3312_v17, %v257_v54  ;;  %3066 = vmatprep.subr.bf16.mxu0 %v3657_v2  ;;  %v483_v16 = vld [vmem:[#allocation2 + $0xc8] sm:$0xff]  ;;  %v3700_v30 = vpack.c.bf16 %v364_v39, %v363_v34  ;;  %v3206_v34 = vld [vmem:[%s4359_s1 + $0x180] sm:$0xff]  }
  0x55   : > { %1555 = vmatprep.mubr.bf16.mxu0 %v3567_v20  ;;  %v3692_v25 = vpack.c.bf16 %v483_v16, %v482_v15  ;;  %v345_v48 = vadd.f32 %v3317_v18, %v306_v38  ;;  %v578_v1 = vld [vmem:[#allocation2 + $0xc2] sm:$0xff]  ;;  %v590_v38 = vld [vmem:[#allocation2 + $0x152] sm:$0xff] }
  0x56   : > { %2933 = vmatpush3.bf16.msra.mxu1 %v3184_v3  ;;  %v3649_v0 = vadd.f32 %v3317_v18, %v296_v56  ;;  %v632_v16 = vld [vmem:[#allocation2 + $0x120] sm:$0xff] }
  0x57   : > { %2934 = vmatprep.subr.bf16.mxu1 %v3187_v8  ;;  %v480_v59 = vld [vmem:[#allocation2 + $0xa8] sm:$0xff]  ;;  %v481_v63 = vld [vmem:[#allocation2 + $0xb0] sm:$0xff]  ;;  %v3197_v8 = vld [vmem:[%s4359_s1 + $0x198] sm:$0xff]   ;;  %v377_v58 = vmax.f32 %v345_v48, 0.0 }
  0x58   : > { %v367_v3 = vmax.f32 %v3649_v0, 0.0  ;;  %v3664_v9 = vpack.c.bf16 %v481_v63, %v480_v59  ;;  %v574_v59 = vld [vmem:[#allocation2 + $0x92] sm:$0xff]  ;;  %v576_v61 = vld [vmem:[#allocation2 + $0xaa] sm:$0xff] }
  0x59   : > { %1677 = vmatmul.mubr.bf16.gmra.mxu1 %v3558_v52  ;;  %464 = vst [vmem:[#allocation2 + $0x181] sm:$0xff] %v377_v58  ;;  %v3737_v21 = vpack.c.bf16 %v575_v41, %v574_v59  ;;  %v592_v59 = vld [vmem:[#allocation2 + $0x16a] sm:$0xff] }
  0x5a   : > { %1684 = vmatprep.mubr.bf16.mxu1 %v3464_v7  ;;  %2935 = vmatpush3.bf16.msra.mxu1 %v3188_v22  ;;  %v3192_v7 = vld [vmem:[%s4359_s1 + $0x1a0] sm:$0xff]   ;;  %454 = vst [vmem:[#allocation2 + $0x109] sm:$0xff] %v367_v3  ;;  %v571_v22 = vld [vmem:[#allocation2 + $0x6a] sm:$0xff]  ;;  %v487_v40 = vld [vmem:[#allocation2 + $0xf8] sm:$0xff] }
  0x5b   : > { %2936 = vmatprep.subr.bf16.mxu1 %v3191_v42  ;;  %v3694_v29 = vpack.c.bf16 %v571_v22, %v570_v5  ;;  %v485_v28 = vld [vmem:[#allocation2 + $0xe0] sm:$0xff]  ;;  %v3720_v42 = vpack.c.bf16 %v573_v35, %v572_v33  ;;  %v633_v22 = vld [vmem:[#allocation2 + $0x128] sm:$0xff]  ;;  %v585_v33 = vld [vmem:[#allocation2 + $0x112] sm:$0xff] }
  0x5c   : > { %1556 = vmatmul.mubr.bf16.gmra.mxu0 %v3615_v43  ;;  %v3718_v39 = vpack.c.bf16 %v485_v28, %v484_v32  ;;  %v580_v5 = vld [vmem:[#allocation2 + $0xda] sm:$0xff]  ;;  %v3786_v32 = vpack.c.bf16 %v633_v22, %v632_v16  ;;  %v3209_v35 = vld [vmem:[%s4359_s1 + $0x208] sm:$0xff]  }
  0x5d   : > { %1563 = vmatprep.mubr.bf16.mxu0 %v3631_v50  ;;  %v587_v28 = vld [vmem:[#allocation2 + $0x12a] sm:$0xff] }
  0x5e   : > { %2937 = vmatpush3.bf16.msra.mxu1 %v3192_v7  ;;  %v307_v7 = vmul.f32 %v3312_v17, %v268_v37  ;;  %v486_v17 = vld [vmem:[#allocation2 + $0xf0] sm:$0xff]  ;;  %v589_v37 = vld [vmem:[#allocation2 + $0x142] sm:$0xff] }
  0x5f   : > { %2938 = vmatprep.subr.bf16.mxu1 %v3195_v62  ;;  %v3735_v45 = vpack.c.bf16 %v487_v40, %v486_v17  ;;  %v577_v62 = vld [vmem:[#allocation2 + $0xb2] sm:$0xff] }
  0x60   : > { %v346_v54 = vadd.f32 %v3317_v18, %v307_v7  ;;  %v3743_v18 = vpack.c.bf16 %v368_v4, %v367_v3  ;;  %v579_v3 = vld [vmem:[#allocation2 + $0xca] sm:$0xff]  ;;  %v591_v7 = vld [vmem:[#allocation2 + $0x15a] sm:$0xff] }
  0x61   : > { %1685 = vmatmul.mubr.bf16.gmra.mxu1 %v3617_v44  ;;  %v488_v56 = vld [vmem:[#allocation2 + $0x108] sm:$0xff]  ;;  %v489_v57 = vld [vmem:[#allocation2 + $0x110] sm:$0xff]  ;;  %v3759_v4 = vpack.c.bf16 %v579_v3, %v578_v1  ;;  %v640_v48 = vld [vmem:[#allocation2 + $0x180] sm:$0xff] }
  0x62   : > { %1692 = vmatprep.mubr.bf16.mxu1 %v3511_v47  ;;  %2939 = vmatpush3.bf16.msra.mxu1 %v3197_v8  ;;  %v378_v60 = vmax.f32 %v346_v54, 0.0  ;;  %v3749_v63 = vpack.c.bf16 %v489_v57, %v488_v56  ;;  %v3751_v8 = vpack.c.bf16 %v577_v62, %v576_v61  ;;  %v804_v17 = vld [vmem:[#allocation2 + $0x39] sm:$0xff]  ;;  %v755_v61 = vld [vmem:[#allocation2 + $0x30] sm:$0xff] }
  0x63   : > { %2940 = vmatprep.subr.bf16.mxu1 %v3198_v19  ;;  %v3199_v19 = vld [vmem:[%s4359_s1 + $0x230] sm:$0xff]   ;;  %v756_v56 = vld [vmem:[#allocation2 + $0x38] sm:$0xff] }
  0x64   : > { %1564 = vmatmul.mubr.bf16.gmra.mxu0 %v3664_v9  ;;  %465 = vst [vmem:[#allocation2 + $0x189] sm:$0xff] %v378_v60  ;;  %v3753_v0 = vpack.c.bf16 %v378_v60, %v377_v58  ;;  %v3819_v58 = vpack.c.bf16 %v591_v7, %v590_v38  ;;  %v803_v60 = vld [vmem:[#allocation2 + $0x31] sm:$0xff]  ;;  %v805_v57 = vld [vmem:[#allocation2 + $0x49] sm:$0xff]  ;;  %v787_v1 = vpack.c.bf16 %v756_v56, %v755_v61 }
  0x65   : > { %1571 = vmatprep.mubr.bf16.mxu0 %v3673_v12  ;;  %v835_v41 = vpack.c.bf16 %v804_v17, %v803_v60  ;;  %v806_v62 = vld [vmem:[#allocation2 + $0x51] sm:$0xff]  ;;  %v686_v38 = vld [vmem:[#allocation2 + $0x169] sm:$0xff] }
  0x66   : > { %2941 = vmatpush3.bf16.msra.mxu1 %v3200_v6  ;;  %v581_v6 = vld [vmem:[#allocation2 + $0xe2] sm:$0xff]  ;;  %v836_v3 = vpack.c.bf16 %v806_v62, %v805_v57  ;;  %v687_v7 = vld [vmem:[#allocation2 + $0x171] sm:$0xff] }
  0x67   : > { %2942 = vmatprep.subr.bf16.mxu1 %v3201_v23  ;;  %v3772_v15 = vpack.c.bf16 %v581_v6, %v580_v5  ;;  %v3207_v23 = vld [vmem:[%s4359_s1 + $0x218] sm:$0xff]   ;;  %v758_v5 = vld [vmem:[#allocation2 + $0x50] sm:$0xff]  ;;  %v3871_v56 = vpack.c.bf16 %v687_v7, %v686_v38 }
  0x68   : > { %v856_v38 = vld [vmem:[#allocation2 + $0x6a] sm:$0xff] }
  0x69   : > { %1693 = vmatmul.mubr.bf16.gmra.mxu1 %v3666_v10 }
  0x6a   : > { %1700 = vmatprep.mubr.bf16.mxu1 %v3562_v14  ;;  %2943 = vmatpush3.bf16.msra.mxu1 %v3203_v31 }
  0x6b   : > { %2944 = vmatprep.subr.bf16.mxu1 %v3204_v24  ;;  %v641_v54 = vld [vmem:[#allocation2 + $0x188] sm:$0xff] }
  0x6c   : > { %1572 = vmatmul.mubr.bf16.gmra.mxu0 %v3692_v25 }
  0x6d   : > { %1579 = vmatprep.mubr.bf16.mxu0 %v3700_v30 }
  0x6e   : > { %2945 = vmatpush3.bf16.msra.mxu1 %v3206_v34 }
  0x71   : > { %1701 = vmatmul.mubr.bf16.gmra.mxu1 %v3694_v29 }
  0x72   : > { %1708 = vmatprep.mubr.bf16.mxu1 %v3615_v43 }
  0x74   : > { %1580 = vmatmul.mubr.bf16.gmra.mxu0 %v3718_v39 }
  0x75   : > { %1587 = vmatprep.mubr.bf16.mxu0 %v3727_v46 }
  0x79   : > { %1709 = vmatmul.mubr.bf16.gmra.mxu1 %v3720_v42 }
  0x7a   : > { %1716 = vmatprep.mubr.bf16.mxu1 %v3664_v9 }
  0x7c   : > { %1588 = vmatmul.mubr.bf16.gmra.mxu0 %v3735_v45 }
  0x7d   : > { %1595 = vmatprep.mubr.bf16.mxu0 %v3743_v18 }
  0x81   : > { %1717 = vmatmul.mubr.bf16.gmra.mxu1 %v3737_v21 }
  0x82   : > { %1724 = vmatprep.mubr.bf16.mxu1 %v3692_v25 }
  0x84   : > { %1596 = vmatmul.mubr.bf16.gmra.mxu0 %v3749_v63 }
  0x85   : > { %1829 = vmatprep.mubr.bf16.mxu0 %v3558_v52  ;;  %v3202_v52 = vld [vmem:[%s4359_s1 + $0x228] sm:$0xff]  }
  0x89   : > { %1725 = vmatmul.mubr.bf16.gmra.mxu1 %v3751_v8 }
  0x8a   : > { %1732 = vmatprep.mubr.bf16.mxu1 %v3718_v39 }
  0x8c   : > { %1830 = vmatmul.mubr.bf16.vlgmr.msra.gmra.mxu0 %v3365_v55  ;;  %v3205_v55 = vld [vmem:[%s4359_s1 + $0x220] sm:$0xff]  }
  0x8d   : > { %3067 = vmatpush3.bf16.msra.mxu0 %v3657_v2  ;;  %1837 = vmatprep.mubr.bf16.mxu0 %v3617_v44  ;;  %v582_v44 = vld [vmem:[#allocation2 + $0xf2] sm:$0xff]  ;;  %v583_v2 = vld [vmem:[#allocation2 + $0xfa] sm:$0xff] }
  0x8e   : > { %3068 = vmatprep.subr.bf16.mxu0 %v3199_v19  ;;  %v3784_v31 = vpack.c.bf16 %v583_v2, %v582_v44  ;;  %v683_v2 = vld [vmem:[#allocation2 + $0x141] sm:$0xff] }
  0x91   : > { %1733 = vmatmul.mubr.bf16.gmra.mxu1 %v3759_v4  ;;  %3069 = vmatpush3.bf16.msra.mxu0 %v3199_v19  ;;  %v757_v19 = vld [vmem:[#allocation2 + $0x48] sm:$0xff] }
  0x92   : > { %1740 = vmatprep.mubr.bf16.mxu1 %v3735_v45  ;;  %3070 = vmatprep.subr.bf16.mxu0 %v3202_v52  ;;  %v788_v6 = vpack.c.bf16 %v758_v5, %v757_v19 }
  0x94   : > { %1838 = vmatmul.mubr.bf16.gmra.mxu0 %v3405_v27  ;;  %v3208_v27 = vld [vmem:[%s4359_s1 + $0x210] sm:$0xff]  }
  0x95   : > { %1845 = vmatprep.mubr.bf16.mxu0 %v3666_v10  ;;  %3071 = vmatpush3.bf16.msra.mxu0 %v3202_v52  ;;  %v584_v10 = vld [vmem:[#allocation2 + $0x10a] sm:$0xff]  ;;  %v680_v52 = vld [vmem:[#allocation2 + $0x121] sm:$0xff] }
  0x96   : > { %3072 = vmatprep.subr.bf16.mxu0 %v3205_v55  ;;  %v3798_v24 = vpack.c.bf16 %v585_v33, %v584_v10 }
  0x99   : > { %1741 = vmatmul.mubr.bf16.gmra.mxu1 %v3772_v15  ;;  %3073 = vmatpush3.bf16.msra.mxu0 %v3205_v55  ;;  %v681_v55 = vld [vmem:[#allocation2 + $0x129] sm:$0xff] }
  0x9a   : > { %1748 = vmatprep.mubr.bf16.mxu1 %v3749_v63  ;;  %3074 = vmatprep.subr.bf16.mxu0 %v3207_v23  ;;  %v3841_v44 = vpack.c.bf16 %v681_v55, %v680_v52  ;;  %v851_v52 = vld [vmem:[#allocation2 + $0x32] sm:$0xff]  ;;  %v852_v55 = vld [vmem:[#allocation2 + $0x3a] sm:$0xff] }
  0x9c   : > { %1846 = vmatmul.mubr.bf16.gmra.mxu0 %v3434_v51  ;;  %v3210_v51 = vld [vmem:[%s4359_s1 + $0x200] sm:$0xff]  }
  0x9d   : > { %1853 = vmatprep.mubr.bf16.mxu0 %v3694_v29  ;;  %3075 = vmatpush3.bf16.msra.mxu0 %v3207_v23  ;;  %v586_v29 = vld [vmem:[#allocation2 + $0x122] sm:$0xff] }
  0x9e   : > { %3076 = vmatprep.subr.bf16.mxu0 %v3208_v27  ;;  %v3807_v34 = vpack.c.bf16 %v587_v28, %v586_v29 }
  0xa1   : > { %1749 = vmatmul.mubr.bf16.gmra.mxu1 %v3784_v31  ;;  %3077 = vmatpush3.bf16.msra.mxu0 %v3208_v27 }
  0xa2   : > { %1756 = vmatprep.mubr.bf16.mxu1 %v3786_v32  ;;  %3078 = vmatprep.subr.bf16.mxu0 %v3209_v35 }
  0xa4   : > { %1854 = vmatmul.mubr.bf16.gmra.mxu0 %v3472_v13 }
  0xa5   : > { %1861 = vmatprep.mubr.bf16.mxu0 %v3720_v42  ;;  %3079 = vmatpush3.bf16.msra.mxu0 %v3209_v35 }
  0xa6   : > { %3080 = vmatprep.subr.bf16.mxu0 %v3210_v51 }
  0xa9   : > { %1757 = vmatmul.mubr.bf16.gmra.mxu1 %v3798_v24  ;;  %3081 = vmatpush3.bf16.msra.mxu0 %v3210_v51 }
  0xaa   : > { %1764 = vmatprep.mubr.bf16.mxu1 %v3403_v26  ;;  %v3813_v26 = vpack.c.bf16 %v589_v37, %v588_v36 }
  0xac   : > { %1862 = vmatmul.mubr.bf16.gmra.mxu0 %v3516_v49 }
  0xad   : > { %1869 = vmatprep.mubr.bf16.mxu0 %v3737_v21 }
  0xb1   : > { %1765 = vmatmul.mubr.bf16.gmra.mxu1 %v3807_v34 }
  0xb2   : > { %1772 = vmatprep.mubr.bf16.mxu1 %v3438_v53  ;;  %v3821_v53 = vpack.c.bf16 %v641_v54, %v640_v48 }
  0xb4   : > { %1870 = vmatmul.mubr.bf16.gmra.mxu0 %v3567_v20 }
  0xb5   : > { %1877 = vmatprep.mubr.bf16.mxu0 %v3751_v8 }
  0xb9   : > { %1773 = vmatmul.mubr.bf16.gmra.mxu1 %v3813_v26 }
  0xba   : > { %1780 = vmatprep.mubr.bf16.mxu1 %v3467_v11  ;;  %v593_v11 = vld [vmem:[#allocation2 + $0x172] sm:$0xff] }
  0xbb   : > { %v3827_v40 = vpack.c.bf16 %v593_v11, %v592_v59  ;;  %v736_v59 = vld [vmem:[#allocation2 + $0x182] sm:$0xff]  ;;  %v737_v11 = vld [vmem:[#allocation2 + $0x18a] sm:$0xff] }
  0xbc   : > { %1878 = vmatmul.mubr.bf16.gmra.mxu0 %v3631_v50  ;;  %v3873_v57 = vpack.c.bf16 %v737_v11, %v736_v59 }
  0xbd   : > { %1885 = vmatprep.mubr.bf16.mxu0 %v3759_v4 }
  0xc1   : > { %1781 = vmatmul.mubr.bf16.gmra.mxu1 %v3819_v58 }
  0xc2   : > { %1788 = vmatprep.mubr.bf16.mxu1 %v3821_v53 }
  0xc4   : > { %1886 = vmatmul.mubr.bf16.gmra.mxu0 %v3673_v12 }
  0xc5   : > { %1893 = vmatprep.mubr.bf16.mxu0 %v3772_v15 }
  0xc9   : > { %1789 = vmatmul.mubr.bf16.gmra.mxu1 %v3827_v40 }
  0xca   : > { %1990 = vmatprep.mubr.bf16.mxu1 %v835_v41 }
  0xcc   : > { %1894 = vmatmul.mubr.bf16.gmra.mxu0 %v3700_v30 }
  0xcd   : > { %1901 = vmatprep.mubr.bf16.mxu0 %v3784_v31 }
  0xd1   : > { %1991 = vmatmul.mubr.bf16.vlgmr.msra.gmra.mxu1 %v787_v1 }
  0xd2   : > { %1998 = vmatprep.mubr.bf16.mxu1 %v836_v3 }
  0xd4   : > { %1902 = vmatmul.mubr.bf16.gmra.mxu0 %v3727_v46 }
  0xd5   : > { %1909 = vmatprep.mubr.bf16.mxu0 %v3798_v24 }
  0xd9   : > { %1999 = vmatmul.mubr.bf16.gmra.mxu1 %v788_v6 }
  0xda   : > { %2006 = vmatprep.mubr.bf16.mxu1 %v3472_v13  ;;  %v682_v13 = vld [vmem:[#allocation2 + $0x139] sm:$0xff] }
  0xdb   : > { %v3847_v16 = vpack.c.bf16 %v683_v2, %v682_v13 }
  0xdc   : > { %1910 = vmatmul.mubr.bf16.gmra.mxu0 %v3743_v18 }
  0xdd   : > { %1917 = vmatprep.mubr.bf16.mxu0 %v3807_v34 }
  0xe1   : > { %2007 = vmatmul.mubr.bf16.gmra.mxu1 %v3511_v47 }
  0xe2   : > { %2014 = vmatprep.mubr.bf16.mxu1 %v3516_v49  ;;  %v684_v49 = vld [vmem:[#allocation2 + $0x151] sm:$0xff] }
  0xe4   : > { %1918 = vmatmul.mubr.bf16.gmra.mxu0 %v3841_v44 }
  0xe5   : > { %1925 = vmatprep.mubr.bf16.mxu0 %v3813_v26 }
  0xe9   : > { %2015 = vmatmul.mubr.bf16.gmra.mxu1 %v3562_v14  ;;  %v685_v14 = vld [vmem:[#allocation2 + $0x159] sm:$0xff] }
  0xea   : > { %2022 = vmatprep.mubr.bf16.mxu1 %v3567_v20  ;;  %v3857_v51 = vpack.c.bf16 %v685_v14, %v684_v49  ;;  %v883_v49 = vpack.c.bf16 %v852_v55, %v851_v52 }
  0xec   : > { %v2610_v47 = vpop.f32.mrf.mxu0  ;;  %1926 = vmatmul.mubr.bf16.gmra.mxu0 %v3847_v16 }
  0xed   : > { %1933 = vmatprep.mubr.bf16.mxu0 %v3819_v58 }
  0xee   : > { %v2611_v23 = vpop.f32.mrf.mxu0 }
  0xef   : > { %v3853_v10 = vadd.f32 %v2611_v23, %v2610_v47 }
  0xf0   : > { %v2613_v33 = vpop.f32.mrf.mxu0 }
  0xf1   : > { %v2682_v22 = vpop.f32.mrf.mxu1  ;;  %2023 = vmatmul.mubr.bf16.gmra.mxu1 %v3615_v43 }
  0xf2   : > { %2030 = vmatprep.mubr.bf16.mxu1 %v3631_v50  ;;  %v2614_v29 = vpop.f32.mrf.mxu0 }
  0xf3   : > { %v2683_v27 = vpop.f32.mrf.mxu1  ;;  %v3859_v36 = vadd.f32 %v2614_v29, %v2613_v33  ;;  %v854_v29 = vld [vmem:[#allocation2 + $0x52] sm:$0xff] }
  0xf4   : > { %v3855_v20 = vadd.f32 %v2683_v27, %v2682_v22  ;;  %v2616_v37 = vpop.f32.mrf.mxu0  ;;  %1934 = vmatmul.mubr.bf16.gmra.mxu0 %v3857_v51 }
  0xf5   : > { %v2685_v35 = vpop.f32.mrf.mxu1  ;;  %1941 = vmatprep.mubr.bf16.mxu0 %v3827_v40 }
  0xf6   : > { %v2617_v48 = vpop.f32.mrf.mxu0 }
  0xf7   : > { %v2686_v28 = vpop.f32.mrf.mxu1  ;;  %v3867_v60 = vadd.f32 %v2617_v48, %v2616_v37 }
  0xf8   : > { %v3861_v43 = vadd.f32 %v2686_v28, %v2685_v35  ;;  %v2619_v41 = vpop.f32.mrf.mxu0 }
  0xf9   : > { %v2688_v50 = vpop.f32.mrf.mxu1  ;;  %2031 = vmatmul.mubr.bf16.gmra.mxu1 %v3664_v9 }
  0xfa   : > { %2038 = vmatprep.mubr.bf16.mxu1 %v3673_v12  ;;  %v2620_v9 = vpop.f32.mrf.mxu0 }
  0xfb   : > { %v2689_v54 = vpop.f32.mrf.mxu1  ;;  %v3875_v1 = vadd.f32 %v2620_v9, %v2619_v41 }
  0xfc   : > { %v3869_v17 = vadd.f32 %v2689_v54, %v2688_v50  ;;  %v2622_v3 = vpop.f32.mrf.mxu0  ;;  %1942 = vmatmul.mubr.bf16.gmra.mxu0 %v3871_v56  ;;  %v855_v50 = vld [vmem:[#allocation2 + $0x62] sm:$0xff] }
  0xfd   : > { %v2691_v61 = vpop.f32.mrf.mxu1  ;;  %1949 = vmatprep.mubr.bf16.mxu0 %v3873_v57  ;;  %v885_v41 = vpack.c.bf16 %v856_v38, %v855_v50 }
  0xfe   : > { %v2623_v5 = vpop.f32.mrf.mxu0 }
  0xff   : > { %v2692_v62 = vpop.f32.mrf.mxu1  ;;  %v3883_v13 = vadd.f32 %v2623_v5, %v2622_v3 }
 0x100   : > { %v3877_v12 = vadd.f32 %v2692_v62, %v2691_v61  ;;  %v2625_v47 = vpop.f32.mrf.mxu0 }
 0x101   : > { %v2694_v19 = vpop.f32.mrf.mxu1  ;;  %2039 = vmatmul.mubr.bf16.gmra.mxu1 %v3692_v25 }
 0x102   : > { %2046 = vmatprep.mubr.bf16.mxu1 %v3700_v30  ;;  %v2626_v14 = vpop.f32.mrf.mxu0  ;;  %v853_v30 = vld [vmem:[#allocation2 + $0x4a] sm:$0xff] }
 0x103   : > { %v2695_v6 = vpop.f32.mrf.mxu1  ;;  %v3887_v27 = vadd.f32 %v2626_v14, %v2625_v47  ;;  %v884_v11 = vpack.c.bf16 %v854_v29, %v853_v30 }
 0x104   : > { %v3885_v2 = vadd.f32 %v2695_v6, %v2694_v19  ;;  %v2628_v33 = vpop.f32.mrf.mxu0  ;;  %1950 = vmatmul.mubr.bf16.gmra.mxu0 %v3753_v0 }
 0x105   : > { %v2697_v22 = vpop.f32.mrf.mxu1  ;;  %3082 = vmatprep.mubr.bf16.mxu0 %v883_v49 }
 0x106   : > { %v2629_v28 = vpop.f32.mrf.mxu0 }
 0x107   : > { %v2698_v23 = vpop.f32.mrf.mxu1  ;;  %v3894_v7 = vadd.f32 %v2629_v28, %v2628_v33 }
 0x108   : > { %v3889_v25 = vadd.f32 %v2698_v23, %v2697_v22  ;;  %v2631_v54 = vpop.f32.mrf.mxu0 }
 0x109   : > { %v2700_v35 = vpop.f32.mrf.mxu1  ;;  %2047 = vmatmul.mubr.bf16.gmra.mxu1 %v3718_v39 }
 0x10a   : > { %2054 = vmatprep.mubr.bf16.mxu1 %v3727_v46  ;;  %v2632_v61 = vpop.f32.mrf.mxu0 }
 0x10b   : > { %v2701_v37 = vpop.f32.mrf.mxu1  ;;  %v3898_v39 = vadd.f32 %v2632_v61, %v2631_v54 }
 0x10c   : > { %v3896_v48 = vadd.f32 %v2701_v37, %v2700_v35  ;;  %v2634_v62 = vpop.f32.mrf.mxu0  ;;  %3083 = vmatmul.mubr.bf16.vlgmr.msra.gmra.mxu0 %v884_v11 }
 0x10d   : > { %v2703_v59 = vpop.f32.mrf.mxu1  ;;  %3086 = vmatprep.mubr.bf16.mxu0 %v885_v41 }
 0x10e   : > { %v2635_v19 = vpop.f32.mrf.mxu0 }
 0x10f   : > { %v2704_v9 = vpop.f32.mrf.mxu1  ;;  %v3904_v6 = vadd.f32 %v2635_v19, %v2634_v62 }
 0x110   : > { %v3900_v46 = vadd.f32 %v2704_v9, %v2703_v59  ;;  %v2637_v55 = vpop.f32.mrf.mxu0 }
 0x111   : > { %v2722_v3 = vpop.f32.mrf.mxu1  ;;  %2055 = vmatmul.mubr.bf16.gmra.mxu1 %v3735_v45 }
 0x112   : > { %2062 = vmatprep.mubr.bf16.mxu1 %v3743_v18  ;;  %v2638_v49 = vpop.f32.mrf.mxu0 }
 0x113   : > { %v2723_v5 = vpop.f32.mrf.mxu1  ;;  %v3909_v23 = vadd.f32 %v2638_v49, %v2637_v55  ;;  %v779_v49 = vld [vmem:[#allocation2 + $0x150] sm:$0xff] }
 0x114   : > { %v2724_v52 = vadd.f32 %v2723_v5, %v2722_v3  ;;  %v2640_v45 = vpop.f32.mrf.mxu0  ;;  %3087 = vmatmul.mubr.bf16.gmra.mxu0 %v3720_v42 }
 0x115   : > { %v2725_v47 = vpop.f32.mrf.mxu1  ;;  %3090 = vmatprep.mubr.bf16.mxu0 %v3737_v21 }
 0x116   : > { %v3907_v22 = vadd.f32 %v2724_v52, %v3853_v10  ;;  %v2641_v10 = vpop.f32.mrf.mxu0 }
 0x117   : > { %v2726_v14 = vpop.f32.mrf.mxu1  ;;  %v3918_v29 = vadd.f32 %v2641_v10, %v2640_v45 }
 0x118   : > { %v2727_v33 = vadd.f32 %v2726_v14, %v2725_v47  ;;  %v2643_v37 = vpop.f32.mrf.mxu0 }
 0x119   : > { %v2728_v35 = vpop.f32.mrf.mxu1  ;;  %2063 = vmatmul.mubr.bf16.gmra.mxu1 %v3749_v63 }
 0x11a   : > { %v3914_v18 = vadd.f32 %v2727_v33, %v3859_v36  ;;  %2070 = vmatprep.mubr.bf16.mxu1 %v3841_v44  ;;  %v2644_v63 = vpop.f32.mrf.mxu0  ;;  %v777_v44 = vld [vmem:[#allocation2 + $0x138] sm:$0xff] }
 0x11b   : > { %v2729_v30 = vpop.f32.mrf.mxu1  ;;  %v3923_v42 = vadd.f32 %v2644_v63, %v2643_v37 }
 0x11c   : > { %v2730_v28 = vadd.f32 %v2729_v30, %v2728_v35  ;;  %v2646_v59 = vpop.f32.mrf.mxu0  ;;  %3091 = vmatmul.mubr.bf16.gmra.mxu0 %v3751_v8 }
 0x11d   : > { %v2731_v50 = vpop.f32.mrf.mxu1  ;;  %3094 = vmatprep.mubr.bf16.mxu0 %v3759_v4 }
 0x11e   : > { %v3921_v38 = vadd.f32 %v2730_v28, %v3867_v60  ;;  %v778_v60 = vld [vmem:[#allocation2 + $0x140] sm:$0xff]  ;;  %v2647_v41 = vpop.f32.mrf.mxu0 }
 0x11f   : > { %v2732_v54 = vpop.f32.mrf.mxu1  ;;  %v3932_v9 = vadd.f32 %v2647_v41, %v2646_v59  ;;  %v798_v5 = vpack.c.bf16 %v778_v60, %v777_v44 }
 0x120   : > { %v2733_v36 = vadd.f32 %v2732_v54, %v2731_v50  ;;  %v2649_v3 = vpop.f32.mrf.mxu0 }
 0x121   : > { %v2734_v11 = vpop.f32.mrf.mxu1  ;;  %2071 = vmatmul.mubr.bf16.gmra.mxu1 %v3786_v32 }
 0x122   : > { %v3928_v21 = vadd.f32 %v2733_v36, %v3875_v1  ;;  %2078 = vmatprep.mubr.bf16.mxu1 %v3847_v16  ;;  %v2650_v8 = vpop.f32.mrf.mxu0  ;;  %v781_v36 = vld [vmem:[#allocation2 + $0x168] sm:$0xff] }
 0x123   : > { %v2735_v61 = vpop.f32.mrf.mxu1  ;;  %v3937_v52 = vadd.f32 %v2650_v8, %v2649_v3 }
 0x124   : > { %v2736_v62 = vadd.f32 %v2735_v61, %v2734_v11  ;;  %v2652_v55 = vpop.f32.mrf.mxu0  ;;  %3095 = vmatmul.mubr.bf16.gmra.mxu0 %v3772_v15 }
 0x125   : > { %v2737_v19 = vpop.f32.mrf.mxu1  ;;  %3098 = vmatprep.mubr.bf16.mxu0 %v3784_v31 }
 0x126   : > { %v3935_v32 = vadd.f32 %v2736_v62, %v3883_v13  ;;  %v780_v13 = vld [vmem:[#allocation2 + $0x158] sm:$0xff]  ;;  %v2653_v14 = vpop.f32.mrf.mxu0 }
 0x127   : > { %v2738_v1 = vpop.f32.mrf.mxu1  ;;  %v3945_v45 = vadd.f32 %v2653_v14, %v2652_v55  ;;  %v799_v28 = vpack.c.bf16 %v780_v13, %v779_v49  ;;  %v834_v55 = vld [vmem:[#allocation2 + $0x1a1] sm:$0xff] }
 0x128   : > { %v2739_v16 = vadd.f32 %v2738_v1, %v2737_v19  ;;  %v2655_v10 = vpop.f32.mrf.mxu0 }
 0x129   : > { %v2740_v4 = vpop.f32.mrf.mxu1  ;;  %2079 = vmatmul.mubr.bf16.gmra.mxu1 %v798_v5 }
 0x12a   : > { %v3941_v47 = vadd.f32 %v2739_v16, %v3887_v27  ;;  %2086 = vmatprep.mubr.bf16.mxu1 %v3857_v51  ;;  %v2656_v15 = vpop.f32.mrf.mxu0  ;;  %v833_v16 = vld [vmem:[#allocation2 + $0x199] sm:$0xff] }
 0x12b   : > { %v2741_v33 = vpop.f32.mrf.mxu1  ;;  %v3950_v50 = vadd.f32 %v2656_v15, %v2655_v10  ;;  %v882_v15 = vld [vmem:[#allocation2 + $0x1a2] sm:$0xff] }
 0x12c   : > { %v2742_v35 = vadd.f32 %v2741_v33, %v2740_v4  ;;  %v2658_v63 = vpop.f32.mrf.mxu0  ;;  %3099 = vmatmul.mubr.bf16.gmra.mxu0 %v3798_v24 }
 0x12d   : > { %v2743_v30 = vpop.f32.mrf.mxu1  ;;  %3102 = vmatprep.mubr.bf16.mxu0 %v3807_v34 }
 0x12e   : > { %v3948_v37 = vadd.f32 %v2742_v35, %v3894_v7  ;;  %v782_v7 = vld [vmem:[#allocation2 + $0x170] sm:$0xff]  ;;  %v2659_v59 = vpop.f32.mrf.mxu0 }
 0x12f   : > { %v2744_v27 = vpop.f32.mrf.mxu1  ;;  %v3958_v44 = vadd.f32 %v2659_v59, %v2658_v63  ;;  %v800_v62 = vpack.c.bf16 %v782_v7, %v781_v36  ;;  %v3211_v59 = vld [vmem:[#allocation2] sm:$0xff] }
 0x130   : > { %v2745_v51 = vadd.f32 %v2744_v27, %v2743_v30  ;;  %v2661_v41 = vpop.f32.mrf.mxu0 }
 0x131   : > { %v2746_v31 = vpop.f32.mrf.mxu1  ;;  %2087 = vmatmul.mubr.bf16.gmra.mxu1 %v799_v28 }
 0x132   : > { %v3954_v54 = vadd.f32 %v2745_v51, %v3898_v39  ;;  %2094 = vmatprep.mubr.bf16.mxu1 %v3871_v56  ;;  %v2662_v24 = vpop.f32.mrf.mxu0 }
 0x133   : > { %v2747_v11 = vpop.f32.mrf.mxu1  ;;  %v3963_v19 = vadd.f32 %v2662_v24, %v2661_v41 }
 0x134   : > { %v2748_v60 = vadd.f32 %v2747_v11, %v2746_v31  ;;  %v2664_v5 = vpop.f32.mrf.mxu0  ;;  %3103 = vmatmul.mubr.bf16.gmra.mxu0 %v3813_v26  ;;  %v850_v26 = vpack.c.bf16 %v834_v55, %v833_v16  ;;  %v802_v11 = vpack.c.bf16 %v3211_v59, %v3211_v59 }
 0x135   : > { %v2749_v61 = vpop.f32.mrf.mxu1  ;;  %3106 = vmatprep.mubr.bf16.mxu0 %v3819_v58 }
 0x136   : > { %v3961_v3 = vadd.f32 %v2748_v60, %v3904_v6  ;;  %v2665_v1 = vpop.f32.mrf.mxu0 }
 0x137   : > { %v2750_v39 = vpop.f32.mrf.mxu1  ;;  %v3971_v4 = vadd.f32 %v2665_v1, %v2664_v5 }
 0x138   : > { %v2751_v56 = vadd.f32 %v2750_v39, %v2749_v61  ;;  %v2667_v13 = vpop.f32.mrf.mxu0 }
 0x139   : > { %v2752_v34 = vpop.f32.mrf.mxu1  ;;  %2095 = vmatmul.mubr.bf16.gmra.mxu1 %v800_v62 }
 0x13a   : > { %v3967_v8 = vadd.f32 %v2751_v56, %v3909_v23  ;;  %2102 = vmatprep.mubr.bf16.mxu1 %v3753_v0  ;;  %v2668_v35 = vpop.f32.mrf.mxu0 }
 0x13b   : > { %v2753_v6 = vpop.f32.mrf.mxu1  ;;  %v3976_v10 = vadd.f32 %v2668_v35, %v2667_v13 }
 0x13c   : > { %v2754_v49 = vadd.f32 %v2753_v6, %v2752_v34  ;;  %v2670_v30 = vpop.f32.mrf.mxu0  ;;  %3107 = vmatmul.mubr.bf16.gmra.mxu0 %v3827_v40 }
 0x13d   : > { %v2755_v14 = vpop.f32.mrf.mxu1  ;;  %3110 = vmatprep.mubr.bf16.mxu0 %v3873_v57 }
 0x13e   : > { %v3974_v33 = vadd.f32 %v2754_v49, %v3918_v29  ;;  %v881_v29 = vld [vmem:[#allocation2 + $0x19a] sm:$0xff]  ;;  %v2671_v27 = vpop.f32.mrf.mxu0 }
 0x13f   : > { %v2756_v23 = vpop.f32.mrf.mxu1  ;;  %v3984_v63 = vadd.f32 %v2671_v27, %v2670_v30 }
 0x140   : > { %v2757_v0 = vadd.f32 %v2756_v23, %v2755_v14  ;;  %v2673_v36 = vpop.f32.mrf.mxu0 }
 0x141   : > { %v2758_v58 = vpop.f32.mrf.mxu1  ;;  %2103 = vmatmul.mubr.bf16.gmra.mxu1 %v3821_v53  ;;  %v898_v53 = vpack.c.bf16 %v882_v15, %v881_v29 }
 0x142   : > { %v3981_v28 = vadd.f32 %v2757_v0, %v3923_v42  ;;  %2110 = vmatprep.mubr.bf16.mxu1 %v850_v26  ;;  %v2674_v42 = vpop.f32.mrf.mxu0 }
 0x143   : > { %v2759_v51 = vpop.f32.mrf.mxu1  ;;  %v3989_v41 = vadd.f32 %v2674_v42, %v2673_v36 }
 0x144   : > { %v2760_v31 = vadd.f32 %v2759_v51, %v2758_v58  ;;  %v2676_v61 = vpop.f32.mrf.mxu0  ;;  %3111 = vmatmul.mubr.bf16.gmra.mxu0 %v898_v53 }
 0x145   : > { %v2761_v7 = vpop.f32.mrf.mxu1 }
 0x146   : > { %v3987_v40 = vadd.f32 %v2760_v31, %v3932_v9  ;;  %v2677_v39 = vpop.f32.mrf.mxu0 }
 0x147   : > { %v2762_v60 = vpop.f32.mrf.mxu1  ;;  %v3994_v5 = vadd.f32 %v2677_v39, %v2676_v61 }
 0x148   : > { %v2763_v57 = vadd.f32 %v2762_v60, %v2761_v7  ;;  %v2679_v1 = vpop.f32.mrf.mxu0 }
 0x149   : > { %v2764_v62 = vpop.f32.mrf.mxu1  ;;  %2111 = vmatmul.mubr.bf16.gmra.mxu1 %v802_v11 }
 0x14a   : > { %v3992_v24 = vadd.f32 %v2763_v57, %v3937_v52  ;;  %v2680_v16 = vpop.f32.mrf.mxu0 }
 0x14b   : > { %v2765_v56 = vpop.f32.mrf.mxu1  ;;  %v3999_v49 = vadd.f32 %v2680_v16, %v2679_v1 }
 0x14c   : > { %v2766_v34 = vadd.f32 %v2765_v56, %v2764_v62  ;;  %v2834_v26 = vpop.f32.mrf.mxu0 }
 0x14d   : > { %v2767_v9 = vpop.f32.mrf.mxu1 }
 0x14e   : > { %v3997_v6 = vadd.f32 %v2766_v34, %v3945_v45  ;;  %v2835_v23 = vpop.f32.mrf.mxu0 }
 0x14f   : > { %v2768_v55 = vpop.f32.mrf.mxu1  ;;  %v2836_v30 = vadd.f32 %v2835_v23, %v2834_v26 }
 0x150   : > { %v2769_v13 = vadd.f32 %v2768_v55, %v2767_v9  ;;  %v2837_v29 = vpop.f32.mrf.mxu0 }
 0x151   : > { %v2770_v14 = vpop.f32.mrf.mxu1  ;;  %v4008_v45 = vadd.f32 %v2836_v30, %v3907_v22 }
 0x152   : > { %v4002_v52 = vadd.f32 %v2769_v13, %v3950_v50  ;;  %v2838_v51 = vpop.f32.mrf.mxu0 }
 0x153   : > { %v2771_v35 = vpop.f32.mrf.mxu1  ;;  %v2839_v36 = vadd.f32 %v2838_v51, %v2837_v29 }
 0x154   : > { %v2772_v0 = vadd.f32 %v2771_v35, %v2770_v14  ;;  %v2840_v59 = vpop.f32.mrf.mxu0 }
 0x155   : > { %v2773_v58 = vpop.f32.mrf.mxu1  ;;  %v4014_v11 = vadd.f32 %v2839_v36, %v3914_v18 }
 0x156   : > { %v4005_v15 = vadd.f32 %v2772_v0, %v3958_v44  ;;  %v2841_v42 = vpop.f32.mrf.mxu0 }
 0x157   : > { %v2774_v27 = vpop.f32.mrf.mxu1  ;;  %v2842_v44 = vadd.f32 %v2841_v42, %v2840_v59 }
 0x158   : > { %v2775_v31 = vadd.f32 %v2774_v27, %v2773_v58  ;;  %v2843_v61 = vpop.f32.mrf.mxu0 }
 0x159   : > { %v2776_v7 = vpop.f32.mrf.mxu1  ;;  %v4020_v62 = vadd.f32 %v2842_v44, %v3921_v38 }
 0x15a   : > { %v4011_v50 = vadd.f32 %v2775_v31, %v3963_v19  ;;  %v2844_v56 = vpop.f32.mrf.mxu0 }
 0x15b   : > { %v2777_v53 = vpop.f32.mrf.mxu1  ;;  %v2845_v19 = vadd.f32 %v2844_v56, %v2843_v61 }
 0x15c   : > { %v2778_v60 = vadd.f32 %v2777_v53, %v2776_v7  ;;  %v2846_v9 = vpop.f32.mrf.mxu0 }
 0x15d   : > { %v2779_v57 = vpop.f32.mrf.mxu1  ;;  %v4026_v16 = vadd.f32 %v2845_v19, %v3928_v21 }
 0x15e   : > { %v4017_v22 = vadd.f32 %v2778_v60, %v3971_v4  ;;  %v2847_v13 = vpop.f32.mrf.mxu0 }
 0x15f   : > { %v2780_v39 = vpop.f32.mrf.mxu1  ;;  %v2848_v4 = vadd.f32 %v2847_v13, %v2846_v9 }
 0x160   : > { %v2781_v34 = vadd.f32 %v2780_v39, %v2779_v57  ;;  %v2849_v35 = vpop.f32.mrf.mxu0 }
 0x161   : > { %v2782_v1 = vpop.f32.mrf.mxu1  ;;  %v4032_v23 = vadd.f32 %v2848_v4, %v3935_v32 }
 0x162   : > { %v4023_v18 = vadd.f32 %v2781_v34, %v3976_v10  ;;  %v2850_v30 = vpop.f32.mrf.mxu0 }
 0x163   : > { %v2783_v55 = vpop.f32.mrf.mxu1  ;;  %v2851_v10 = vadd.f32 %v2850_v30, %v2849_v35 }
 0x164   : > { %v2784_v14 = vadd.f32 %v2783_v55, %v2782_v1  ;;  %v2852_v27 = vpop.f32.mrf.mxu0 }
 0x165   : > { %v2785_v26 = vpop.f32.mrf.mxu1  ;;  %v4038_v51 = vadd.f32 %v2851_v10, %v3941_v47 }
 0x166   : > { %v4029_v38 = vadd.f32 %v2784_v14, %v3984_v63  ;;  %v2853_v36 = vpop.f32.mrf.mxu0 }
 0x167   : > { %v2786_v0 = vpop.f32.mrf.mxu1  ;;  %v2854_v63 = vadd.f32 %v2853_v36, %v2852_v27 }
 0x168   : > { %v2787_v58 = vadd.f32 %v2786_v0, %v2785_v26  ;;  %v2855_v53 = vpop.f32.mrf.mxu0 }
 0x169   : > { %v2788_v29 = vpop.f32.mrf.mxu1  ;;  %v4044_v42 = vadd.f32 %v2854_v63, %v3948_v37 }
 0x16a   : > { %v4035_v21 = vadd.f32 %v2787_v58, %v3989_v41  ;;  %v2856_v44 = vpop.f32.mrf.mxu0 }
 0x16b   : > { %v2789_v31 = vpop.f32.mrf.mxu1  ;;  %v2857_v41 = vadd.f32 %v2856_v44, %v2855_v53 }
 0x16c   : > { %v2790_v7 = vadd.f32 %v2789_v31, %v2788_v29  ;;  %v2858_v39 = vpop.f32.mrf.mxu0 }
 0x16d   : > { %v2791_v59 = vpop.f32.mrf.mxu1  ;;  %v4050_v56 = vadd.f32 %v2857_v41, %v3954_v54 }
 0x16e   : > { %v4041_v32 = vadd.f32 %v2790_v7, %v3994_v5  ;;  %v2859_v19 = vpop.f32.mrf.mxu0 }
 0x16f   : > { %v2792_v60 = vpop.f32.mrf.mxu1  ;;  %v2860_v5 = vadd.f32 %v2859_v19, %v2858_v39 }
 0x170   : > { %v2793_v57 = vadd.f32 %v2792_v60, %v2791_v59  ;;  %v2861_v55 = vpop.f32.mrf.mxu0 }
 0x171   : > { %v2794_v61 = vpop.f32.mrf.mxu1  ;;  %v4056_v13 = vadd.f32 %v2860_v5, %v3961_v3 }
 0x172   : > { %v4047_v47 = vadd.f32 %v2793_v57, %v3999_v49  ;;  %v2862_v4 = vpop.f32.mrf.mxu0 }
 0x173   : > { %v2795_v34 = vpop.f32.mrf.mxu1  ;;  %v2863_v49 = vadd.f32 %v2862_v4, %v2861_v55 }
 0x174   : > { %v2796_v1 = vadd.f32 %v2795_v34, %v2794_v61  ;;  %v2864_v0 = vpop.f32.mrf.mxu0 }
 0x175   : > { %v2797_v9 = vpop.f32.mrf.mxu1  ;;  %v4062_v30 = vadd.f32 %v2863_v49, %v3967_v8 }
 0x176   : > { %v4053_v37 = vadd.f32 %v2796_v1, %v3855_v20  ;;  %v2865_v10 = vpop.f32.mrf.mxu0 }
 0x177   : > { %v2798_v14 = vpop.f32.mrf.mxu1  ;;  %v2866_v20 = vadd.f32 %v2865_v10, %v2864_v0 }
 0x178   : > { %v2799_v26 = vadd.f32 %v2798_v14, %v2797_v9  ;;  %v2867_v31 = vpop.f32.mrf.mxu0 }
 0x179   : > { %v2800_v35 = vpop.f32.mrf.mxu1  ;;  %v4068_v36 = vadd.f32 %v2866_v20, %v3974_v33 }
 0x17a   : > { %v4059_v54 = vadd.f32 %v2799_v26, %v3861_v43  ;;  %v2868_v63 = vpop.f32.mrf.mxu0 }
 0x17b   : > { %v2801_v58 = vpop.f32.mrf.mxu1  ;;  %v2869_v43 = vadd.f32 %v2868_v63, %v2867_v31 }
 0x17c   : > { %v2802_v29 = vadd.f32 %v2801_v58, %v2800_v35  ;;  %v2870_v60 = vpop.f32.mrf.mxu0 }
 0x17d   : > { %v2803_v27 = vpop.f32.mrf.mxu1  ;;  %v4074_v44 = vadd.f32 %v2869_v43, %v3981_v28 }
 0x17e   : > { %v4065_v3 = vadd.f32 %v2802_v29, %v3869_v17  ;;  %v2871_v41 = vpop.f32.mrf.mxu0 }
 0x17f   : > { %v2804_v7 = vpop.f32.mrf.mxu1  ;;  %v2872_v17 = vadd.f32 %v2871_v41, %v2870_v60 }
 0x180   : > { %v2805_v59 = vadd.f32 %v2804_v7, %v2803_v27  ;;  %v2873_v34 = vpop.f32.mrf.mxu0 }
 0x181   : > { %v2806_v53 = vpop.f32.mrf.mxu1  ;;  %v4080_v19 = vadd.f32 %v2872_v17, %v3987_v40 }
 0x182   : > { %v4071_v8 = vadd.f32 %v2805_v59, %v3877_v12  ;;  %v2874_v5 = vpop.f32.mrf.mxu0 }
 0x183   : > { %v2807_v57 = vpop.f32.mrf.mxu1  ;;  %v2875_v12 = vadd.f32 %v2874_v5, %v2873_v34 }
 0x184   : > { %v2808_v61 = vadd.f32 %v2807_v57, %v2806_v53  ;;  %v2876_v14 = vpop.f32.mrf.mxu0 }
 0x185   : > { %v2809_v39 = vpop.f32.mrf.mxu1  ;;  %v4086_v4 = vadd.f32 %v2875_v12, %v3992_v24 }
 0x186   : > { %v4077_v33 = vadd.f32 %v2808_v61, %v3885_v2  ;;  %v2877_v49 = vpop.f32.mrf.mxu0 }
 0x187   : > { %v2810_v1 = vpop.f32.mrf.mxu1  ;;  %v2878_v2 = vadd.f32 %v2877_v49, %v2876_v14 }
 0x188   : > { %v2811_v9 = vadd.f32 %v2810_v1, %v2809_v39  ;;  %v2879_v58 = vpop.f32.mrf.mxu0 }
 0x189   : > { %v2812_v55 = vpop.f32.mrf.mxu1  ;;  %v4092_v10 = vadd.f32 %v2878_v2, %v3997_v6 }
 0x18a   : > { %v4083_v28 = vadd.f32 %v2811_v9, %v3889_v25  ;;  %v2880_v20 = vpop.f32.mrf.mxu0 }
 0x18b   : > { %v2813_v26 = vpop.f32.mrf.mxu1  ;;  %v2881_v25 = vadd.f32 %v2880_v20, %v2879_v58 }
 0x18c   : > { %v2814_v35 = vadd.f32 %v2813_v26, %v2812_v55  ;;  %v2882_v31 = vpop.f32.mrf.mxu0 }
 0x18d   : > { %v2815_v0 = vpop.f32.mrf.mxu1  ;;  %v4100_v63 = vadd.f32 %v2881_v25, %v4002_v52 }
 0x18e   : > { %v4089_v40 = vadd.f32 %v2814_v35, %v3896_v48  ;;  %v2883_v59 = vpop.f32.mrf.mxu0 }
 0x18f   : > { %v2816_v29 = vpop.f32.mrf.mxu1  ;;  %v2884_v48 = vadd.f32 %v2883_v59, %v2882_v31 }
 0x190   : > { %v2817_v27 = vadd.f32 %v2816_v29, %v2815_v0  ;;  %v2885_v53 = vpop.f32.mrf.mxu0 }
 0x191   : > { %v4094_v7 = vpop.f32.mrf.mxu1  ;;  %v4107_v60 = vadd.f32 %v2884_v48, %v4005_v15 }
 0x192   : > { %v4097_v24 = vadd.f32 %v2817_v27, %v3900_v46  ;;  %v2886_v57 = vpop.f32.mrf.mxu0 }
 0x193   : > { %v4102_v43 = vpop.f32.mrf.mxu1  ;;  %v2887_v61 = vadd.f32 %v2886_v57, %v2885_v53 }
 0x194   : > { %v2888_v17 = vpop.f32.mrf.mxu0 }
 0x195   : > { %v4104_v6 = vpop.f32.mrf.mxu1  ;;  %v4114_v52 = vadd.f32 %v2887_v61, %v4011_v50 }
 0x196   : > { %v2889_v39 = vpop.f32.mrf.mxu0 }
 0x197   : > { %v4109_v41 = vpop.f32.mrf.mxu1  ;;  %4364 = vst [vmem:[#allocation3_spill] sm:$0xff] %v4114_v52  ;;  %v2890_v1 = vadd.f32 %v2889_v39, %v2888_v17 }
 0x198   : > { %v2891_v5 = vpop.f32.mrf.mxu0 }
 0x199   : > { %v4111_v46 = vpop.f32.mrf.mxu1  ;;  %v4121_v15 = vadd.f32 %v2890_v1, %v4017_v22 }
 0x19a   : > { %v2892_v12 = vpop.f32.mrf.mxu0 }
 0x19b   : > { %v4116_v34 = vpop.f32.mrf.mxu1  ;;  %v2893_v14 = vadd.f32 %v2892_v12, %v2891_v5 }
 0x19c   : > { %v2894_v26 = vpop.f32.mrf.mxu0 }
 0x19d   : > { %v4118_v9 = vpop.f32.mrf.mxu1  ;;  %v4128_v50 = vadd.f32 %v2893_v14, %v4023_v18 }
 0x19e   : > { %v2895_v35 = vpop.f32.mrf.mxu0 }
 0x19f   : > { %v4123_v55 = vpop.f32.mrf.mxu1  ;;  %v2896_v0 = vadd.f32 %v2895_v35, %v2894_v26 }
 0x1a0   : > { %v2897_v58 = vpop.f32.mrf.mxu0 }
 0x1a1   : > { %v4125_v49 = vpop.f32.mrf.mxu1  ;;  %v4135_v22 = vadd.f32 %v2896_v0, %v4029_v38 }
 0x1a2   : > { %v2898_v20 = vpop.f32.mrf.mxu0 }
 0x1a3   : > { %v4130_v2 = vpop.f32.mrf.mxu1  ;;  %4365 = vst [vmem:[#allocation4_spill] sm:$0xff] %v4135_v22  ;;  %v2899_v25 = vadd.f32 %v2898_v20, %v2897_v58 }
 0x1a4   : > { %v2900_v31 = vpop.f32.mrf.mxu0 }
 0x1a5   : > { %v4132_v29 = vpop.f32.mrf.mxu1  ;;  %v4142_v18 = vadd.f32 %v2899_v25, %v4035_v21 }
 0x1a6   : > { %v2901_v48 = vpop.f32.mrf.mxu0 }
 0x1a7   : > { %v4137_v27 = vpop.f32.mrf.mxu1  ;;  %4366 = vst [vmem:[#allocation5_spill] sm:$0xff] %v4142_v18  ;;  %v2902_v57 = vadd.f32 %v2901_v48, %v2900_v31 }
 0x1a8   : > { %v2903_v61 = vpop.f32.mrf.mxu0 }
 0x1a9   : > { %v4139_v59 = vpop.f32.mrf.mxu1  ;;  %v4149_v38 = vadd.f32 %v2902_v57, %v4041_v32 }
 0x1aa   : > { %v2904_v39 = vpop.f32.mrf.mxu0 }
 0x1ab   : > { %v4144_v53 = vpop.f32.mrf.mxu1  ;;  %4367 = vst [vmem:[#allocation6_spill] sm:$0xff] %v4149_v38  ;;  %v2905_v5 = vadd.f32 %v2904_v39, %v2903_v61 }
 0x1ac   : > { %v2906_v12 = vpop.f32.mrf.mxu0 }
 0x1ad   : > { %v4146_v17 = vpop.f32.mrf.mxu1  ;;  %v4156_v21 = vadd.f32 %v2905_v5, %v4047_v47 }
 0x1ae   : > { %v2907_v26 = vpop.f32.mrf.mxu0 }
 0x1af   : > { %v4151_v1 = vpop.f32.mrf.mxu1  ;;  %4368 = vst [vmem:[#allocation7_spill] sm:$0xff] %v4156_v21  ;;  %v2908_v0 = vadd.f32 %v2907_v26, %v2906_v12 }
 0x1b0   : > { %v2909_v58 = vpop.f32.mrf.mxu0 }
 0x1b1   : > { %v4153_v14 = vpop.f32.mrf.mxu1  ;;  %v4163_v32 = vadd.f32 %v2908_v0, %v4053_v37 }
 0x1b2   : > { %v2910_v25 = vpop.f32.mrf.mxu0 }
 0x1b3   : > { %v4158_v35 = vpop.f32.mrf.mxu1  ;;  %4369 = vst [vmem:[#allocation8_spill] sm:$0xff] %v4163_v32  ;;  %v2911_v48 = vadd.f32 %v2910_v25, %v2909_v58 }
 0x1b4   : > { %v2912_v57 = vpop.f32.mrf.mxu0 }
 0x1b5   : > { %v4160_v20 = vpop.f32.mrf.mxu1  ;;  %v4170_v47 = vadd.f32 %v2911_v48, %v4059_v54 }
 0x1b6   : > { %v2913_v39 = vpop.f32.mrf.mxu0 }
 0x1b7   : > { %v4165_v31 = vpop.f32.mrf.mxu1  ;;  %4370 = vst [vmem:[#allocation9_spill] sm:$0xff] %v4170_v47  ;;  %v2914_v12 = vadd.f32 %v2913_v39, %v2912_v57 }
 0x1b8   : > { %v2915_v26 = vpop.f32.mrf.mxu0 }
 0x1b9   : > { %v4167_v61 = vpop.f32.mrf.mxu1  ;;  %v4177_v37 = vadd.f32 %v2914_v12, %v4065_v3 }
 0x1ba   : > { %v2916_v0 = vpop.f32.mrf.mxu0 }
 0x1bb   : > { %v4172_v5 = vpop.f32.mrf.mxu1  ;;  %4371 = vst [vmem:[#allocation10_spill] sm:$0xff] %v4177_v37  ;;  %v2917_v58 = vadd.f32 %v2916_v0, %v2915_v26 }
 0x1bc   : > { %v2918_v25 = vpop.f32.mrf.mxu0 }
 0x1bd   : > { %v4174_v18 = vpop.f32.mrf.mxu1  ;;  %v4184_v54 = vadd.f32 %v2917_v58, %v4071_v8 }
 0x1be   : > { %v2919_v48 = vpop.f32.mrf.mxu0 }
 0x1bf   : > { %v4179_v32 = vpop.f32.mrf.mxu1  ;;  %4372 = vst [vmem:[#allocation11_spill] sm:$0xff] %v4184_v54  ;;  %v2920_v57 = vadd.f32 %v2919_v48, %v2918_v25  ;;  %v2954_v25 = vadd.f32 %v4116_v34, %v4111_v46 }
 0x1c0   : > { %v2921_v39 = vpop.f32.mrf.mxu0 }
 0x1c1   : > { %v4181_v21 = vpop.f32.mrf.mxu1  ;;  %v4191_v3 = vadd.f32 %v2920_v57, %v4077_v33 }
 0x1c2   : > { %v2922_v12 = vpop.f32.mrf.mxu0 }
 0x1c3   : > { %v4186_v47 = vpop.f32.mrf.mxu1  ;;  %4373 = vst [vmem:[#allocation12_spill] sm:$0xff] %v4191_v3  ;;  %v2923_v26 = vadd.f32 %v2922_v12, %v2921_v39  ;;  %v2948_v39 = vadd.f32 %v4102_v43, %v4094_v7  ;;  %v2951_v7 = vadd.f32 %v4109_v41, %v4104_v6 }
 0x1c4   : > { %v2924_v0 = vpop.f32.mrf.mxu0 }
 0x1c5   : > { %v4188_v22 = vpop.f32.mrf.mxu1  ;;  %v4198_v8 = vadd.f32 %v2923_v26, %v4083_v28  ;;  %v2957_v28 = vadd.f32 %v4123_v55, %v4118_v9  ;;  %v1996_v41 = vadd.f32 %v2951_v7, %v4014_v11 }
 0x1c6   : > { %v2925_v58 = vpop.f32.mrf.mxu0 }
 0x1c7   : > { %v4193_v37 = vpop.f32.mrf.mxu1  ;;  %4374 = vst [vmem:[#allocation13_spill] sm:$0xff] %v4198_v8  ;;  %v2926_v48 = vadd.f32 %v2925_v58, %v2924_v0  ;;  %v2001_v8 = vadd.f32 %v2954_v25, %v4020_v62  ;;  %v1993_v62 = vadd.f32 %v2948_v39, %v4008_v45  ;;  %v2004_v58 = vadd.f32 %v2957_v28, %v4026_v16 }
 0x1c8   : > { %v2927_v33 = vpop.f32.mrf.mxu0  ;;  %v2960_v45 = vadd.f32 %v4130_v2, %v4125_v49  ;;  %v2963_v49 = vadd.f32 %v4137_v27, %v4132_v29  ;;  %v2978_v2 = vadd.f32 %v4172_v5, %v4167_v61 }
 0x1c9   : > { %v4195_v38 = vpop.f32.mrf.mxu1  ;;  %v4209_v12 = vadd.f32 %v2926_v48, %v4089_v40 }
 0x1ca   : > { %v2928_v3 = vpop.f32.mrf.mxu0 }
 0x1cb   : > { %v4200_v54 = vpop.f32.mrf.mxu1  ;;  %v2929_v26 = vadd.f32 %v2928_v3, %v2927_v33  ;;  %v2966_v3 = vadd.f32 %v4144_v53, %v4139_v59  ;;  %v2969_v59 = vadd.f32 %v4151_v1, %v4146_v17 }
 0x1cc   : > { %v3084_v40 = vpop.f32.mrf.mxu0 }
 0x1cd   : > { %v4204_v57 = vpop.f32.mrf.mxu1  ;;  %v4228_v43 = vadd.f32 %v2929_v26, %v4097_v24  ;;  %v2162_v34 = vadd.f32 %v3084_v40, %v2001_v8  ;;  %v2017_v16 = vadd.f32 %v2966_v3, %v4044_v42  ;;  %v2009_v42 = vadd.f32 %v2960_v45, %v4032_v23 }
 0x1ce   : > { %v2153_v55 = vpop.f32.mrf.mxu0  ;;  %v2020_v3 = vadd.f32 %v2969_v59, %v4050_v56  ;;  %v2033_v56 = vadd.f32 %v2978_v2, %v4068_v36 }
 0x1cf   : > { %v4211_v52 = vpop.f32.mrf.mxu1  ;;  %2390 = vst [vmem:[%s4223_s24 + $0x10] sm:$0xff] %v2162_v34  ;;  %v2154_v0 = vadd.f32 %v2153_v55, %v1993_v62  ;;  %v2320_v7 = vmul.f32 %v2162_v34, %v2162_v34 }
 0x1d0   : > { %v3085_v6 = vpop.f32.mrf.mxu0 }
 0x1d1   : > { %v4216_v46 = vpop.f32.mrf.mxu1  ;;  %2388 = vst [vmem:[%s4223_s24] sm:$0xff] %v2154_v0  ;;  %v2165_v24 = vadd.f32 %v3085_v6, %v2004_v58  ;;  %v2318_v28 = vmul.f32 %v2154_v0, %v2154_v0 }
 0x1d2   : > { %v2156_v48 = vpop.f32.mrf.mxu0 }
 0x1d3   : > { %v4231_v9 = vpop.f32.mrf.mxu1  ;;  %2391 = vst [vmem:[%s4223_s24 + $0x18] sm:$0xff] %v2165_v24  ;;  %v2157_v53 = vadd.f32 %v2156_v48, %v1996_v41  ;;  %v2321_v61 = vmul.f32 %v2165_v24, %v2165_v24 }
 0x1d4   : > { %v3088_v39 = vpop.f32.mrf.mxu0 }
 0x1d5   : > { %v4237_v25 = vpop.f32.mrf.mxu1  ;;  %v2280_v26 = vadd.f32 %v2157_v53, %v2154_v0  ;;  %v2319_v11 = vmul.f32 %v2157_v53, %v2157_v53  ;;  %2389 = vst [vmem:[%s4223_s24 + $0x8] sm:$0xff] %v2157_v53  ;;  %v2178_v40 = vadd.f32 %v3088_v39, %v2017_v16  ;;  %v2972_v0 = vadd.f32 %v4158_v35, %v4153_v14 }
 0x1d6   : > { %v2169_v1 = vpop.f32.mrf.mxu0  ;;  %v2981_v14 = vadd.f32 %v4179_v32, %v4174_v18  ;;  %v2975_v39 = vadd.f32 %v4165_v31, %v4160_v20 }
 0x1d7   : > { %v4243_v8 = vpop.f32.mrf.mxu1  ;;  %v2281_v62 = vadd.f32 %v2280_v26, %v2162_v34  ;;  %v2350_v55 = vadd.f32 %v2319_v11, %v2318_v28  ;;  %2394 = vst [vmem:[%s4223_s24 + $0x30] sm:$0xff] %v2178_v40  ;;  %v2170_v58 = vadd.f32 %v2169_v1, %v2009_v42  ;;  %v2012_v34 = vadd.f32 %v2963_v49, %v4038_v51 }
 0x1d8   : > { %v3089_v27 = vpop.f32.mrf.mxu0  ;;  %v2025_v26 = vadd.f32 %v2972_v0, %v4056_v13  ;;  %v2990_v49 = vadd.f32 %v4200_v54, %v4195_v38  ;;  %v2036_v42 = vadd.f32 %v2981_v14, %v4074_v44  ;;  %v2324_v20 = vmul.f32 %v2178_v40, %v2178_v40 }
 0x1d9   : > { %v4249_v33 = vpop.f32.mrf.mxu1  ;;  %v2351_v5 = vadd.f32 %v2350_v55, %v2320_v7  ;;  %v2282_v6 = vadd.f32 %v2281_v62, %v2165_v24  ;;  %v2181_v41 = vadd.f32 %v3089_v27, %v2020_v3  ;;  %2392 = vst [vmem:[%s4223_s24 + $0x20] sm:$0xff] %v2170_v58  ;;  %v2322_v48 = vmul.f32 %v2170_v58, %v2170_v58 }
 0x1da   : > { %v2172_v45 = vpop.f32.mrf.mxu0  ;;  %v2984_v62 = vadd.f32 %v4186_v47, %v4181_v21  ;;  %v2028_v3 = vadd.f32 %v2975_v39, %v4062_v30 }
 0x1db   : > { %v4256_v17 = vpop.f32.mrf.mxu1  ;;  %v2283_v35 = vadd.f32 %v2282_v6, %v2170_v58  ;;  %v2352_v59 = vadd.f32 %v2351_v5, %v2321_v61  ;;  %2395 = vst [vmem:[%s4223_s24 + $0x38] sm:$0xff] %v2181_v41  ;;  %v2173_v53 = vadd.f32 %v2172_v45, %v2012_v34  ;;  %v2325_v0 = vmul.f32 %v2181_v41, %v2181_v41 }
 0x1dc   : > { %v3092_v16 = vpop.f32.mrf.mxu0  ;;  %v2049_v61 = vadd.f32 %v2990_v49, %v4092_v10  ;;  %v2987_v34 = vadd.f32 %v4193_v37, %v4188_v22  ;;  %v3002_v10 = vadd.f32 %v4256_v17, %v4249_v33 }
 0x1dd   : > { %v4263_v29 = vpop.f32.mrf.mxu1  ;;  %v2353_v51 = vadd.f32 %v2352_v59, %v2322_v48  ;;  %v2194_v28 = vadd.f32 %v3092_v16, %v2033_v56  ;;  %v2284_v36 = vadd.f32 %v2283_v35, %v2173_v53  ;;  %v2323_v11 = vmul.f32 %v2173_v53, %v2173_v53  ;;  %2393 = vst [vmem:[%s4223_s24 + $0x28] sm:$0xff] %v2173_v53 }
 0x1de   : > { %v2185_v32 = vpop.f32.mrf.mxu0  ;;  %v2041_v56 = vadd.f32 %v2984_v62, %v4080_v19  ;;  %v2996_v19 = vadd.f32 %v4231_v9, %v4216_v46  ;;  %v2065_v49 = vadd.f32 %v3002_v10, %v4121_v15 }
 0x1df   : > { %v4266_v23 = vpop.f32.mrf.mxu1  ;;  %2398 = vst [vmem:[%s4223_s24 + $0x50] sm:$0xff] %v2194_v28  ;;  %v2186_v2 = vadd.f32 %v2185_v32, %v2025_v26  ;;  %v2285_v31 = vadd.f32 %v2284_v36, %v2178_v40  ;;  %v2354_v1 = vadd.f32 %v2353_v51, %v2323_v11  ;;  %v2993_v40 = vadd.f32 %v4211_v52, %v4204_v57 }
 0x1e0   : > { %v3093_v13 = vpop.f32.mrf.mxu0  ;;  %v2328_v53 = vmul.f32 %v2194_v28, %v2194_v28  ;;  %v2044_v26 = vadd.f32 %v2987_v34, %v4086_v4  ;;  %v2999_v4 = vadd.f32 %v4243_v8, %v4237_v25 }
 0x1e1   : > { %v4273_v24 = vpop.f32.mrf.mxu1  ;;  %2396 = vst [vmem:[%s4223_s24 + $0x40] sm:$0xff] %v2186_v2  ;;  %v2197_v55 = vadd.f32 %v3093_v13, %v2036_v42  ;;  %v2355_v38 = vadd.f32 %v2354_v1, %v2324_v20  ;;  %v2286_v54 = vadd.f32 %v2285_v31, %v2181_v41  ;;  %v2326_v47 = vmul.f32 %v2186_v2, %v2186_v2 }
 0x1e2   : > { %v2188_v44 = vpop.f32.mrf.mxu0  ;;  %v2052_v59 = vadd.f32 %v2993_v40, %v4100_v63  ;;  %v3005_v63 = vadd.f32 %v4266_v23, %v4263_v29  ;;  %v2057_v13 = vadd.f32 %v2996_v19, %v4107_v60 }
 0x1e3   : > { %v4279_v18 = vpop.f32.mrf.mxu1  ;;  %2399 = vst [vmem:[%s4223_s24 + $0x58] sm:$0xff] %v2197_v55  ;;  %v2189_v27 = vadd.f32 %v2188_v44, %v2028_v3  ;;  %v2287_v21 = vadd.f32 %v2286_v54, %v2186_v2  ;;  %v2356_v5 = vadd.f32 %v2355_v38, %v2325_v0  ;;  %v2329_v36 = vmul.f32 %v2197_v55, %v2197_v55 }
 0x1e4   : > { %v3096_v30 = vpop.f32.mrf.mxu0  ;;  %v2068_v0 = vadd.f32 %v3005_v63, %v4128_v50  ;;  %v3008_v40 = vadd.f32 %v4279_v18, %v4273_v24  ;;  %v4379_v63 = vld [vmem:[#allocation5_spill] sm:$0xff] }
 0x1e5   : > { %v4285_v7 = vpop.f32.mrf.mxu1  ;;  %v2327_v41 = vmul.f32 %v2189_v27, %v2189_v27  ;;  %2397 = vst [vmem:[%s4223_s24 + $0x48] sm:$0xff] %v2189_v27  ;;  %v2210_v45 = vadd.f32 %v3096_v30, %v2049_v61  ;;  %v2357_v52 = vadd.f32 %v2356_v5, %v2326_v47  ;;  %v2288_v57 = vadd.f32 %v2287_v21, %v2189_v27  ;;  %v4375_v27 = vld [vmem:[#allocation3_spill] sm:$0xff] }
 0x1e6   : > { %v2201_v35 = vpop.f32.mrf.mxu0  ;;  %v2060_v61 = vadd.f32 %v2999_v4, %v4375_v27 }
 0x1e7   : > { %v4291_v58 = vpop.f32.mrf.mxu1  ;;  %2402 = vst [vmem:[%s4223_s24 + $0x70] sm:$0xff] %v2210_v45  ;;  %v2202_v48 = vadd.f32 %v2201_v35, %v2041_v56  ;;  %v2289_v22 = vadd.f32 %v2288_v57, %v2194_v28  ;;  %v2358_v37 = vadd.f32 %v2357_v52, %v2327_v41  ;;  %v2332_v38 = vmul.f32 %v2210_v45, %v2210_v45  ;;  %v4376_v41 = vld [vmem:[#allocation6_spill] sm:$0xff] }
 0x1e8   : > { %v3097_v39 = vpop.f32.mrf.mxu0 }
 0x1e9   : > { %v3012_v6 = vpop.f32.mrf.mxu1  ;;  %2400 = vst [vmem:[%s4223_s24 + $0x60] sm:$0xff] %v2202_v48  ;;  %v2213_v51 = vadd.f32 %v3097_v39, %v2052_v59  ;;  %v2359_v33 = vadd.f32 %v2358_v37, %v2328_v53  ;;  %v2290_v17 = vadd.f32 %v2289_v22, %v2197_v55  ;;  %v2330_v46 = vmul.f32 %v2202_v48, %v2202_v48 }
 0x1ea   : > { %v2204_v32 = vpop.f32.mrf.mxu0 }
 0x1eb   : > { %v3013_v14 = vpop.f32.mrf.mxu1  ;;  %2403 = vst [vmem:[%s4223_s24 + $0x78] sm:$0xff] %v2213_v51  ;;  %v2205_v28 = vadd.f32 %v2204_v32, %v2044_v26  ;;  %v2291_v2 = vadd.f32 %v2290_v17, %v2202_v48  ;;  %v2360_v9 = vadd.f32 %v2359_v33, %v2329_v36  ;;  %v2333_v21 = vmul.f32 %v2213_v51, %v2213_v51  ;;  %v4377_v48 = vld [vmem:[#allocation4_spill] sm:$0xff] }
 0x1ec   : > { %v3100_v20 = vpop.f32.mrf.mxu0  ;;  %v3014_v15 = vadd.f32 %v3013_v14, %v3012_v6  ;;  %v3011_v14 = vadd.f32 %v4291_v58, %v4285_v7  ;;  %v2073_v59 = vadd.f32 %v3008_v40, %v4377_v48 }
 0x1ed   : > { %v3015_v16 = vpop.f32.mrf.mxu1  ;;  %v2331_v31 = vmul.f32 %v2205_v28, %v2205_v28  ;;  %2401 = vst [vmem:[%s4223_s24 + $0x68] sm:$0xff] %v2205_v28  ;;  %v2226_v1 = vadd.f32 %v3100_v20, %v2065_v49  ;;  %v2361_v29 = vadd.f32 %v2360_v9, %v2330_v46  ;;  %v2292_v23 = vadd.f32 %v2291_v2, %v2205_v28 }
 0x1ee   : > { %v2217_v55 = vpop.f32.mrf.mxu0  ;;  %v2076_v28 = vadd.f32 %v3011_v14, %v4379_v63 }
 0x1ef   : > { %v3016_v11 = vpop.f32.mrf.mxu1  ;;  %2406 = vst [vmem:[%s4223_s24 + $0x90] sm:$0xff] %v2226_v1  ;;  %v2218_v3 = vadd.f32 %v2217_v55, %v2057_v13  ;;  %v2293_v54 = vadd.f32 %v2292_v23, %v2210_v45  ;;  %v2362_v44 = vadd.f32 %v2361_v29, %v2331_v31  ;;  %v2081_v45 = vadd.f32 %v3014_v15, %v4376_v41  ;;  %v4380_v13 = vld [vmem:[#allocation10_spill] sm:$0xff]  ;;  %v4383_v41 = vld [vmem:[#allocation9_spill] sm:$0xff] }
 0x1f0   : > { %v3101_v8 = vpop.f32.mrf.mxu0  ;;  %v3017_v50 = vadd.f32 %v3016_v11, %v3015_v16  ;;  %v2336_v36 = vmul.f32 %v2226_v1, %v2226_v1 }
 0x1f1   : > { %v3018_v42 = vpop.f32.mrf.mxu1  ;;  %2404 = vst [vmem:[%s4223_s24 + $0x80] sm:$0xff] %v2218_v3  ;;  %v2229_v60 = vadd.f32 %v3101_v8, %v2068_v0  ;;  %v2363_v47 = vadd.f32 %v2362_v44, %v2332_v38  ;;  %v2294_v5 = vadd.f32 %v2293_v54, %v2213_v51  ;;  %v2334_v52 = vmul.f32 %v2218_v3, %v2218_v3  ;;  %v4378_v51 = vld [vmem:[#allocation7_spill] sm:$0xff]  ;;  %v4381_v38 = vld [vmem:[#allocation8_spill] sm:$0xff] }
 0x1f2   : > { %v2220_v30 = vpop.f32.mrf.mxu0  ;;  %v2084_v26 = vadd.f32 %v3017_v50, %v4378_v51 }
 0x1f3   : > { %v3019_v62 = vpop.f32.mrf.mxu1  ;;  %2407 = vst [vmem:[%s4223_s24 + $0x98] sm:$0xff] %v2229_v60  ;;  %v2221_v34 = vadd.f32 %v2220_v30, %v2060_v61  ;;  %v2295_v56 = vadd.f32 %v2294_v5, %v2218_v3  ;;  %v2364_v57 = vadd.f32 %v2363_v47, %v2333_v21  ;;  %v2337_v49 = vmul.f32 %v2229_v60, %v2229_v60  ;;  %v4382_v61 = vld [vmem:[#allocation11_spill] sm:$0xff] }
 0x1f4   : > { %v3104_v18 = vpop.f32.mrf.mxu0  ;;  %v3020_v11 = vadd.f32 %v3019_v62, %v3018_v42 }
 0x1f5   : > { %v3021_v25 = vpop.f32.mrf.mxu1  ;;  %v2335_v35 = vmul.f32 %v2221_v34, %v2221_v34  ;;  %2405 = vst [vmem:[%s4223_s24 + $0x88] sm:$0xff] %v2221_v34  ;;  %v2242_v10 = vadd.f32 %v3104_v18, %v2081_v45  ;;  %v2365_v53 = vadd.f32 %v2364_v57, %v2334_v52  ;;  %v2296_v22 = vadd.f32 %v2295_v56, %v2221_v34 }
 0x1f6   : > { %v2233_v16 = vpop.f32.mrf.mxu0  ;;  %v2089_v54 = vadd.f32 %v3020_v11, %v4381_v38 }
 0x1f7   : > { %v3022_v6 = vpop.f32.mrf.mxu1  ;;  %2410 = vst [vmem:[%s4223_s24 + $0xb0] sm:$0xff] %v2242_v10  ;;  %v2234_v19 = vadd.f32 %v2233_v16, %v2073_v59  ;;  %v2297_v33 = vadd.f32 %v2296_v22, %v2226_v1  ;;  %v2366_v17 = vadd.f32 %v2365_v53, %v2335_v35  ;;  %v2340_v47 = vmul.f32 %v2242_v10, %v2242_v10  ;;  %v4384_v16 = vld [vmem:[#allocation12_spill] sm:$0xff] }
 0x1f8   : > { %v3105_v58 = vpop.f32.mrf.mxu0  ;;  %v3023_v15 = vadd.f32 %v3022_v6, %v3021_v25 }
 0x1f9   : > { %v3024_v24 = vpop.f32.mrf.mxu1  ;;  %2408 = vst [vmem:[%s4223_s24 + $0xa0] sm:$0xff] %v2234_v19  ;;  %v2245_v32 = vadd.f32 %v3105_v58, %v2084_v26  ;;  %v2367_v2 = vadd.f32 %v2366_v17, %v2336_v36  ;;  %v2298_v46 = vadd.f32 %v2297_v33, %v2229_v60  ;;  %v2338_v23 = vmul.f32 %v2234_v19, %v2234_v19 }
 0x1fa   : > { %v2236_v20 = vpop.f32.mrf.mxu0  ;;  %v2092_v45 = vadd.f32 %v3023_v15, %v4383_v41 }
 0x1fb   : > { %v3025_v37 = vpop.f32.mrf.mxu1  ;;  %2411 = vst [vmem:[%s4223_s24 + $0xb8] sm:$0xff] %v2245_v32  ;;  %v2237_v31 = vadd.f32 %v2236_v20, %v2076_v28  ;;  %v2299_v29 = vadd.f32 %v2298_v46, %v2234_v19  ;;  %v2368_v55 = vadd.f32 %v2367_v2, %v2337_v49  ;;  %v2341_v56 = vmul.f32 %v2245_v32, %v2245_v32  ;;  %v4385_v49 = vld [vmem:[#allocation13_spill] sm:$0xff] }
 0x1fc   : > { %v3026_v39 = vadd.f32 %v3025_v37, %v3024_v24  ;;  %v3108_v62 = vpop.f32.mrf.mxu0 }
 0x1fd   : > { %v3027_v7 = vpop.f32.mrf.mxu1  ;;  %v2339_v3 = vmul.f32 %v2237_v31, %v2237_v31  ;;  %2409 = vst [vmem:[%s4223_s24 + $0xa8] sm:$0xff] %v2237_v31  ;;  %v2369_v44 = vadd.f32 %v2368_v55, %v2338_v23  ;;  %v2300_v8 = vadd.f32 %v2299_v29, %v2237_v31 }
 0x1fe   : > { %v2097_v1 = vadd.f32 %v3026_v39, %v4380_v13  ;;  %v2249_v60 = vpop.f32.mrf.mxu0 }
 0x1ff   : > { %v3028_v9 = vpop.f32.mrf.mxu1  ;;  %v2250_v27 = vadd.f32 %v2249_v60, %v2089_v54  ;;  %v2301_v5 = vadd.f32 %v2300_v8, %v2242_v10  ;;  %v2370_v30 = vadd.f32 %v2369_v44, %v2339_v3 }
 0x200   : > { %v3029_v4 = vadd.f32 %v3028_v9, %v3027_v7  ;;  %v2258_v0 = vadd.f32 %v3108_v62, %v2097_v1  ;;  %v3109_v25 = vpop.f32.mrf.mxu0 }
 0x201   : > { %v3030_v42 = vpop.f32.mrf.mxu1  ;;  %2412 = vst [vmem:[%s4223_s24 + $0xc0] sm:$0xff] %v2250_v27  ;;  %v2371_v52 = vadd.f32 %v2370_v30, %v2340_v47  ;;  %v2302_v57 = vadd.f32 %v2301_v5, %v2245_v32  ;;  %v2342_v48 = vmul.f32 %v2250_v27, %v2250_v27 }
 0x202   : > { %2414 = vst [vmem:[%s4223_s24 + $0xd0] sm:$0xff] %v2258_v0  ;;  %v2100_v21 = vadd.f32 %v3029_v4, %v4382_v61  ;;  %v2252_v18 = vpop.f32.mrf.mxu0  ;;  %v2344_v7 = vmul.f32 %v2258_v0, %v2258_v0 }
 0x203   : > { %v3031_v40 = vpop.f32.mrf.mxu1  ;;  %v2253_v14 = vadd.f32 %v2252_v18, %v2092_v45  ;;  %v2303_v35 = vadd.f32 %v2302_v57, %v2250_v27  ;;  %v2372_v59 = vadd.f32 %v2371_v52, %v2341_v56 }
 0x204   : > { %v3032_v6 = vadd.f32 %v3031_v40, %v3030_v42  ;;  %v2261_v34 = vadd.f32 %v3109_v25, %v2100_v21  ;;  %v3112_v53 = vpop.f32.mrf.mxu0 }
 0x205   : > { %v3033_v50 = vpop.f32.mrf.mxu1  ;;  %v2343_v37 = vmul.f32 %v2253_v14, %v2253_v14  ;;  %2413 = vst [vmem:[%s4223_s24 + $0xc8] sm:$0xff] %v2253_v14  ;;  %v2373_v19 = vadd.f32 %v2372_v59, %v2342_v48  ;;  %v2304_v51 = vadd.f32 %v2303_v35, %v2253_v14 }
 0x206   : > { %2415 = vst [vmem:[%s4223_s24 + $0xd8] sm:$0xff] %v2261_v34  ;;  %v2105_v39 = vadd.f32 %v3032_v6, %v4384_v16  ;;  %v2265_v36 = vpop.f32.mrf.mxu0  ;;  %v2345_v46 = vmul.f32 %v2261_v34, %v2261_v34 }
 0x207   : > { %v3034_v24 = vpop.f32.mrf.mxu1  ;;  %v2305_v58 = vadd.f32 %v2304_v51, %v2258_v0  ;;  %v2374_v11 = vadd.f32 %v2373_v19, %v2343_v37 }
 0x208   : > { %v3035_v22 = vadd.f32 %v3034_v24, %v3033_v50  ;;  %v2266_v17 = vadd.f32 %v2265_v36, %v2105_v39  ;;  %v3113_v63 = vpop.f32.mrf.mxu0 }
 0x209   : > { %v3036_v10 = vpop.f32.mrf.mxu1  ;;  %v2375_v9 = vadd.f32 %v2374_v11, %v2344_v7  ;;  %v2306_v20 = vadd.f32 %v2305_v58, %v2261_v34 }
 0x20a   : > { %2416 = vst [vmem:[%s4223_s24 + $0xe0] sm:$0xff] %v2266_v17  ;;  %v2108_v2 = vadd.f32 %v3035_v22, %v4385_v49  ;;  %v2268_v31 = vpop.f32.mrf.mxu0  ;;  %v2346_v55 = vmul.f32 %v2266_v17, %v2266_v17 }
 0x20b   : > { %v3037_v26 = vpop.f32.mrf.mxu1  ;;  %v2307_v23 = vadd.f32 %v2306_v20, %v2266_v17  ;;  %v2376_v42 = vadd.f32 %v2375_v9, %v2345_v46 }
 0x20c   : > { %v3038_v33 = vadd.f32 %v3037_v26, %v3036_v10  ;;  %v2269_v29 = vadd.f32 %v2268_v31, %v2108_v2 }
 0x20d   : > { %v3039_v32 = vpop.f32.mrf.mxu1  ;;  %v2377_v15 = vadd.f32 %v2376_v42, %v2346_v55 }
 0x20e   : > { %v2113_v28 = vadd.f32 %v3038_v33, %v4209_v12  ;;  %v2347_v12 = vmul.f32 %v2269_v29, %v2269_v29  ;;  %2417 = vst [vmem:[%s4223_s24 + $0xe8] sm:$0xff] %v2269_v29  ;;  %v2308_v3 = vadd.f32 %v2307_v23, %v2269_v29 }
 0x20f   : > { %v3040_v4 = vpop.f32.mrf.mxu1 }
 0x210   : > { %v2274_v13 = vadd.f32 %v3112_v53, %v2113_v28  ;;  %v3041_v1 = vadd.f32 %v3040_v4, %v3039_v32  ;;  %v2378_v44 = vadd.f32 %v2377_v15, %v2347_v12 }
 0x212   : > { %2418 = vst [vmem:[%s4223_s24 + $0xf0] sm:$0xff] %v2274_v13  ;;  %v2116_v62 = vadd.f32 %v3041_v1, %v4228_v43  ;;  %v2348_v38 = vmul.f32 %v2274_v13, %v2274_v13  ;;  %v2309_v54 = vadd.f32 %v2308_v3, %v2274_v13 }
 0x214   : > { %v2277_v0 = vadd.f32 %v3113_v63, %v2116_v62  ;;  %v2379_v60 = vadd.f32 %v2378_v44, %v2348_v38 }
 0x216   : > { %v2349_v8 = vmul.f32 %v2277_v0, %v2277_v0  ;;  %2419 = vst [vmem:[%s4223_s24 + $0xf8] sm:$0xff] %v2277_v0  ;;  %v2310_v40 = vadd.f32 %v2309_v54, %v2277_v0 }
 0x218   : > { %v2311_v27 = vrot.slane %v2310_v40, 4  ;;  %v2380_v61 = vadd.f32 %v2379_v60, %v2349_v8 }
 0x21a   : > { %v2312_v21 = vadd.f32 %v2311_v27, %v2310_v40  ;;  %v2381_v47 = vrot.slane %v2380_v61, 4 }
 0x21c   : > { %v2313_v5 = vrot.slane %v2312_v21, 2  ;;  %v2382_v30 = vadd.f32 %v2381_v47, %v2380_v61 }
 0x21e   : > { %v2314_v43 = vadd.f32 %v2313_v5, %v2312_v21  ;;  %v2383_v50 = vrot.slane %v2382_v30, 2 }
 0x220   : > { %v2315_v25 = vrot.slane %v2314_v43, 1  ;;  %v2384_v6 = vadd.f32 %v2383_v50, %v2382_v30 }
 0x222   : > { %v2316_v34 = vadd.f32 %v2315_v25, %v2314_v43  ;;  %v2385_v41 = vrot.slane %v2384_v6, 1 }
 0x224   : > { %2317 = vst [vmem:[%s235_s27] sm:$0x1] %v2316_v34  ;;  %v2386_v45 = vadd.f32 %v2385_v41, %v2384_v6 }
 0x226   : > { %2387 = vst [vmem:[%s235_s27 + $0x1] sm:$0x1] %v2386_v45 }
 0x227 PF: > { %s16_s18 = sadd.s32 1, %s3218_s18  }
 0x228   : > { %p13_p4 = scmp.ge.s32.totalorder %s16_s18, 4  }
 0x22a   :  { %15 = sbr.rel (!%p13_p4) target bundleno = 1 (0x1), region = 80 }

</bundles_post_ra>
